<compile_context>
chip_gen: v7x
topology: tpu7x:2x2x1
jax: 0.10.0
libtpu: 0.0.40
codegen_flags: <defaults>
</compile_context>

<pallas_src>
import functools

import numpy as np
import jax
import jax.numpy as jnp
from jax.experimental import pallas as pl
from jax.experimental.pallas import tpu as pltpu  # noqa: F401  (TPU backend)


# d-index order for spatial shifts (drow, dcol); d = (drow+1)*3 + (dcol+1)
_SHIFTS = tuple((di, dj) for di in (-1, 0, 1) for dj in (-1, 0, 1))
# output sub-pixel phase order; ph = 2*qi + qj  (must match _phase_uv / masks)
_PHASES = ((0, 0), (0, 1), (1, 0), (1, 1))
# For t = q + D (output phase + requested plane shift), the ConvT(k3,s2,p1,op1)
# value needs these (input-plane shift, kernel tap index) pairs per axis.
_TAPS = {-1: ((-1, 2), (0, 0)),
         0: ((0, 1),),
         1: ((0, 2), (1, 0)),
         2: ((1, 1),)}
_TVALS = (-1, 0, 1, 2)


# ============================================================================
# Host-side builders (numpy; run once at init/trace time)
# ============================================================================
def _phase_uv(level):
    """Offsets (u, v) inside a 2^level x 2^level seed cell for phase index m."""
    u = np.zeros(1, np.int64)
    v = np.zeros(1, np.int64)
    for _ in range(level):
        u = np.concatenate([2 * u + qi for (qi, _) in _PHASES])
        v = np.concatenate([2 * v + qj for (_, qj) in _PHASES])
    return u, v


def _level_masks(level, batch, seed=4):
    """(9, Npos) masks: mask[d, pos] = 1 iff fine-pos + SHIFTS[d] is in-image."""
    u, v = _phase_uv(level)
    blk = 2 ** level
    size = seed * blk
    s = np.arange(seed * seed)
    rows = (s // seed)[None, :] * blk + u[:, None]          # (M, 16)
    cols = (s % seed)[None, :] * blk + v[:, None]
    out = np.zeros((9, len(u), batch, seed * seed), np.float32)
    for d, (di, dj) in enumerate(_SHIFTS):
        ok = ((rows + di >= 0) & (rows + di < size) &
              (cols + dj >= 0) & (cols + dj < size)).astype(np.float32)
        out[d] = ok[:, None, :]
    return jnp.asarray(out.reshape(9, len(u) * batch * seed * seed))


def _build_w_ext(wt):
    """Phase/shift-blocked ConvTranspose2d(k3,s2,p1,op1) weight.

    wt: (3, 3, Cout, Cin) tap matrices (wt[kh, kw] == torch W[:, :, kh, kw].T).
    Returns (16*Cout, 9*Cin): row-block y = (ti+1)*4 + (tj+1) produces the value
    at fine offset (ti, tj) relative to 2*coarse position; column-block d is the
    input plane shifted by _SHIFTS[d].
    """
    cout, cin = wt.shape[2], wt.shape[3]
    w = np.zeros((16 * cout, 9 * cin), np.float32)
    for yi, ti in enumerate(_TVALS):
        for yj, tj in enumerate(_TVALS):
            y = yi * 4 + yj
            for (d_i, kh) in _TAPS[ti]:
                for (d_j, kw) in _TAPS[tj]:
                    d = (d_i + 1) * 3 + (d_j + 1)
                    w[y * cout:(y + 1) * cout, d * cin:(d + 1) * cin] += wt[kh, kw]
    return w


# ============================================================================
# The fused Pallas kernel
# ============================================================================
def _decoder_kernel(*refs, batch, c0, chans, leaky_slope):
    num_layers = len(chans)
    mu_ref, lv_ref, eps_ref, fcw_ref, fcb_ref, seedmask_ref = refs[:6]
    layer_refs = refs[6:6 + 4 * num_layers]
    convw_ref = refs[6 + 4 * num_layers]
    convb_ref = refs[6 + 4 * num_layers + 1]
    o_ref = refs[-1]

    f32, bf16 = jnp.float32, jnp.bfloat16

    # ---- reparameterize + decode_input Linear (fused head) ------------------
    z = mu_ref[...] + jnp.exp(0.5 * lv_ref[...]) * eps_ref[...]          # (B, L)
    h = jnp.dot(z.astype(bf16), fcw_ref[...],
                preferred_element_type=f32) + fcb_ref[...]               # (B, C0*16)

    # torch: res.view(-1, C0, 4, 4) -> channel-major (C0, B*16), lanes = [n][s]
    blocks = []
    for n in range(batch):
        blocks.append(jnp.concatenate(
            [h[n:n + 1, c * 16:(c + 1) * 16] for c in range(c0)], axis=0))
    x_center = jnp.concatenate(blocks, axis=1)                           # (C0, B*16)

    # ---- seed-level shifted planes (zero outside the 4x4 seed image) --------
    npos = batch * 16
    smask = seedmask_ref[...]
    planes = []
    for d, (di, dj) in enumerate(_SHIFTS):
        if di == 0 and dj == 0:
            planes.append(x_center)
            continue
        w = di * 4 + dj
        if w > 0:
            sh = jnp.concatenate(
                [x_center[:, w:], jnp.zeros((c0, w), f32)], axis=1)
        else:
            sh = jnp.concatenate(
                [jnp.zeros((c0, -w), f32), x_center[:, :npos + w]], axis=1)
        planes.append(sh * smask[d:d + 1, :])

    # ---- ConvTranspose2d + BatchNorm2d blocks, all in phase space -----------
    for l in range(num_layers):
        cin, cout = chans[l]
        wext = layer_refs[4 * l][...]                   # (16*cout, 9*cin) bf16
        gamma = layer_refs[4 * l + 1][...]              # (cout, 1)
        beta = layer_refs[4 * l + 2][...]               # (cout, 1)
        masks = layer_refs[4 * l + 3][...]              # (9, 4*npos)

        rhs = jnp.concatenate(planes, axis=0).astype(bf16)       # (9*cin, npos)
        yall = jnp.dot(wext, rhs, preferred_element_type=f32)    # (16*cout, npos)

        def ysl(ti, tj):
            y = (ti + 1) * 4 + (tj + 1)
            return yall[y * cout:(y + 1) * cout, :]

        # assemble the 9 shifted planes at the new (2x) resolution: lane-concat
        # of the 4 sub-pixel phases (new phase index is the most-significant
        # position digit -> pure concatenation, no interleave).
        new_planes = []
        for (di, dj) in _SHIFTS:
            new_planes.append(jnp.concatenate(
                [ysl(qi + di, qj + dj) for (qi, qj) in _PHASES], axis=1))
        npos = 4 * npos

        # BatchNorm2d (training-mode batch stats), single pass over the center
        # plane.  The ConvT bias cancels exactly inside batch-norm -> dropped.
        center = new_planes[4]
        inv_n = 1.0 / float(npos)
        mean = jnp.sum(center, axis=1, keepdims=True) * inv_n
        ex2 = jnp.sum(center * center, axis=1, keepdims=True) * inv_n
        var = ex2 - mean * mean
        scale = gamma * jax.lax.rsqrt(var + 1e-5)
        shift = beta - mean * scale

        last = (l == num_layers - 1)
        planes = []
        for d in range(9):
            p = new_planes[d] * scale + shift
            if last:                               # LeakyReLU only in last_layer
                p = jnp.where(p >= 0.0, p, leaky_slope * p)
            if d != 4:
                p = p * masks[d:d + 1, :]          # re-zero out-of-image taps
            planes.append(p)

    # ---- final 3x3 'same' Conv2d + bias + Tanh -------------------------------
    rhs = jnp.concatenate(planes, axis=0).astype(bf16)            # (9*C, npos)
    out = jnp.dot(convw_ref[...], rhs, preferred_element_type=f32) + convb_ref[...]
    o_ref[...] = jnp.tanh(out)


# ============================================================================
# Parameter construction + forward wrapper
# ============================================================================
def init_params(key, latent_dim, hidden_dims, batch):
    hd_rev = list(reversed(hidden_dims))
    c0 = hd_rev[0]
    chans = [(hd_rev[i], hd_rev[i + 1]) for i in range(len(hd_rev) - 1)]
    chans.append((hd_rev[-1], hd_rev[-1]))          # last_layer ConvT (C -> C)
    num_layers = len(chans)

    keys = iter(jax.random.split(key, num_layers + 8))

    def nrm(shape, scale=0.1):
        return np.asarray(jax.random.normal(next(keys), shape, jnp.float32)) * scale

    params = {
        "fc_w": jnp.asarray(nrm((latent_dim, c0 * 16)), jnp.bfloat16),
        "fc_b": jnp.asarray(nrm((1, c0 * 16), 0.01), jnp.float32),
        "layers": [],
        "masks": [_level_masks(l, batch) for l in range(num_layers + 1)],
    }
    for (cin, cout) in chans:
        wt = nrm((3, 3, cout, cin))                 # wt[kh, kw] = (Cout, Cin)
        params["layers"].append({
            "w_ext": jnp.asarray(_build_w_ext(wt), jnp.bfloat16),
            "gamma": jnp.ones((cout, 1), jnp.float32),
            "beta": jnp.zeros((cout, 1), jnp.float32),
        })
    c_last = hd_rev[-1]
    wc = nrm((3, 3, 3, c_last))                     # wc[kh, kw] = (3, C_last)
    params["conv_w"] = jnp.asarray(
        np.concatenate([wc[di + 1, dj + 1] for (di, dj) in _SHIFTS], axis=1),
        jnp.bfloat16)                               # (3, 9*C_last)
    params["conv_b"] = jnp.asarray(nrm((3, 1), 0.01), jnp.float32)
    return params


def decoder_forward(params, mu, log_var, eps):
    batch = mu.shape[0]
    num_layers = len(params["layers"])
    c0 = params["fc_w"].shape[1] // 16
    chans = tuple((lay["w_ext"].shape[1] // 9, lay["w_ext"].shape[0] // 16)
                  for lay in params["layers"])

    inputs = [mu, log_var, eps, params["fc_w"], params["fc_b"],
              params["masks"][0]]
    for l in range(num_layers):
        lay = params["layers"][l]
        inputs += [lay["w_ext"], lay["gamma"], lay["beta"],
                   params["masks"][l + 1]]
    inputs += [params["conv_w"], params["conv_b"]]

    npos_out = (4 ** num_layers) * batch * 16
    kernel = functools.partial(_decoder_kernel, batch=batch, c0=c0,
                               chans=chans, leaky_slope=0.01)
    out_flat = pl.pallas_call(
        kernel,
        out_shape=jax.ShapeDtypeStruct((3, npos_out), jnp.float32),
    )(*inputs)

    # free XLA de-interleave of the nested sub-pixel phases -> NCHW
    side = 2 ** num_layers
    s_out = 4 * side
    u, v = _phase_uv(num_layers)
    perm = np.zeros(side * side, np.int64)
    perm[u * side + v] = np.arange(side * side)
    o = out_flat.reshape(3, side * side, batch, 4, 4)
    o = jnp.take(o, jnp.asarray(perm), axis=1)
    o = o.reshape(3, side, side, batch, 4, 4)       # (ch, u, v, n, a, b)
    o = o.transpose(3, 0, 4, 1, 5, 2)               # (n, ch, a, u, b, v)
    return o.reshape(batch, 3, s_out, s_out)


# ============================================================================
if __name__ == "__main__":
    latent_dim = 8
    hidden_dims = [8, 16, 32]          # decoder reverses -> [32, 16, 8]
    batch = 2

    key = jax.random.PRNGKey(0)
    kp, km, kv, ke = jax.random.split(key, 4)

    params = init_params(kp, latent_dim, hidden_dims, batch)
    mu = jax.random.normal(km, (batch, latent_dim), jnp.float32)
    log_var = 0.1 * jax.random.normal(kv, (batch, latent_dim), jnp.float32)
    # torch.randn_like inside reparameterize -> deterministic host-side eps
    eps = jax.random.normal(ke, (batch, latent_dim), jnp.float32)

    out = jax.jit(decoder_forward)(params, mu, log_var, eps)
    out = jax.block_until_ready(out)

    # 4x4 seed upsampled 3x (2 decoder blocks + last_layer ConvT) -> 3x32x32
    assert out.shape == (batch, 3, 32, 32), out.shape
    assert bool(jnp.all(jnp.isfinite(out)))
    print("KERNEL_OK")
</pallas_src>

<mosaic_0001>
module attributes {stable_mosaic.version = 11 : i64} {
  func.func @_decoder_kernel(%arg0: memref<2x8xf32, #tpu.memory_space<vmem>>, %arg1: memref<2x8xf32, #tpu.memory_space<vmem>>, %arg2: memref<2x8xf32, #tpu.memory_space<vmem>>, %arg3: memref<8x512xbf16, #tpu.memory_space<vmem>>, %arg4: memref<1x512xf32, #tpu.memory_space<vmem>>, %arg5: memref<9x32xf32, #tpu.memory_space<vmem>>, %arg6: memref<256x288xbf16, #tpu.memory_space<vmem>>, %arg7: memref<16x1xf32, #tpu.memory_space<vmem>>, %arg8: memref<16x1xf32, #tpu.memory_space<vmem>>, %arg9: memref<9x128xf32, #tpu.memory_space<vmem>>, %arg10: memref<128x144xbf16, #tpu.memory_space<vmem>>, %arg11: memref<8x1xf32, #tpu.memory_space<vmem>>, %arg12: memref<8x1xf32, #tpu.memory_space<vmem>>, %arg13: memref<9x512xf32, #tpu.memory_space<vmem>>, %arg14: memref<128x72xbf16, #tpu.memory_space<vmem>>, %arg15: memref<8x1xf32, #tpu.memory_space<vmem>>, %arg16: memref<8x1xf32, #tpu.memory_space<vmem>>, %arg17: memref<9x2048xf32, #tpu.memory_space<vmem>>, %arg18: memref<3x72xbf16, #tpu.memory_space<vmem>>, %arg19: memref<3x1xf32, #tpu.memory_space<vmem>>, %arg20: memref<3x2048xf32, #tpu.memory_space<vmem>>) attributes {dimension_semantics = [], scalar_prefetch = 0 : i64, scratch_operands = 0 : i64, tpu.core_type = #tpu.core_type<tc>} {
    %c0 = arith.constant 0 : index
    %c0_0 = arith.constant 0 : index
    %0 = vector.load %arg0[%c0, %c0_0] : memref<2x8xf32, #tpu.memory_space<vmem>>, vector<2x8xf32>
    %c0_1 = arith.constant 0 : index
    %c0_2 = arith.constant 0 : index
    %1 = vector.load %arg1[%c0_1, %c0_2] : memref<2x8xf32, #tpu.memory_space<vmem>>, vector<2x8xf32>
    %cst = arith.constant 5.000000e-01 : f32
    %2 = vector.broadcast %cst : f32 to vector<2x8xf32>
    %3 = arith.mulf %2, %1 : vector<2x8xf32>
    %4 = math.exp %3 : vector<2x8xf32>
    %c0_3 = arith.constant 0 : index
    %c0_4 = arith.constant 0 : index
    %5 = vector.load %arg2[%c0_3, %c0_4] : memref<2x8xf32, #tpu.memory_space<vmem>>, vector<2x8xf32>
    %6 = arith.mulf %4, %5 : vector<2x8xf32>
    %7 = arith.addf %0, %6 : vector<2x8xf32>
    %8 = arith.truncf %7 : vector<2x8xf32> to vector<2x8xbf16>
    %c0_5 = arith.constant 0 : index
    %c0_6 = arith.constant 0 : index
    %9 = vector.load %arg3[%c0_5, %c0_6] : memref<8x512xbf16, #tpu.memory_space<vmem>>, vector<8x512xbf16>
    %cst_7 = arith.constant dense<0.000000e+00> : vector<2x512xf32>
    %10 = tpu.matmul %8, %9, %cst_7 {dimension_numbers = #tpu.dot_dimension_numbers<[1], [0], [0], [1], [0, 0, 1, 1], [], []>} : vector<2x8xbf16>, vector<8x512xbf16>, vector<2x512xf32> -> vector<2x512xf32>
    %c0_8 = arith.constant 0 : index
    %c0_9 = arith.constant 0 : index
    %11 = vector.load %arg4[%c0_8, %c0_9] : memref<1x512xf32, #tpu.memory_space<vmem>>, vector<1x512xf32>
    %12 = vector.broadcast %11 : vector<1x512xf32> to vector<2x512xf32>
    %13 = arith.addf %10, %12 : vector<2x512xf32>
    %14 = vector.extract_strided_slice %13 {offsets = [0, 0], sizes = [1, 16], strides = [1, 1]} : vector<2x512xf32> to vector<1x16xf32>
    %15 = vector.extract_strided_slice %13 {offsets = [0, 16], sizes = [1, 16], strides = [1, 1]} : vector<2x512xf32> to vector<1x16xf32>
    %16 = vector.extract_strided_slice %13 {offsets = [0, 32], sizes = [1, 16], strides = [1, 1]} : vector<2x512xf32> to vector<1x16xf32>
    %17 = vector.extract_strided_slice %13 {offsets = [0, 48], sizes = [1, 16], strides = [1, 1]} : vector<2x512xf32> to vector<1x16xf32>
    %18 = vector.extract_strided_slice %13 {offsets = [0, 64], sizes = [1, 16], strides = [1, 1]} : vector<2x512xf32> to vector<1x16xf32>
    %19 = vector.extract_strided_slice %13 {offsets = [0, 80], sizes = [1, 16], strides = [1, 1]} : vector<2x512xf32> to vector<1x16xf32>
    %20 = vector.extract_strided_slice %13 {offsets = [0, 96], sizes = [1, 16], strides = [1, 1]} : vector<2x512xf32> to vector<1x16xf32>
    %21 = vector.extract_strided_slice %13 {offsets = [0, 112], sizes = [1, 16], strides = [1, 1]} : vector<2x512xf32> to vector<1x16xf32>
    %22 = vector.extract_strided_slice %13 {offsets = [0, 128], sizes = [1, 16], strides = [1, 1]} : vector<2x512xf32> to vector<1x16xf32>
    %23 = vector.extract_strided_slice %13 {offsets = [0, 144], sizes = [1, 16], strides = [1, 1]} : vector<2x512xf32> to vector<1x16xf32>
    %24 = vector.extract_strided_slice %13 {offsets = [0, 160], sizes = [1, 16], strides = [1, 1]} : vector<2x512xf32> to vector<1x16xf32>
    %25 = vector.extract_strided_slice %13 {offsets = [0, 176], sizes = [1, 16], strides = [1, 1]} : vector<2x512xf32> to vector<1x16xf32>
    %26 = vector.extract_strided_slice %13 {offsets = [0, 192], sizes = [1, 16], strides = [1, 1]} : vector<2x512xf32> to vector<1x16xf32>
    %27 = vector.extract_strided_slice %13 {offsets = [0, 208], sizes = [1, 16], strides = [1, 1]} : vector<2x512xf32> to vector<1x16xf32>
    %28 = vector.extract_strided_slice %13 {offsets = [0, 224], sizes = [1, 16], strides = [1, 1]} : vector<2x512xf32> to vector<1x16xf32>
    %29 = vector.extract_strided_slice %13 {offsets = [0, 240], sizes = [1, 16], strides = [1, 1]} : vector<2x512xf32> to vector<1x16xf32>
    %30 = vector.extract_strided_slice %13 {offsets = [0, 256], sizes = [1, 16], strides = [1, 1]} : vector<2x512xf32> to vector<1x16xf32>
    %31 = vector.extract_strided_slice %13 {offsets = [0, 272], sizes = [1, 16], strides = [1, 1]} : vector<2x512xf32> to vector<1x16xf32>
    %32 = vector.extract_strided_slice %13 {offsets = [0, 288], sizes = [1, 16], strides = [1, 1]} : vector<2x512xf32> to vector<1x16xf32>
    %33 = vector.extract_strided_slice %13 {offsets = [0, 304], sizes = [1, 16], strides = [1, 1]} : vector<2x512xf32> to vector<1x16xf32>
    %34 = vector.extract_strided_slice %13 {offsets = [0, 320], sizes = [1, 16], strides = [1, 1]} : vector<2x512xf32> to vector<1x16xf32>
    %35 = vector.extract_strided_slice %13 {offsets = [0, 336], sizes = [1, 16], strides = [1, 1]} : vector<2x512xf32> to vector<1x16xf32>
    %36 = vector.extract_strided_slice %13 {offsets = [0, 352], sizes = [1, 16], strides = [1, 1]} : vector<2x512xf32> to vector<1x16xf32>
    %37 = vector.extract_strided_slice %13 {offsets = [0, 368], sizes = [1, 16], strides = [1, 1]} : vector<2x512xf32> to vector<1x16xf32>
    %38 = vector.extract_strided_slice %13 {offsets = [0, 384], sizes = [1, 16], strides = [1, 1]} : vector<2x512xf32> to vector<1x16xf32>
    %39 = vector.extract_strided_slice %13 {offsets = [0, 400], sizes = [1, 16], strides = [1, 1]} : vector<2x512xf32> to vector<1x16xf32>
    %40 = vector.extract_strided_slice %13 {offsets = [0, 416], sizes = [1, 16], strides = [1, 1]} : vector<2x512xf32> to vector<1x16xf32>
    %41 = vector.extract_strided_slice %13 {offsets = [0, 432], sizes = [1, 16], strides = [1, 1]} : vector<2x512xf32> to vector<1x16xf32>
    %42 = vector.extract_strided_slice %13 {offsets = [0, 448], sizes = [1, 16], strides = [1, 1]} : vector<2x512xf32> to vector<1x16xf32>
    %43 = vector.extract_strided_slice %13 {offsets = [0, 464], sizes = [1, 16], strides = [1, 1]} : vector<2x512xf32> to vector<1x16xf32>
    %44 = vector.extract_strided_slice %13 {offsets = [0, 480], sizes = [1, 16], strides = [1, 1]} : vector<2x512xf32> to vector<1x16xf32>
    %45 = vector.extract_strided_slice %13 {offsets = [0, 496], sizes = [1, 16], strides = [1, 1]} : vector<2x512xf32> to vector<1x16xf32>
    %46 = tpu.concatenate %14, %15, %16, %17, %18, %19, %20, %21, %22, %23, %24, %25, %26, %27, %28, %29 in 0 : vector<1x16xf32>, vector<1x16xf32>, vector<1x16xf32>, vector<1x16xf32>, vector<1x16xf32>, vector<1x16xf32>, vector<1x16xf32>, vector<1x16xf32>, vector<1x16xf32>, vector<1x16xf32>, vector<1x16xf32>, vector<1x16xf32>, vector<1x16xf32>, vector<1x16xf32>, vector<1x16xf32>, vector<1x16xf32> -> vector<16x16xf32>
    %47 = tpu.concatenate %30, %31, %32, %33, %34, %35, %36, %37, %38, %39, %40, %41, %42, %43, %44, %45 in 0 : vector<1x16xf32>, vector<1x16xf32>, vector<1x16xf32>, vector<1x16xf32>, vector<1x16xf32>, vector<1x16xf32>, vector<1x16xf32>, vector<1x16xf32>, vector<1x16xf32>, vector<1x16xf32>, vector<1x16xf32>, vector<1x16xf32>, vector<1x16xf32>, vector<1x16xf32>, vector<1x16xf32>, vector<1x16xf32> -> vector<16x16xf32>
    %48 = tpu.concatenate %46, %47 in 0 : vector<16x16xf32>, vector<16x16xf32> -> vector<32x16xf32>
    %49 = vector.extract_strided_slice %13 {offsets = [1, 0], sizes = [1, 16], strides = [1, 1]} : vector<2x512xf32> to vector<1x16xf32>
    %50 = vector.extract_strided_slice %13 {offsets = [1, 16], sizes = [1, 16], strides = [1, 1]} : vector<2x512xf32> to vector<1x16xf32>
    %51 = vector.extract_strided_slice %13 {offsets = [1, 32], sizes = [1, 16], strides = [1, 1]} : vector<2x512xf32> to vector<1x16xf32>
    %52 = vector.extract_strided_slice %13 {offsets = [1, 48], sizes = [1, 16], strides = [1, 1]} : vector<2x512xf32> to vector<1x16xf32>
    %53 = vector.extract_strided_slice %13 {offsets = [1, 64], sizes = [1, 16], strides = [1, 1]} : vector<2x512xf32> to vector<1x16xf32>
    %54 = vector.extract_strided_slice %13 {offsets = [1, 80], sizes = [1, 16], strides = [1, 1]} : vector<2x512xf32> to vector<1x16xf32>
    %55 = vector.extract_strided_slice %13 {offsets = [1, 96], sizes = [1, 16], strides = [1, 1]} : vector<2x512xf32> to vector<1x16xf32>
    %56 = vector.extract_strided_slice %13 {offsets = [1, 112], sizes = [1, 16], strides = [1, 1]} : vector<2x512xf32> to vector<1x16xf32>
    %57 = vector.extract_strided_slice %13 {offsets = [1, 128], sizes = [1, 16], strides = [1, 1]} : vector<2x512xf32> to vector<1x16xf32>
    %58 = vector.extract_strided_slice %13 {offsets = [1, 144], sizes = [1, 16], strides = [1, 1]} : vector<2x512xf32> to vector<1x16xf32>
    %59 = vector.extract_strided_slice %13 {offsets = [1, 160], sizes = [1, 16], strides = [1, 1]} : vector<2x512xf32> to vector<1x16xf32>
    %60 = vector.extract_strided_slice %13 {offsets = [1, 176], sizes = [1, 16], strides = [1, 1]} : vector<2x512xf32> to vector<1x16xf32>
    %61 = vector.extract_strided_slice %13 {offsets = [1, 192], sizes = [1, 16], strides = [1, 1]} : vector<2x512xf32> to vector<1x16xf32>
    %62 = vector.extract_strided_slice %13 {offsets = [1, 208], sizes = [1, 16], strides = [1, 1]} : vector<2x512xf32> to vector<1x16xf32>
    %63 = vector.extract_strided_slice %13 {offsets = [1, 224], sizes = [1, 16], strides = [1, 1]} : vector<2x512xf32> to vector<1x16xf32>
    %64 = vector.extract_strided_slice %13 {offsets = [1, 240], sizes = [1, 16], strides = [1, 1]} : vector<2x512xf32> to vector<1x16xf32>
    %65 = vector.extract_strided_slice %13 {offsets = [1, 256], sizes = [1, 16], strides = [1, 1]} : vector<2x512xf32> to vector<1x16xf32>
    %66 = vector.extract_strided_slice %13 {offsets = [1, 272], sizes = [1, 16], strides = [1, 1]} : vector<2x512xf32> to vector<1x16xf32>
    %67 = vector.extract_strided_slice %13 {offsets = [1, 288], sizes = [1, 16], strides = [1, 1]} : vector<2x512xf32> to vector<1x16xf32>
    %68 = vector.extract_strided_slice %13 {offsets = [1, 304], sizes = [1, 16], strides = [1, 1]} : vector<2x512xf32> to vector<1x16xf32>
    %69 = vector.extract_strided_slice %13 {offsets = [1, 320], sizes = [1, 16], strides = [1, 1]} : vector<2x512xf32> to vector<1x16xf32>
    %70 = vector.extract_strided_slice %13 {offsets = [1, 336], sizes = [1, 16], strides = [1, 1]} : vector<2x512xf32> to vector<1x16xf32>
    %71 = vector.extract_strided_slice %13 {offsets = [1, 352], sizes = [1, 16], strides = [1, 1]} : vector<2x512xf32> to vector<1x16xf32>
    %72 = vector.extract_strided_slice %13 {offsets = [1, 368], sizes = [1, 16], strides = [1, 1]} : vector<2x512xf32> to vector<1x16xf32>
    %73 = vector.extract_strided_slice %13 {offsets = [1, 384], sizes = [1, 16], strides = [1, 1]} : vector<2x512xf32> to vector<1x16xf32>
    %74 = vector.extract_strided_slice %13 {offsets = [1, 400], sizes = [1, 16], strides = [1, 1]} : vector<2x512xf32> to vector<1x16xf32>
    %75 = vector.extract_strided_slice %13 {offsets = [1, 416], sizes = [1, 16], strides = [1, 1]} : vector<2x512xf32> to vector<1x16xf32>
    %76 = vector.extract_strided_slice %13 {offsets = [1, 432], sizes = [1, 16], strides = [1, 1]} : vector<2x512xf32> to vector<1x16xf32>
    %77 = vector.extract_strided_slice %13 {offsets = [1, 448], sizes = [1, 16], strides = [1, 1]} : vector<2x512xf32> to vector<1x16xf32>
    %78 = vector.extract_strided_slice %13 {offsets = [1, 464], sizes = [1, 16], strides = [1, 1]} : vector<2x512xf32> to vector<1x16xf32>
    %79 = vector.extract_strided_slice %13 {offsets = [1, 480], sizes = [1, 16], strides = [1, 1]} : vector<2x512xf32> to vector<1x16xf32>
    %80 = vector.extract_strided_slice %13 {offsets = [1, 496], sizes = [1, 16], strides = [1, 1]} : vector<2x512xf32> to vector<1x16xf32>
    %81 = tpu.concatenate %49, %50, %51, %52, %53, %54, %55, %56, %57, %58, %59, %60, %61, %62, %63, %64 in 0 : vector<1x16xf32>, vector<1x16xf32>, vector<1x16xf32>, vector<1x16xf32>, vector<1x16xf32>, vector<1x16xf32>, vector<1x16xf32>, vector<1x16xf32>, vector<1x16xf32>, vector<1x16xf32>, vector<1x16xf32>, vector<1x16xf32>, vector<1x16xf32>, vector<1x16xf32>, vector<1x16xf32>, vector<1x16xf32> -> vector<16x16xf32>
    %82 = tpu.concatenate %65, %66, %67, %68, %69, %70, %71, %72, %73, %74, %75, %76, %77, %78, %79, %80 in 0 : vector<1x16xf32>, vector<1x16xf32>, vector<1x16xf32>, vector<1x16xf32>, vector<1x16xf32>, vector<1x16xf32>, vector<1x16xf32>, vector<1x16xf32>, vector<1x16xf32>, vector<1x16xf32>, vector<1x16xf32>, vector<1x16xf32>, vector<1x16xf32>, vector<1x16xf32>, vector<1x16xf32>, vector<1x16xf32> -> vector<16x16xf32>
    %83 = tpu.concatenate %81, %82 in 0 : vector<16x16xf32>, vector<16x16xf32> -> vector<32x16xf32>
    %84 = tpu.concatenate %48, %83 in 1 : vector<32x16xf32>, vector<32x16xf32> -> vector<32x32xf32>
    %c0_10 = arith.constant 0 : index
    %c0_11 = arith.constant 0 : index
    %85 = vector.load %arg5[%c0_10, %c0_11] : memref<9x32xf32, #tpu.memory_space<vmem>>, vector<9x32xf32>
    %cst_12 = arith.constant 0.000000e+00 : f32
    %86 = vector.broadcast %cst_12 : f32 to vector<32x5xf32>
    %87 = vector.extract_strided_slice %84 {offsets = [0, 0], sizes = [32, 27], strides = [1, 1]} : vector<32x32xf32> to vector<32x27xf32>
    %88 = tpu.concatenate %86, %87 in 1 : vector<32x5xf32>, vector<32x27xf32> -> vector<32x32xf32>
    %89 = vector.extract_strided_slice %85 {offsets = [0, 0], sizes = [1, 32], strides = [1, 1]} : vector<9x32xf32> to vector<1x32xf32>
    %90 = vector.broadcast %89 : vector<1x32xf32> to vector<32x32xf32>
    %91 = arith.mulf %88, %90 : vector<32x32xf32>
    %cst_13 = arith.constant 0.000000e+00 : f32
    %92 = vector.broadcast %cst_13 : f32 to vector<32x4xf32>
    %93 = vector.extract_strided_slice %84 {offsets = [0, 0], sizes = [32, 28], strides = [1, 1]} : vector<32x32xf32> to vector<32x28xf32>
    %94 = tpu.concatenate %92, %93 in 1 : vector<32x4xf32>, vector<32x28xf32> -> vector<32x32xf32>
    %95 = vector.extract_strided_slice %85 {offsets = [1, 0], sizes = [1, 32], strides = [1, 1]} : vector<9x32xf32> to vector<1x32xf32>
    %96 = vector.broadcast %95 : vector<1x32xf32> to vector<32x32xf32>
    %97 = arith.mulf %94, %96 : vector<32x32xf32>
    %cst_14 = arith.constant 0.000000e+00 : f32
    %98 = vector.broadcast %cst_14 : f32 to vector<32x3xf32>
    %99 = vector.extract_strided_slice %84 {offsets = [0, 0], sizes = [32, 29], strides = [1, 1]} : vector<32x32xf32> to vector<32x29xf32>
    %100 = tpu.concatenate %98, %99 in 1 : vector<32x3xf32>, vector<32x29xf32> -> vector<32x32xf32>
    %101 = vector.extract_strided_slice %85 {offsets = [2, 0], sizes = [1, 32], strides = [1, 1]} : vector<9x32xf32> to vector<1x32xf32>
    %102 = vector.broadcast %101 : vector<1x32xf32> to vector<32x32xf32>
    %103 = arith.mulf %100, %102 : vector<32x32xf32>
    %cst_15 = arith.constant 0.000000e+00 : f32
    %104 = vector.broadcast %cst_15 : f32 to vector<32x1xf32>
    %105 = vector.extract_strided_slice %84 {offsets = [0, 0], sizes = [32, 31], strides = [1, 1]} : vector<32x32xf32> to vector<32x31xf32>
    %106 = tpu.concatenate %104, %105 in 1 : vector<32x1xf32>, vector<32x31xf32> -> vector<32x32xf32>
    %107 = vector.extract_strided_slice %85 {offsets = [3, 0], sizes = [1, 32], strides = [1, 1]} : vector<9x32xf32> to vector<1x32xf32>
    %108 = vector.broadcast %107 : vector<1x32xf32> to vector<32x32xf32>
    %109 = arith.mulf %106, %108 : vector<32x32xf32>
    %110 = vector.extract_strided_slice %84 {offsets = [0, 1], sizes = [32, 31], strides = [1, 1]} : vector<32x32xf32> to vector<32x31xf32>
    %cst_16 = arith.constant 0.000000e+00 : f32
    %111 = vector.broadcast %cst_16 : f32 to vector<32x1xf32>
    %112 = tpu.concatenate %110, %111 in 1 : vector<32x31xf32>, vector<32x1xf32> -> vector<32x32xf32>
    %113 = vector.extract_strided_slice %85 {offsets = [5, 0], sizes = [1, 32], strides = [1, 1]} : vector<9x32xf32> to vector<1x32xf32>
    %114 = vector.broadcast %113 : vector<1x32xf32> to vector<32x32xf32>
    %115 = arith.mulf %112, %114 : vector<32x32xf32>
    %116 = vector.extract_strided_slice %84 {offsets = [0, 3], sizes = [32, 29], strides = [1, 1]} : vector<32x32xf32> to vector<32x29xf32>
    %cst_17 = arith.constant 0.000000e+00 : f32
    %117 = vector.broadcast %cst_17 : f32 to vector<32x3xf32>
    %118 = tpu.concatenate %116, %117 in 1 : vector<32x29xf32>, vector<32x3xf32> -> vector<32x32xf32>
    %119 = vector.extract_strided_slice %85 {offsets = [6, 0], sizes = [1, 32], strides = [1, 1]} : vector<9x32xf32> to vector<1x32xf32>
    %120 = vector.broadcast %119 : vector<1x32xf32> to vector<32x32xf32>
    %121 = arith.mulf %118, %120 : vector<32x32xf32>
    %122 = vector.extract_strided_slice %84 {offsets = [0, 4], sizes = [32, 28], strides = [1, 1]} : vector<32x32xf32> to vector<32x28xf32>
    %cst_18 = arith.constant 0.000000e+00 : f32
    %123 = vector.broadcast %cst_18 : f32 to vector<32x4xf32>
    %124 = tpu.concatenate %122, %123 in 1 : vector<32x28xf32>, vector<32x4xf32> -> vector<32x32xf32>
    %125 = vector.extract_strided_slice %85 {offsets = [7, 0], sizes = [1, 32], strides = [1, 1]} : vector<9x32xf32> to vector<1x32xf32>
    %126 = vector.broadcast %125 : vector<1x32xf32> to vector<32x32xf32>
    %127 = arith.mulf %124, %126 : vector<32x32xf32>
    %128 = vector.extract_strided_slice %84 {offsets = [0, 5], sizes = [32, 27], strides = [1, 1]} : vector<32x32xf32> to vector<32x27xf32>
    %cst_19 = arith.constant 0.000000e+00 : f32
    %129 = vector.broadcast %cst_19 : f32 to vector<32x5xf32>
    %130 = tpu.concatenate %128, %129 in 1 : vector<32x27xf32>, vector<32x5xf32> -> vector<32x32xf32>
    %131 = vector.extract_strided_slice %85 {offsets = [8, 0], sizes = [1, 32], strides = [1, 1]} : vector<9x32xf32> to vector<1x32xf32>
    %132 = vector.broadcast %131 : vector<1x32xf32> to vector<32x32xf32>
    %133 = arith.mulf %130, %132 : vector<32x32xf32>
    %c0_20 = arith.constant 0 : index
    %c0_21 = arith.constant 0 : index
    %134 = vector.load %arg6[%c0_20, %c0_21] : memref<256x288xbf16, #tpu.memory_space<vmem>>, vector<256x288xbf16>
    %c0_22 = arith.constant 0 : index
    %c0_23 = arith.constant 0 : index
    %135 = vector.load %arg7[%c0_22, %c0_23] : memref<16x1xf32, #tpu.memory_space<vmem>>, vector<16x1xf32>
    %c0_24 = arith.constant 0 : index
    %c0_25 = arith.constant 0 : index
    %136 = vector.load %arg8[%c0_24, %c0_25] : memref<16x1xf32, #tpu.memory_space<vmem>>, vector<16x1xf32>
    %c0_26 = arith.constant 0 : index
    %c0_27 = arith.constant 0 : index
    %137 = vector.load %arg9[%c0_26, %c0_27] : memref<9x128xf32, #tpu.memory_space<vmem>>, vector<9x128xf32>
    %138 = tpu.concatenate %91, %97, %103, %109, %84, %115, %121, %127, %133 in 0 : vector<32x32xf32>, vector<32x32xf32>, vector<32x32xf32>, vector<32x32xf32>, vector<32x32xf32>, vector<32x32xf32>, vector<32x32xf32>, vector<32x32xf32>, vector<32x32xf32> -> vector<288x32xf32>
    %139 = arith.truncf %138 : vector<288x32xf32> to vector<288x32xbf16>
    %cst_28 = arith.constant dense<0.000000e+00> : vector<256x32xf32>
    %140 = tpu.matmul %134, %139, %cst_28 {dimension_numbers = #tpu.dot_dimension_numbers<[1], [0], [0], [1], [0, 0, 1, 1], [], []>} : vector<256x288xbf16>, vector<288x32xbf16>, vector<256x32xf32> -> vector<256x32xf32>
    %141 = vector.extract_strided_slice %140 {offsets = [0, 0], sizes = [16, 32], strides = [1, 1]} : vector<256x32xf32> to vector<16x32xf32>
    %142 = vector.extract_strided_slice %140 {offsets = [16, 0], sizes = [16, 32], strides = [1, 1]} : vector<256x32xf32> to vector<16x32xf32>
    %143 = vector.extract_strided_slice %140 {offsets = [64, 0], sizes = [16, 32], strides = [1, 1]} : vector<256x32xf32> to vector<16x32xf32>
    %144 = vector.extract_strided_slice %140 {offsets = [80, 0], sizes = [16, 32], strides = [1, 1]} : vector<256x32xf32> to vector<16x32xf32>
    %145 = tpu.concatenate %141, %142, %143, %144 in 1 : vector<16x32xf32>, vector<16x32xf32>, vector<16x32xf32>, vector<16x32xf32> -> vector<16x128xf32>
    %146 = vector.extract_strided_slice %140 {offsets = [16, 0], sizes = [16, 32], strides = [1, 1]} : vector<256x32xf32> to vector<16x32xf32>
    %147 = vector.extract_strided_slice %140 {offsets = [32, 0], sizes = [16, 32], strides = [1, 1]} : vector<256x32xf32> to vector<16x32xf32>
    %148 = vector.extract_strided_slice %140 {offsets = [80, 0], sizes = [16, 32], strides = [1, 1]} : vector<256x32xf32> to vector<16x32xf32>
    %149 = vector.extract_strided_slice %140 {offsets = [96, 0], sizes = [16, 32], strides = [1, 1]} : vector<256x32xf32> to vector<16x32xf32>
    %150 = tpu.concatenate %146, %147, %148, %149 in 1 : vector<16x32xf32>, vector<16x32xf32>, vector<16x32xf32>, vector<16x32xf32> -> vector<16x128xf32>
    %151 = vector.extract_strided_slice %140 {offsets = [32, 0], sizes = [16, 32], strides = [1, 1]} : vector<256x32xf32> to vector<16x32xf32>
    %152 = vector.extract_strided_slice %140 {offsets = [48, 0], sizes = [16, 32], strides = [1, 1]} : vector<256x32xf32> to vector<16x32xf32>
    %153 = vector.extract_strided_slice %140 {offsets = [96, 0], sizes = [16, 32], strides = [1, 1]} : vector<256x32xf32> to vector<16x32xf32>
    %154 = vector.extract_strided_slice %140 {offsets = [112, 0], sizes = [16, 32], strides = [1, 1]} : vector<256x32xf32> to vector<16x32xf32>
    %155 = tpu.concatenate %151, %152, %153, %154 in 1 : vector<16x32xf32>, vector<16x32xf32>, vector<16x32xf32>, vector<16x32xf32> -> vector<16x128xf32>
    %156 = vector.extract_strided_slice %140 {offsets = [64, 0], sizes = [16, 32], strides = [1, 1]} : vector<256x32xf32> to vector<16x32xf32>
    %157 = vector.extract_strided_slice %140 {offsets = [80, 0], sizes = [16, 32], strides = [1, 1]} : vector<256x32xf32> to vector<16x32xf32>
    %158 = vector.extract_strided_slice %140 {offsets = [128, 0], sizes = [16, 32], strides = [1, 1]} : vector<256x32xf32> to vector<16x32xf32>
    %159 = vector.extract_strided_slice %140 {offsets = [144, 0], sizes = [16, 32], strides = [1, 1]} : vector<256x32xf32> to vector<16x32xf32>
    %160 = tpu.concatenate %156, %157, %158, %159 in 1 : vector<16x32xf32>, vector<16x32xf32>, vector<16x32xf32>, vector<16x32xf32> -> vector<16x128xf32>
    %161 = vector.extract_strided_slice %140 {offsets = [80, 0], sizes = [16, 32], strides = [1, 1]} : vector<256x32xf32> to vector<16x32xf32>
    %162 = vector.extract_strided_slice %140 {offsets = [96, 0], sizes = [16, 32], strides = [1, 1]} : vector<256x32xf32> to vector<16x32xf32>
    %163 = vector.extract_strided_slice %140 {offsets = [144, 0], sizes = [16, 32], strides = [1, 1]} : vector<256x32xf32> to vector<16x32xf32>
    %164 = vector.extract_strided_slice %140 {offsets = [160, 0], sizes = [16, 32], strides = [1, 1]} : vector<256x32xf32> to vector<16x32xf32>
    %165 = tpu.concatenate %161, %162, %163, %164 in 1 : vector<16x32xf32>, vector<16x32xf32>, vector<16x32xf32>, vector<16x32xf32> -> vector<16x128xf32>
    %166 = vector.extract_strided_slice %140 {offsets = [96, 0], sizes = [16, 32], strides = [1, 1]} : vector<256x32xf32> to vector<16x32xf32>
    %167 = vector.extract_strided_slice %140 {offsets = [112, 0], sizes = [16, 32], strides = [1, 1]} : vector<256x32xf32> to vector<16x32xf32>
    %168 = vector.extract_strided_slice %140 {offsets = [160, 0], sizes = [16, 32], strides = [1, 1]} : vector<256x32xf32> to vector<16x32xf32>
    %169 = vector.extract_strided_slice %140 {offsets = [176, 0], sizes = [16, 32], strides = [1, 1]} : vector<256x32xf32> to vector<16x32xf32>
    %170 = tpu.concatenate %166, %167, %168, %169 in 1 : vector<16x32xf32>, vector<16x32xf32>, vector<16x32xf32>, vector<16x32xf32> -> vector<16x128xf32>
    %171 = vector.extract_strided_slice %140 {offsets = [128, 0], sizes = [16, 32], strides = [1, 1]} : vector<256x32xf32> to vector<16x32xf32>
    %172 = vector.extract_strided_slice %140 {offsets = [144, 0], sizes = [16, 32], strides = [1, 1]} : vector<256x32xf32> to vector<16x32xf32>
    %173 = vector.extract_strided_slice %140 {offsets = [192, 0], sizes = [16, 32], strides = [1, 1]} : vector<256x32xf32> to vector<16x32xf32>
    %174 = vector.extract_strided_slice %140 {offsets = [208, 0], sizes = [16, 32], strides = [1, 1]} : vector<256x32xf32> to vector<16x32xf32>
    %175 = tpu.concatenate %171, %172, %173, %174 in 1 : vector<16x32xf32>, vector<16x32xf32>, vector<16x32xf32>, vector<16x32xf32> -> vector<16x128xf32>
    %176 = vector.extract_strided_slice %140 {offsets = [144, 0], sizes = [16, 32], strides = [1, 1]} : vector<256x32xf32> to vector<16x32xf32>
    %177 = vector.extract_strided_slice %140 {offsets = [160, 0], sizes = [16, 32], strides = [1, 1]} : vector<256x32xf32> to vector<16x32xf32>
    %178 = vector.extract_strided_slice %140 {offsets = [208, 0], sizes = [16, 32], strides = [1, 1]} : vector<256x32xf32> to vector<16x32xf32>
    %179 = vector.extract_strided_slice %140 {offsets = [224, 0], sizes = [16, 32], strides = [1, 1]} : vector<256x32xf32> to vector<16x32xf32>
    %180 = tpu.concatenate %176, %177, %178, %179 in 1 : vector<16x32xf32>, vector<16x32xf32>, vector<16x32xf32>, vector<16x32xf32> -> vector<16x128xf32>
    %181 = vector.extract_strided_slice %140 {offsets = [160, 0], sizes = [16, 32], strides = [1, 1]} : vector<256x32xf32> to vector<16x32xf32>
    %182 = vector.extract_strided_slice %140 {offsets = [176, 0], sizes = [16, 32], strides = [1, 1]} : vector<256x32xf32> to vector<16x32xf32>
    %183 = vector.extract_strided_slice %140 {offsets = [224, 0], sizes = [16, 32], strides = [1, 1]} : vector<256x32xf32> to vector<16x32xf32>
    %184 = vector.extract_strided_slice %140 {offsets = [240, 0], sizes = [16, 32], strides = [1, 1]} : vector<256x32xf32> to vector<16x32xf32>
    %185 = tpu.concatenate %181, %182, %183, %184 in 1 : vector<16x32xf32>, vector<16x32xf32>, vector<16x32xf32>, vector<16x32xf32> -> vector<16x128xf32>
    %cst_29 = arith.constant dense<0.000000e+00> : vector<16xf32>
    %186 = vector.multi_reduction <add>, %165, %cst_29 [1] : vector<16x128xf32> to vector<16xf32>
    %187 = vector.shape_cast %186 : vector<16xf32> to vector<16x1xf32>
    %cst_30 = arith.constant 7.812500e-03 : f32
    %188 = vector.broadcast %cst_30 : f32 to vector<16x1xf32>
    %189 = arith.mulf %187, %188 : vector<16x1xf32>
    %190 = arith.mulf %165, %165 : vector<16x128xf32>
    %cst_31 = arith.constant dense<0.000000e+00> : vector<16xf32>
    %191 = vector.multi_reduction <add>, %190, %cst_31 [1] : vector<16x128xf32> to vector<16xf32>
    %192 = vector.shape_cast %191 : vector<16xf32> to vector<16x1xf32>
    %cst_32 = arith.constant 7.812500e-03 : f32
    %193 = vector.broadcast %cst_32 : f32 to vector<16x1xf32>
    %194 = arith.mulf %192, %193 : vector<16x1xf32>
    %195 = arith.mulf %189, %189 : vector<16x1xf32>
    %196 = arith.subf %194, %195 : vector<16x1xf32>
    %cst_33 = arith.constant 9.99999974E-6 : f32
    %197 = vector.broadcast %cst_33 : f32 to vector<16x1xf32>
    %198 = arith.addf %196, %197 : vector<16x1xf32>
    %199 = math.rsqrt %198 : vector<16x1xf32>
    %200 = arith.mulf %135, %199 : vector<16x1xf32>
    %201 = arith.mulf %189, %200 : vector<16x1xf32>
    %202 = arith.subf %136, %201 : vector<16x1xf32>
    %203 = vector.broadcast %200 : vector<16x1xf32> to vector<16x128xf32>
    %204 = arith.mulf %145, %203 : vector<16x128xf32>
    %205 = vector.broadcast %202 : vector<16x1xf32> to vector<16x128xf32>
    %206 = arith.addf %204, %205 : vector<16x128xf32>
    %207 = vector.extract_strided_slice %137 {offsets = [0, 0], sizes = [1, 128], strides = [1, 1]} : vector<9x128xf32> to vector<1x128xf32>
    %208 = vector.broadcast %207 : vector<1x128xf32> to vector<16x128xf32>
    %209 = arith.mulf %206, %208 : vector<16x128xf32>
    %210 = vector.broadcast %200 : vector<16x1xf32> to vector<16x128xf32>
    %211 = arith.mulf %150, %210 : vector<16x128xf32>
    %212 = vector.broadcast %202 : vector<16x1xf32> to vector<16x128xf32>
    %213 = arith.addf %211, %212 : vector<16x128xf32>
    %214 = vector.extract_strided_slice %137 {offsets = [1, 0], sizes = [1, 128], strides = [1, 1]} : vector<9x128xf32> to vector<1x128xf32>
    %215 = vector.broadcast %214 : vector<1x128xf32> to vector<16x128xf32>
    %216 = arith.mulf %213, %215 : vector<16x128xf32>
    %217 = vector.broadcast %200 : vector<16x1xf32> to vector<16x128xf32>
    %218 = arith.mulf %155, %217 : vector<16x128xf32>
    %219 = vector.broadcast %202 : vector<16x1xf32> to vector<16x128xf32>
    %220 = arith.addf %218, %219 : vector<16x128xf32>
    %221 = vector.extract_strided_slice %137 {offsets = [2, 0], sizes = [1, 128], strides = [1, 1]} : vector<9x128xf32> to vector<1x128xf32>
    %222 = vector.broadcast %221 : vector<1x128xf32> to vector<16x128xf32>
    %223 = arith.mulf %220, %222 : vector<16x128xf32>
    %224 = vector.broadcast %200 : vector<16x1xf32> to vector<16x128xf32>
    %225 = arith.mulf %160, %224 : vector<16x128xf32>
    %226 = vector.broadcast %202 : vector<16x1xf32> to vector<16x128xf32>
    %227 = arith.addf %225, %226 : vector<16x128xf32>
    %228 = vector.extract_strided_slice %137 {offsets = [3, 0], sizes = [1, 128], strides = [1, 1]} : vector<9x128xf32> to vector<1x128xf32>
    %229 = vector.broadcast %228 : vector<1x128xf32> to vector<16x128xf32>
    %230 = arith.mulf %227, %229 : vector<16x128xf32>
    %231 = vector.broadcast %200 : vector<16x1xf32> to vector<16x128xf32>
    %232 = arith.mulf %165, %231 : vector<16x128xf32>
    %233 = vector.broadcast %202 : vector<16x1xf32> to vector<16x128xf32>
    %234 = arith.addf %232, %233 : vector<16x128xf32>
    %235 = vector.broadcast %200 : vector<16x1xf32> to vector<16x128xf32>
    %236 = arith.mulf %170, %235 : vector<16x128xf32>
    %237 = vector.broadcast %202 : vector<16x1xf32> to vector<16x128xf32>
    %238 = arith.addf %236, %237 : vector<16x128xf32>
    %239 = vector.extract_strided_slice %137 {offsets = [5, 0], sizes = [1, 128], strides = [1, 1]} : vector<9x128xf32> to vector<1x128xf32>
    %240 = vector.broadcast %239 : vector<1x128xf32> to vector<16x128xf32>
    %241 = arith.mulf %238, %240 : vector<16x128xf32>
    %242 = vector.broadcast %200 : vector<16x1xf32> to vector<16x128xf32>
    %243 = arith.mulf %175, %242 : vector<16x128xf32>
    %244 = vector.broadcast %202 : vector<16x1xf32> to vector<16x128xf32>
    %245 = arith.addf %243, %244 : vector<16x128xf32>
    %246 = vector.extract_strided_slice %137 {offsets = [6, 0], sizes = [1, 128], strides = [1, 1]} : vector<9x128xf32> to vector<1x128xf32>
    %247 = vector.broadcast %246 : vector<1x128xf32> to vector<16x128xf32>
    %248 = arith.mulf %245, %247 : vector<16x128xf32>
    %249 = vector.broadcast %200 : vector<16x1xf32> to vector<16x128xf32>
    %250 = arith.mulf %180, %249 : vector<16x128xf32>
    %251 = vector.broadcast %202 : vector<16x1xf32> to vector<16x128xf32>
    %252 = arith.addf %250, %251 : vector<16x128xf32>
    %253 = vector.extract_strided_slice %137 {offsets = [7, 0], sizes = [1, 128], strides = [1, 1]} : vector<9x128xf32> to vector<1x128xf32>
    %254 = vector.broadcast %253 : vector<1x128xf32> to vector<16x128xf32>
    %255 = arith.mulf %252, %254 : vector<16x128xf32>
    %256 = vector.broadcast %200 : vector<16x1xf32> to vector<16x128xf32>
    %257 = arith.mulf %185, %256 : vector<16x128xf32>
    %258 = vector.broadcast %202 : vector<16x1xf32> to vector<16x128xf32>
    %259 = arith.addf %257, %258 : vector<16x128xf32>
    %260 = vector.extract_strided_slice %137 {offsets = [8, 0], sizes = [1, 128], strides = [1, 1]} : vector<9x128xf32> to vector<1x128xf32>
    %261 = vector.broadcast %260 : vector<1x128xf32> to vector<16x128xf32>
    %262 = arith.mulf %259, %261 : vector<16x128xf32>
    %c0_34 = arith.constant 0 : index
    %c0_35 = arith.constant 0 : index
    %263 = vector.load %arg10[%c0_34, %c0_35] : memref<128x144xbf16, #tpu.memory_space<vmem>>, vector<128x144xbf16>
    %c0_36 = arith.constant 0 : index
    %c0_37 = arith.constant 0 : index
    %264 = vector.load %arg11[%c0_36, %c0_37] : memref<8x1xf32, #tpu.memory_space<vmem>>, vector<8x1xf32>
    %c0_38 = arith.constant 0 : index
    %c0_39 = arith.constant 0 : index
    %265 = vector.load %arg12[%c0_38, %c0_39] : memref<8x1xf32, #tpu.memory_space<vmem>>, vector<8x1xf32>
    %c0_40 = arith.constant 0 : index
    %c0_41 = arith.constant 0 : index
    %266 = vector.load %arg13[%c0_40, %c0_41] : memref<9x512xf32, #tpu.memory_space<vmem>>, vector<9x512xf32>
    %267 = tpu.concatenate %209, %216, %223, %230, %234, %241, %248, %255, %262 in 0 : vector<16x128xf32>, vector<16x128xf32>, vector<16x128xf32>, vector<16x128xf32>, vector<16x128xf32>, vector<16x128xf32>, vector<16x128xf32>, vector<16x128xf32>, vector<16x128xf32> -> vector<144x128xf32>
    %268 = arith.truncf %267 : vector<144x128xf32> to vector<144x128xbf16>
    %cst_42 = arith.constant dense<0.000000e+00> : vector<128x128xf32>
    %269 = tpu.matmul %263, %268, %cst_42 {dimension_numbers = #tpu.dot_dimension_numbers<[1], [0], [0], [1], [0, 0, 1, 1], [], []>} : vector<128x144xbf16>, vector<144x128xbf16>, vector<128x128xf32> -> vector<128x128xf32>
    %270 = vector.extract_strided_slice %269 {offsets = [0, 0], sizes = [8, 128], strides = [1, 1]} : vector<128x128xf32> to vector<8x128xf32>
    %271 = vector.extract_strided_slice %269 {offsets = [8, 0], sizes = [8, 128], strides = [1, 1]} : vector<128x128xf32> to vector<8x128xf32>
    %272 = vector.extract_strided_slice %269 {offsets = [32, 0], sizes = [8, 128], strides = [1, 1]} : vector<128x128xf32> to vector<8x128xf32>
    %273 = vector.extract_strided_slice %269 {offsets = [40, 0], sizes = [8, 128], strides = [1, 1]} : vector<128x128xf32> to vector<8x128xf32>
    %274 = tpu.concatenate %270, %271, %272, %273 in 1 : vector<8x128xf32>, vector<8x128xf32>, vector<8x128xf32>, vector<8x128xf32> -> vector<8x512xf32>
    %275 = vector.extract_strided_slice %269 {offsets = [8, 0], sizes = [8, 128], strides = [1, 1]} : vector<128x128xf32> to vector<8x128xf32>
    %276 = vector.extract_strided_slice %269 {offsets = [16, 0], sizes = [8, 128], strides = [1, 1]} : vector<128x128xf32> to vector<8x128xf32>
    %277 = vector.extract_strided_slice %269 {offsets = [40, 0], sizes = [8, 128], strides = [1, 1]} : vector<128x128xf32> to vector<8x128xf32>
    %278 = vector.extract_strided_slice %269 {offsets = [48, 0], sizes = [8, 128], strides = [1, 1]} : vector<128x128xf32> to vector<8x128xf32>
    %279 = tpu.concatenate %275, %276, %277, %278 in 1 : vector<8x128xf32>, vector<8x128xf32>, vector<8x128xf32>, vector<8x128xf32> -> vector<8x512xf32>
    %280 = vector.extract_strided_slice %269 {offsets = [16, 0], sizes = [8, 128], strides = [1, 1]} : vector<128x128xf32> to vector<8x128xf32>
    %281 = vector.extract_strided_slice %269 {offsets = [24, 0], sizes = [8, 128], strides = [1, 1]} : vector<128x128xf32> to vector<8x128xf32>
    %282 = vector.extract_strided_slice %269 {offsets = [48, 0], sizes = [8, 128], strides = [1, 1]} : vector<128x128xf32> to vector<8x128xf32>
    %283 = vector.extract_strided_slice %269 {offsets = [56, 0], sizes = [8, 128], strides = [1, 1]} : vector<128x128xf32> to vector<8x128xf32>
    %284 = tpu.concatenate %280, %281, %282, %283 in 1 : vector<8x128xf32>, vector<8x128xf32>, vector<8x128xf32>, vector<8x128xf32> -> vector<8x512xf32>
    %285 = vector.extract_strided_slice %269 {offsets = [32, 0], sizes = [8, 128], strides = [1, 1]} : vector<128x128xf32> to vector<8x128xf32>
    %286 = vector.extract_strided_slice %269 {offsets = [40, 0], sizes = [8, 128], strides = [1, 1]} : vector<128x128xf32> to vector<8x128xf32>
    %287 = vector.extract_strided_slice %269 {offsets = [64, 0], sizes = [8, 128], strides = [1, 1]} : vector<128x128xf32> to vector<8x128xf32>
    %288 = vector.extract_strided_slice %269 {offsets = [72, 0], sizes = [8, 128], strides = [1, 1]} : vector<128x128xf32> to vector<8x128xf32>
    %289 = tpu.concatenate %285, %286, %287, %288 in 1 : vector<8x128xf32>, vector<8x128xf32>, vector<8x128xf32>, vector<8x128xf32> -> vector<8x512xf32>
    %290 = vector.extract_strided_slice %269 {offsets = [40, 0], sizes = [8, 128], strides = [1, 1]} : vector<128x128xf32> to vector<8x128xf32>
    %291 = vector.extract_strided_slice %269 {offsets = [48, 0], sizes = [8, 128], strides = [1, 1]} : vector<128x128xf32> to vector<8x128xf32>
    %292 = vector.extract_strided_slice %269 {offsets = [72, 0], sizes = [8, 128], strides = [1, 1]} : vector<128x128xf32> to vector<8x128xf32>
    %293 = vector.extract_strided_slice %269 {offsets = [80, 0], sizes = [8, 128], strides = [1, 1]} : vector<128x128xf32> to vector<8x128xf32>
    %294 = tpu.concatenate %290, %291, %292, %293 in 1 : vector<8x128xf32>, vector<8x128xf32>, vector<8x128xf32>, vector<8x128xf32> -> vector<8x512xf32>
    %295 = vector.extract_strided_slice %269 {offsets = [48, 0], sizes = [8, 128], strides = [1, 1]} : vector<128x128xf32> to vector<8x128xf32>
    %296 = vector.extract_strided_slice %269 {offsets = [56, 0], sizes = [8, 128], strides = [1, 1]} : vector<128x128xf32> to vector<8x128xf32>
    %297 = vector.extract_strided_slice %269 {offsets = [80, 0], sizes = [8, 128], strides = [1, 1]} : vector<128x128xf32> to vector<8x128xf32>
    %298 = vector.extract_strided_slice %269 {offsets = [88, 0], sizes = [8, 128], strides = [1, 1]} : vector<128x128xf32> to vector<8x128xf32>
    %299 = tpu.concatenate %295, %296, %297, %298 in 1 : vector<8x128xf32>, vector<8x128xf32>, vector<8x128xf32>, vector<8x128xf32> -> vector<8x512xf32>
    %300 = vector.extract_strided_slice %269 {offsets = [64, 0], sizes = [8, 128], strides = [1, 1]} : vector<128x128xf32> to vector<8x128xf32>
    %301 = vector.extract_strided_slice %269 {offsets = [72, 0], sizes = [8, 128], strides = [1, 1]} : vector<128x128xf32> to vector<8x128xf32>
    %302 = vector.extract_strided_slice %269 {offsets = [96, 0], sizes = [8, 128], strides = [1, 1]} : vector<128x128xf32> to vector<8x128xf32>
    %303 = vector.extract_strided_slice %269 {offsets = [104, 0], sizes = [8, 128], strides = [1, 1]} : vector<128x128xf32> to vector<8x128xf32>
    %304 = tpu.concatenate %300, %301, %302, %303 in 1 : vector<8x128xf32>, vector<8x128xf32>, vector<8x128xf32>, vector<8x128xf32> -> vector<8x512xf32>
    %305 = vector.extract_strided_slice %269 {offsets = [72, 0], sizes = [8, 128], strides = [1, 1]} : vector<128x128xf32> to vector<8x128xf32>
    %306 = vector.extract_strided_slice %269 {offsets = [80, 0], sizes = [8, 128], strides = [1, 1]} : vector<128x128xf32> to vector<8x128xf32>
    %307 = vector.extract_strided_slice %269 {offsets = [104, 0], sizes = [8, 128], strides = [1, 1]} : vector<128x128xf32> to vector<8x128xf32>
    %308 = vector.extract_strided_slice %269 {offsets = [112, 0], sizes = [8, 128], strides = [1, 1]} : vector<128x128xf32> to vector<8x128xf32>
    %309 = tpu.concatenate %305, %306, %307, %308 in 1 : vector<8x128xf32>, vector<8x128xf32>, vector<8x128xf32>, vector<8x128xf32> -> vector<8x512xf32>
    %310 = vector.extract_strided_slice %269 {offsets = [80, 0], sizes = [8, 128], strides = [1, 1]} : vector<128x128xf32> to vector<8x128xf32>
    %311 = vector.extract_strided_slice %269 {offsets = [88, 0], sizes = [8, 128], strides = [1, 1]} : vector<128x128xf32> to vector<8x128xf32>
    %312 = vector.extract_strided_slice %269 {offsets = [112, 0], sizes = [8, 128], strides = [1, 1]} : vector<128x128xf32> to vector<8x128xf32>
    %313 = vector.extract_strided_slice %269 {offsets = [120, 0], sizes = [8, 128], strides = [1, 1]} : vector<128x128xf32> to vector<8x128xf32>
    %314 = tpu.concatenate %310, %311, %312, %313 in 1 : vector<8x128xf32>, vector<8x128xf32>, vector<8x128xf32>, vector<8x128xf32> -> vector<8x512xf32>
    %cst_43 = arith.constant dense<0.000000e+00> : vector<8xf32>
    %315 = vector.multi_reduction <add>, %294, %cst_43 [1] : vector<8x512xf32> to vector<8xf32>
    %316 = vector.shape_cast %315 : vector<8xf32> to vector<8x1xf32>
    %cst_44 = arith.constant 0.001953125 : f32
    %317 = vector.broadcast %cst_44 : f32 to vector<8x1xf32>
    %318 = arith.mulf %316, %317 : vector<8x1xf32>
    %319 = arith.mulf %294, %294 : vector<8x512xf32>
    %cst_45 = arith.constant dense<0.000000e+00> : vector<8xf32>
    %320 = vector.multi_reduction <add>, %319, %cst_45 [1] : vector<8x512xf32> to vector<8xf32>
    %321 = vector.shape_cast %320 : vector<8xf32> to vector<8x1xf32>
    %cst_46 = arith.constant 0.001953125 : f32
    %322 = vector.broadcast %cst_46 : f32 to vector<8x1xf32>
    %323 = arith.mulf %321, %322 : vector<8x1xf32>
    %324 = arith.mulf %318, %318 : vector<8x1xf32>
    %325 = arith.subf %323, %324 : vector<8x1xf32>
    %cst_47 = arith.constant 9.99999974E-6 : f32
    %326 = vector.broadcast %cst_47 : f32 to vector<8x1xf32>
    %327 = arith.addf %325, %326 : vector<8x1xf32>
    %328 = math.rsqrt %327 : vector<8x1xf32>
    %329 = arith.mulf %264, %328 : vector<8x1xf32>
    %330 = arith.mulf %318, %329 : vector<8x1xf32>
    %331 = arith.subf %265, %330 : vector<8x1xf32>
    %332 = vector.broadcast %329 : vector<8x1xf32> to vector<8x512xf32>
    %333 = arith.mulf %274, %332 : vector<8x512xf32>
    %334 = vector.broadcast %331 : vector<8x1xf32> to vector<8x512xf32>
    %335 = arith.addf %333, %334 : vector<8x512xf32>
    %336 = vector.extract_strided_slice %266 {offsets = [0, 0], sizes = [1, 512], strides = [1, 1]} : vector<9x512xf32> to vector<1x512xf32>
    %337 = vector.broadcast %336 : vector<1x512xf32> to vector<8x512xf32>
    %338 = arith.mulf %335, %337 : vector<8x512xf32>
    %339 = vector.broadcast %329 : vector<8x1xf32> to vector<8x512xf32>
    %340 = arith.mulf %279, %339 : vector<8x512xf32>
    %341 = vector.broadcast %331 : vector<8x1xf32> to vector<8x512xf32>
    %342 = arith.addf %340, %341 : vector<8x512xf32>
    %343 = vector.extract_strided_slice %266 {offsets = [1, 0], sizes = [1, 512], strides = [1, 1]} : vector<9x512xf32> to vector<1x512xf32>
    %344 = vector.broadcast %343 : vector<1x512xf32> to vector<8x512xf32>
    %345 = arith.mulf %342, %344 : vector<8x512xf32>
    %346 = vector.broadcast %329 : vector<8x1xf32> to vector<8x512xf32>
    %347 = arith.mulf %284, %346 : vector<8x512xf32>
    %348 = vector.broadcast %331 : vector<8x1xf32> to vector<8x512xf32>
    %349 = arith.addf %347, %348 : vector<8x512xf32>
    %350 = vector.extract_strided_slice %266 {offsets = [2, 0], sizes = [1, 512], strides = [1, 1]} : vector<9x512xf32> to vector<1x512xf32>
    %351 = vector.broadcast %350 : vector<1x512xf32> to vector<8x512xf32>
    %352 = arith.mulf %349, %351 : vector<8x512xf32>
    %353 = vector.broadcast %329 : vector<8x1xf32> to vector<8x512xf32>
    %354 = arith.mulf %289, %353 : vector<8x512xf32>
    %355 = vector.broadcast %331 : vector<8x1xf32> to vector<8x512xf32>
    %356 = arith.addf %354, %355 : vector<8x512xf32>
    %357 = vector.extract_strided_slice %266 {offsets = [3, 0], sizes = [1, 512], strides = [1, 1]} : vector<9x512xf32> to vector<1x512xf32>
    %358 = vector.broadcast %357 : vector<1x512xf32> to vector<8x512xf32>
    %359 = arith.mulf %356, %358 : vector<8x512xf32>
    %360 = vector.broadcast %329 : vector<8x1xf32> to vector<8x512xf32>
    %361 = arith.mulf %294, %360 : vector<8x512xf32>
    %362 = vector.broadcast %331 : vector<8x1xf32> to vector<8x512xf32>
    %363 = arith.addf %361, %362 : vector<8x512xf32>
    %364 = vector.broadcast %329 : vector<8x1xf32> to vector<8x512xf32>
    %365 = arith.mulf %299, %364 : vector<8x512xf32>
    %366 = vector.broadcast %331 : vector<8x1xf32> to vector<8x512xf32>
    %367 = arith.addf %365, %366 : vector<8x512xf32>
    %368 = vector.extract_strided_slice %266 {offsets = [5, 0], sizes = [1, 512], strides = [1, 1]} : vector<9x512xf32> to vector<1x512xf32>
    %369 = vector.broadcast %368 : vector<1x512xf32> to vector<8x512xf32>
    %370 = arith.mulf %367, %369 : vector<8x512xf32>
    %371 = vector.broadcast %329 : vector<8x1xf32> to vector<8x512xf32>
    %372 = arith.mulf %304, %371 : vector<8x512xf32>
    %373 = vector.broadcast %331 : vector<8x1xf32> to vector<8x512xf32>
    %374 = arith.addf %372, %373 : vector<8x512xf32>
    %375 = vector.extract_strided_slice %266 {offsets = [6, 0], sizes = [1, 512], strides = [1, 1]} : vector<9x512xf32> to vector<1x512xf32>
    %376 = vector.broadcast %375 : vector<1x512xf32> to vector<8x512xf32>
    %377 = arith.mulf %374, %376 : vector<8x512xf32>
    %378 = vector.broadcast %329 : vector<8x1xf32> to vector<8x512xf32>
    %379 = arith.mulf %309, %378 : vector<8x512xf32>
    %380 = vector.broadcast %331 : vector<8x1xf32> to vector<8x512xf32>
    %381 = arith.addf %379, %380 : vector<8x512xf32>
    %382 = vector.extract_strided_slice %266 {offsets = [7, 0], sizes = [1, 512], strides = [1, 1]} : vector<9x512xf32> to vector<1x512xf32>
    %383 = vector.broadcast %382 : vector<1x512xf32> to vector<8x512xf32>
    %384 = arith.mulf %381, %383 : vector<8x512xf32>
    %385 = vector.broadcast %329 : vector<8x1xf32> to vector<8x512xf32>
    %386 = arith.mulf %314, %385 : vector<8x512xf32>
    %387 = vector.broadcast %331 : vector<8x1xf32> to vector<8x512xf32>
    %388 = arith.addf %386, %387 : vector<8x512xf32>
    %389 = vector.extract_strided_slice %266 {offsets = [8, 0], sizes = [1, 512], strides = [1, 1]} : vector<9x512xf32> to vector<1x512xf32>
    %390 = vector.broadcast %389 : vector<1x512xf32> to vector<8x512xf32>
    %391 = arith.mulf %388, %390 : vector<8x512xf32>
    %c0_48 = arith.constant 0 : index
    %c0_49 = arith.constant 0 : index
    %392 = vector.load %arg14[%c0_48, %c0_49] : memref<128x72xbf16, #tpu.memory_space<vmem>>, vector<128x72xbf16>
    %c0_50 = arith.constant 0 : index
    %c0_51 = arith.constant 0 : index
    %393 = vector.load %arg15[%c0_50, %c0_51] : memref<8x1xf32, #tpu.memory_space<vmem>>, vector<8x1xf32>
    %c0_52 = arith.constant 0 : index
    %c0_53 = arith.constant 0 : index
    %394 = vector.load %arg16[%c0_52, %c0_53] : memref<8x1xf32, #tpu.memory_space<vmem>>, vector<8x1xf32>
    %c0_54 = arith.constant 0 : index
    %c0_55 = arith.constant 0 : index
    %395 = vector.load %arg17[%c0_54, %c0_55] : memref<9x2048xf32, #tpu.memory_space<vmem>>, vector<9x2048xf32>
    %396 = tpu.concatenate %338, %345, %352, %359, %363, %370, %377, %384, %391 in 0 : vector<8x512xf32>, vector<8x512xf32>, vector<8x512xf32>, vector<8x512xf32>, vector<8x512xf32>, vector<8x512xf32>, vector<8x512xf32>, vector<8x512xf32>, vector<8x512xf32> -> vector<72x512xf32>
    %397 = arith.truncf %396 : vector<72x512xf32> to vector<72x512xbf16>
    %cst_56 = arith.constant dense<0.000000e+00> : vector<128x512xf32>
    %398 = tpu.matmul %392, %397, %cst_56 {dimension_numbers = #tpu.dot_dimension_numbers<[1], [0], [0], [1], [0, 0, 1, 1], [], []>} : vector<128x72xbf16>, vector<72x512xbf16>, vector<128x512xf32> -> vector<128x512xf32>
    %399 = vector.extract_strided_slice %398 {offsets = [0, 0], sizes = [8, 512], strides = [1, 1]} : vector<128x512xf32> to vector<8x512xf32>
    %400 = vector.extract_strided_slice %398 {offsets = [8, 0], sizes = [8, 512], strides = [1, 1]} : vector<128x512xf32> to vector<8x512xf32>
    %401 = vector.extract_strided_slice %398 {offsets = [32, 0], sizes = [8, 512], strides = [1, 1]} : vector<128x512xf32> to vector<8x512xf32>
    %402 = vector.extract_strided_slice %398 {offsets = [40, 0], sizes = [8, 512], strides = [1, 1]} : vector<128x512xf32> to vector<8x512xf32>
    %403 = tpu.concatenate %399, %400, %401, %402 in 1 : vector<8x512xf32>, vector<8x512xf32>, vector<8x512xf32>, vector<8x512xf32> -> vector<8x2048xf32>
    %404 = vector.extract_strided_slice %398 {offsets = [8, 0], sizes = [8, 512], strides = [1, 1]} : vector<128x512xf32> to vector<8x512xf32>
    %405 = vector.extract_strided_slice %398 {offsets = [16, 0], sizes = [8, 512], strides = [1, 1]} : vector<128x512xf32> to vector<8x512xf32>
    %406 = vector.extract_strided_slice %398 {offsets = [40, 0], sizes = [8, 512], strides = [1, 1]} : vector<128x512xf32> to vector<8x512xf32>
    %407 = vector.extract_strided_slice %398 {offsets = [48, 0], sizes = [8, 512], strides = [1, 1]} : vector<128x512xf32> to vector<8x512xf32>
    %408 = tpu.concatenate %404, %405, %406, %407 in 1 : vector<8x512xf32>, vector<8x512xf32>, vector<8x512xf32>, vector<8x512xf32> -> vector<8x2048xf32>
    %409 = vector.extract_strided_slice %398 {offsets = [16, 0], sizes = [8, 512], strides = [1, 1]} : vector<128x512xf32> to vector<8x512xf32>
    %410 = vector.extract_strided_slice %398 {offsets = [24, 0], sizes = [8, 512], strides = [1, 1]} : vector<128x512xf32> to vector<8x512xf32>
    %411 = vector.extract_strided_slice %398 {offsets = [48, 0], sizes = [8, 512], strides = [1, 1]} : vector<128x512xf32> to vector<8x512xf32>
    %412 = vector.extract_strided_slice %398 {offsets = [56, 0], sizes = [8, 512], strides = [1, 1]} : vector<128x512xf32> to vector<8x512xf32>
    %413 = tpu.concatenate %409, %410, %411, %412 in 1 : vector<8x512xf32>, vector<8x512xf32>, vector<8x512xf32>, vector<8x512xf32> -> vector<8x2048xf32>
    %414 = vector.extract_strided_slice %398 {offsets = [32, 0], sizes = [8, 512], strides = [1, 1]} : vector<128x512xf32> to vector<8x512xf32>
    %415 = vector.extract_strided_slice %398 {offsets = [40, 0], sizes = [8, 512], strides = [1, 1]} : vector<128x512xf32> to vector<8x512xf32>
    %416 = vector.extract_strided_slice %398 {offsets = [64, 0], sizes = [8, 512], strides = [1, 1]} : vector<128x512xf32> to vector<8x512xf32>
    %417 = vector.extract_strided_slice %398 {offsets = [72, 0], sizes = [8, 512], strides = [1, 1]} : vector<128x512xf32> to vector<8x512xf32>
    %418 = tpu.concatenate %414, %415, %416, %417 in 1 : vector<8x512xf32>, vector<8x512xf32>, vector<8x512xf32>, vector<8x512xf32> -> vector<8x2048xf32>
    %419 = vector.extract_strided_slice %398 {offsets = [40, 0], sizes = [8, 512], strides = [1, 1]} : vector<128x512xf32> to vector<8x512xf32>
    %420 = vector.extract_strided_slice %398 {offsets = [48, 0], sizes = [8, 512], strides = [1, 1]} : vector<128x512xf32> to vector<8x512xf32>
    %421 = vector.extract_strided_slice %398 {offsets = [72, 0], sizes = [8, 512], strides = [1, 1]} : vector<128x512xf32> to vector<8x512xf32>
    %422 = vector.extract_strided_slice %398 {offsets = [80, 0], sizes = [8, 512], strides = [1, 1]} : vector<128x512xf32> to vector<8x512xf32>
    %423 = tpu.concatenate %419, %420, %421, %422 in 1 : vector<8x512xf32>, vector<8x512xf32>, vector<8x512xf32>, vector<8x512xf32> -> vector<8x2048xf32>
    %424 = vector.extract_strided_slice %398 {offsets = [48, 0], sizes = [8, 512], strides = [1, 1]} : vector<128x512xf32> to vector<8x512xf32>
    %425 = vector.extract_strided_slice %398 {offsets = [56, 0], sizes = [8, 512], strides = [1, 1]} : vector<128x512xf32> to vector<8x512xf32>
    %426 = vector.extract_strided_slice %398 {offsets = [80, 0], sizes = [8, 512], strides = [1, 1]} : vector<128x512xf32> to vector<8x512xf32>
    %427 = vector.extract_strided_slice %398 {offsets = [88, 0], sizes = [8, 512], strides = [1, 1]} : vector<128x512xf32> to vector<8x512xf32>
    %428 = tpu.concatenate %424, %425, %426, %427 in 1 : vector<8x512xf32>, vector<8x512xf32>, vector<8x512xf32>, vector<8x512xf32> -> vector<8x2048xf32>
    %429 = vector.extract_strided_slice %398 {offsets = [64, 0], sizes = [8, 512], strides = [1, 1]} : vector<128x512xf32> to vector<8x512xf32>
    %430 = vector.extract_strided_slice %398 {offsets = [72, 0], sizes = [8, 512], strides = [1, 1]} : vector<128x512xf32> to vector<8x512xf32>
    %431 = vector.extract_strided_slice %398 {offsets = [96, 0], sizes = [8, 512], strides = [1, 1]} : vector<128x512xf32> to vector<8x512xf32>
    %432 = vector.extract_strided_slice %398 {offsets = [104, 0], sizes = [8, 512], strides = [1, 1]} : vector<128x512xf32> to vector<8x512xf32>
    %433 = tpu.concatenate %429, %430, %431, %432 in 1 : vector<8x512xf32>, vector<8x512xf32>, vector<8x512xf32>, vector<8x512xf32> -> vector<8x2048xf32>
    %434 = vector.extract_strided_slice %398 {offsets = [72, 0], sizes = [8, 512], strides = [1, 1]} : vector<128x512xf32> to vector<8x512xf32>
    %435 = vector.extract_strided_slice %398 {offsets = [80, 0], sizes = [8, 512], strides = [1, 1]} : vector<128x512xf32> to vector<8x512xf32>
    %436 = vector.extract_strided_slice %398 {offsets = [104, 0], sizes = [8, 512], strides = [1, 1]} : vector<128x512xf32> to vector<8x512xf32>
    %437 = vector.extract_strided_slice %398 {offsets = [112, 0], sizes = [8, 512], strides = [1, 1]} : vector<128x512xf32> to vector<8x512xf32>
    %438 = tpu.concatenate %434, %435, %436, %437 in 1 : vector<8x512xf32>, vector<8x512xf32>, vector<8x512xf32>, vector<8x512xf32> -> vector<8x2048xf32>
    %439 = vector.extract_strided_slice %398 {offsets = [80, 0], sizes = [8, 512], strides = [1, 1]} : vector<128x512xf32> to vector<8x512xf32>
    %440 = vector.extract_strided_slice %398 {offsets = [88, 0], sizes = [8, 512], strides = [1, 1]} : vector<128x512xf32> to vector<8x512xf32>
    %441 = vector.extract_strided_slice %398 {offsets = [112, 0], sizes = [8, 512], strides = [1, 1]} : vector<128x512xf32> to vector<8x512xf32>
    %442 = vector.extract_strided_slice %398 {offsets = [120, 0], sizes = [8, 512], strides = [1, 1]} : vector<128x512xf32> to vector<8x512xf32>
    %443 = tpu.concatenate %439, %440, %441, %442 in 1 : vector<8x512xf32>, vector<8x512xf32>, vector<8x512xf32>, vector<8x512xf32> -> vector<8x2048xf32>
    %cst_57 = arith.constant dense<0.000000e+00> : vector<8xf32>
    %444 = vector.multi_reduction <add>, %423, %cst_57 [1] : vector<8x2048xf32> to vector<8xf32>
    %445 = vector.shape_cast %444 : vector<8xf32> to vector<8x1xf32>
    %cst_58 = arith.constant 4.8828125E-4 : f32
    %446 = vector.broadcast %cst_58 : f32 to vector<8x1xf32>
    %447 = arith.mulf %445, %446 : vector<8x1xf32>
    %448 = arith.mulf %423, %423 : vector<8x2048xf32>
    %cst_59 = arith.constant dense<0.000000e+00> : vector<8xf32>
    %449 = vector.multi_reduction <add>, %448, %cst_59 [1] : vector<8x2048xf32> to vector<8xf32>
    %450 = vector.shape_cast %449 : vector<8xf32> to vector<8x1xf32>
    %cst_60 = arith.constant 4.8828125E-4 : f32
    %451 = vector.broadcast %cst_60 : f32 to vector<8x1xf32>
    %452 = arith.mulf %450, %451 : vector<8x1xf32>
    %453 = arith.mulf %447, %447 : vector<8x1xf32>
    %454 = arith.subf %452, %453 : vector<8x1xf32>
    %cst_61 = arith.constant 9.99999974E-6 : f32
    %455 = vector.broadcast %cst_61 : f32 to vector<8x1xf32>
    %456 = arith.addf %454, %455 : vector<8x1xf32>
    %457 = math.rsqrt %456 : vector<8x1xf32>
    %458 = arith.mulf %393, %457 : vector<8x1xf32>
    %459 = arith.mulf %447, %458 : vector<8x1xf32>
    %460 = arith.subf %394, %459 : vector<8x1xf32>
    %461 = vector.broadcast %458 : vector<8x1xf32> to vector<8x2048xf32>
    %462 = arith.mulf %403, %461 : vector<8x2048xf32>
    %463 = vector.broadcast %460 : vector<8x1xf32> to vector<8x2048xf32>
    %464 = arith.addf %462, %463 : vector<8x2048xf32>
    %cst_62 = arith.constant 0.000000e+00 : f32
    %465 = vector.broadcast %cst_62 : f32 to vector<8x2048xf32>
    %466 = arith.cmpf oge, %464, %465 : vector<8x2048xf32>
    %cst_63 = arith.constant 0.00999999977 : f32
    %467 = vector.broadcast %cst_63 : f32 to vector<8x2048xf32>
    %468 = arith.mulf %467, %464 : vector<8x2048xf32>
    %469 = arith.select %466, %464, %468 : vector<8x2048xi1>, vector<8x2048xf32>
    %470 = vector.extract_strided_slice %395 {offsets = [0, 0], sizes = [1, 2048], strides = [1, 1]} : vector<9x2048xf32> to vector<1x2048xf32>
    %471 = vector.broadcast %470 : vector<1x2048xf32> to vector<8x2048xf32>
    %472 = arith.mulf %469, %471 : vector<8x2048xf32>
    %473 = vector.broadcast %458 : vector<8x1xf32> to vector<8x2048xf32>
    %474 = arith.mulf %408, %473 : vector<8x2048xf32>
    %475 = vector.broadcast %460 : vector<8x1xf32> to vector<8x2048xf32>
    %476 = arith.addf %474, %475 : vector<8x2048xf32>
    %cst_64 = arith.constant 0.000000e+00 : f32
    %477 = vector.broadcast %cst_64 : f32 to vector<8x2048xf32>
    %478 = arith.cmpf oge, %476, %477 : vector<8x2048xf32>
    %cst_65 = arith.constant 0.00999999977 : f32
    %479 = vector.broadcast %cst_65 : f32 to vector<8x2048xf32>
    %480 = arith.mulf %479, %476 : vector<8x2048xf32>
    %481 = arith.select %478, %476, %480 : vector<8x2048xi1>, vector<8x2048xf32>
    %482 = vector.extract_strided_slice %395 {offsets = [1, 0], sizes = [1, 2048], strides = [1, 1]} : vector<9x2048xf32> to vector<1x2048xf32>
    %483 = vector.broadcast %482 : vector<1x2048xf32> to vector<8x2048xf32>
    %484 = arith.mulf %481, %483 : vector<8x2048xf32>
    %485 = vector.broadcast %458 : vector<8x1xf32> to vector<8x2048xf32>
    %486 = arith.mulf %413, %485 : vector<8x2048xf32>
    %487 = vector.broadcast %460 : vector<8x1xf32> to vector<8x2048xf32>
    %488 = arith.addf %486, %487 : vector<8x2048xf32>
    %cst_66 = arith.constant 0.000000e+00 : f32
    %489 = vector.broadcast %cst_66 : f32 to vector<8x2048xf32>
    %490 = arith.cmpf oge, %488, %489 : vector<8x2048xf32>
    %cst_67 = arith.constant 0.00999999977 : f32
    %491 = vector.broadcast %cst_67 : f32 to vector<8x2048xf32>
    %492 = arith.mulf %491, %488 : vector<8x2048xf32>
    %493 = arith.select %490, %488, %492 : vector<8x2048xi1>, vector<8x2048xf32>
    %494 = vector.extract_strided_slice %395 {offsets = [2, 0], sizes = [1, 2048], strides = [1, 1]} : vector<9x2048xf32> to vector<1x2048xf32>
    %495 = vector.broadcast %494 : vector<1x2048xf32> to vector<8x2048xf32>
    %496 = arith.mulf %493, %495 : vector<8x2048xf32>
    %497 = vector.broadcast %458 : vector<8x1xf32> to vector<8x2048xf32>
    %498 = arith.mulf %418, %497 : vector<8x2048xf32>
    %499 = vector.broadcast %460 : vector<8x1xf32> to vector<8x2048xf32>
    %500 = arith.addf %498, %499 : vector<8x2048xf32>
    %cst_68 = arith.constant 0.000000e+00 : f32
    %501 = vector.broadcast %cst_68 : f32 to vector<8x2048xf32>
    %502 = arith.cmpf oge, %500, %501 : vector<8x2048xf32>
    %cst_69 = arith.constant 0.00999999977 : f32
    %503 = vector.broadcast %cst_69 : f32 to vector<8x2048xf32>
    %504 = arith.mulf %503, %500 : vector<8x2048xf32>
    %505 = arith.select %502, %500, %504 : vector<8x2048xi1>, vector<8x2048xf32>
    %506 = vector.extract_strided_slice %395 {offsets = [3, 0], sizes = [1, 2048], strides = [1, 1]} : vector<9x2048xf32> to vector<1x2048xf32>
    %507 = vector.broadcast %506 : vector<1x2048xf32> to vector<8x2048xf32>
    %508 = arith.mulf %505, %507 : vector<8x2048xf32>
    %509 = vector.broadcast %458 : vector<8x1xf32> to vector<8x2048xf32>
    %510 = arith.mulf %423, %509 : vector<8x2048xf32>
    %511 = vector.broadcast %460 : vector<8x1xf32> to vector<8x2048xf32>
    %512 = arith.addf %510, %511 : vector<8x2048xf32>
    %cst_70 = arith.constant 0.000000e+00 : f32
    %513 = vector.broadcast %cst_70 : f32 to vector<8x2048xf32>
    %514 = arith.cmpf oge, %512, %513 : vector<8x2048xf32>
    %cst_71 = arith.constant 0.00999999977 : f32
    %515 = vector.broadcast %cst_71 : f32 to vector<8x2048xf32>
    %516 = arith.mulf %515, %512 : vector<8x2048xf32>
    %517 = arith.select %514, %512, %516 : vector<8x2048xi1>, vector<8x2048xf32>
    %518 = vector.broadcast %458 : vector<8x1xf32> to vector<8x2048xf32>
    %519 = arith.mulf %428, %518 : vector<8x2048xf32>
    %520 = vector.broadcast %460 : vector<8x1xf32> to vector<8x2048xf32>
    %521 = arith.addf %519, %520 : vector<8x2048xf32>
    %cst_72 = arith.constant 0.000000e+00 : f32
    %522 = vector.broadcast %cst_72 : f32 to vector<8x2048xf32>
    %523 = arith.cmpf oge, %521, %522 : vector<8x2048xf32>
    %cst_73 = arith.constant 0.00999999977 : f32
    %524 = vector.broadcast %cst_73 : f32 to vector<8x2048xf32>
    %525 = arith.mulf %524, %521 : vector<8x2048xf32>
    %526 = arith.select %523, %521, %525 : vector<8x2048xi1>, vector<8x2048xf32>
    %527 = vector.extract_strided_slice %395 {offsets = [5, 0], sizes = [1, 2048], strides = [1, 1]} : vector<9x2048xf32> to vector<1x2048xf32>
    %528 = vector.broadcast %527 : vector<1x2048xf32> to vector<8x2048xf32>
    %529 = arith.mulf %526, %528 : vector<8x2048xf32>
    %530 = vector.broadcast %458 : vector<8x1xf32> to vector<8x2048xf32>
    %531 = arith.mulf %433, %530 : vector<8x2048xf32>
    %532 = vector.broadcast %460 : vector<8x1xf32> to vector<8x2048xf32>
    %533 = arith.addf %531, %532 : vector<8x2048xf32>
    %cst_74 = arith.constant 0.000000e+00 : f32
    %534 = vector.broadcast %cst_74 : f32 to vector<8x2048xf32>
    %535 = arith.cmpf oge, %533, %534 : vector<8x2048xf32>
    %cst_75 = arith.constant 0.00999999977 : f32
    %536 = vector.broadcast %cst_75 : f32 to vector<8x2048xf32>
    %537 = arith.mulf %536, %533 : vector<8x2048xf32>
    %538 = arith.select %535, %533, %537 : vector<8x2048xi1>, vector<8x2048xf32>
    %539 = vector.extract_strided_slice %395 {offsets = [6, 0], sizes = [1, 2048], strides = [1, 1]} : vector<9x2048xf32> to vector<1x2048xf32>
    %540 = vector.broadcast %539 : vector<1x2048xf32> to vector<8x2048xf32>
    %541 = arith.mulf %538, %540 : vector<8x2048xf32>
    %542 = vector.broadcast %458 : vector<8x1xf32> to vector<8x2048xf32>
    %543 = arith.mulf %438, %542 : vector<8x2048xf32>
    %544 = vector.broadcast %460 : vector<8x1xf32> to vector<8x2048xf32>
    %545 = arith.addf %543, %544 : vector<8x2048xf32>
    %cst_76 = arith.constant 0.000000e+00 : f32
    %546 = vector.broadcast %cst_76 : f32 to vector<8x2048xf32>
    %547 = arith.cmpf oge, %545, %546 : vector<8x2048xf32>
    %cst_77 = arith.constant 0.00999999977 : f32
    %548 = vector.broadcast %cst_77 : f32 to vector<8x2048xf32>
    %549 = arith.mulf %548, %545 : vector<8x2048xf32>
    %550 = arith.select %547, %545, %549 : vector<8x2048xi1>, vector<8x2048xf32>
    %551 = vector.extract_strided_slice %395 {offsets = [7, 0], sizes = [1, 2048], strides = [1, 1]} : vector<9x2048xf32> to vector<1x2048xf32>
    %552 = vector.broadcast %551 : vector<1x2048xf32> to vector<8x2048xf32>
    %553 = arith.mulf %550, %552 : vector<8x2048xf32>
    %554 = vector.broadcast %458 : vector<8x1xf32> to vector<8x2048xf32>
    %555 = arith.mulf %443, %554 : vector<8x2048xf32>
    %556 = vector.broadcast %460 : vector<8x1xf32> to vector<8x2048xf32>
    %557 = arith.addf %555, %556 : vector<8x2048xf32>
    %cst_78 = arith.constant 0.000000e+00 : f32
    %558 = vector.broadcast %cst_78 : f32 to vector<8x2048xf32>
    %559 = arith.cmpf oge, %557, %558 : vector<8x2048xf32>
    %cst_79 = arith.constant 0.00999999977 : f32
    %560 = vector.broadcast %cst_79 : f32 to vector<8x2048xf32>
    %561 = arith.mulf %560, %557 : vector<8x2048xf32>
    %562 = arith.select %559, %557, %561 : vector<8x2048xi1>, vector<8x2048xf32>
    %563 = vector.extract_strided_slice %395 {offsets = [8, 0], sizes = [1, 2048], strides = [1, 1]} : vector<9x2048xf32> to vector<1x2048xf32>
    %564 = vector.broadcast %563 : vector<1x2048xf32> to vector<8x2048xf32>
    %565 = arith.mulf %562, %564 : vector<8x2048xf32>
    %566 = tpu.concatenate %472, %484, %496, %508, %517, %529, %541, %553, %565 in 0 : vector<8x2048xf32>, vector<8x2048xf32>, vector<8x2048xf32>, vector<8x2048xf32>, vector<8x2048xf32>, vector<8x2048xf32>, vector<8x2048xf32>, vector<8x2048xf32>, vector<8x2048xf32> -> vector<72x2048xf32>
    %567 = arith.truncf %566 : vector<72x2048xf32> to vector<72x2048xbf16>
    %c0_80 = arith.constant 0 : index
    %c0_81 = arith.constant 0 : index
    %568 = vector.load %arg18[%c0_80, %c0_81] : memref<3x72xbf16, #tpu.memory_space<vmem>>, vector<3x72xbf16>
    %cst_82 = arith.constant dense<0.000000e+00> : vector<3x2048xf32>
    %569 = tpu.matmul %568, %567, %cst_82 {dimension_numbers = #tpu.dot_dimension_numbers<[1], [0], [0], [1], [0, 0, 1, 1], [], []>} : vector<3x72xbf16>, vector<72x2048xbf16>, vector<3x2048xf32> -> vector<3x2048xf32>
    %c0_83 = arith.constant 0 : index
    %c0_84 = arith.constant 0 : index
    %570 = vector.load %arg19[%c0_83, %c0_84] : memref<3x1xf32, #tpu.memory_space<vmem>>, vector<3x1xf32>
    %571 = vector.broadcast %570 : vector<3x1xf32> to vector<3x2048xf32>
    %572 = arith.addf %569, %571 : vector<3x2048xf32>
    %573 = math.tanh %572 : vector<3x2048xf32>
    %c0_85 = arith.constant 0 : index
    %c0_86 = arith.constant 0 : index
    %574 = vector.load %arg20[%c0_85, %c0_86] : memref<3x2048xf32, #tpu.memory_space<vmem>>, vector<3x2048xf32>
    tpu.vector_store %arg20[%c0_85, %c0_86], %573 {strides = array<i32>} : memref<3x2048xf32, #tpu.memory_space<vmem>>, vector<3x2048xf32>,
    return
  }
}

</mosaic_0001>

<bundles_post_ra>
// kernel: decoder_forward.1
= control target key start
LH: loop header
LB: loop body
LE: loop exit
PB: predicated region body
PF: predicated region fallthrough
CT: control target
= control target key end

     0   :  { %vm113_vm0 = vcmask 1043456   ;;  %v7331_v2 = vmov 0   ;;  %vm109_vm1 = vcmask 64512   ;;  %v79_v18 = vlaneseq  ;;  %s4651_s24 = smov 96   ;;  %s4653_s25 = smov 64   ;;  %s7309_s3 = inlined_call_operand.vmem [shape: bf16[8,512], index: 3, kind: input, shape index: {}]   ;;  %s7310_s1 = inlined_call_operand.vmem [shape: f32[2,8], index: 1, kind: input, shape index: {}]   ;;  %s7311_s2 = inlined_call_operand.vmem [shape: f32[2,8], index: 2, kind: input, shape index: {}]   ;;  %s7312_s0 = inlined_call_operand.vmem [shape: f32[2,8], index: 0, kind: input, shape index: {}]   ;;  %s7313_s4 = inlined_call_operand.vmem [shape: f32[1,512], index: 4, kind: input, shape index: {}]   ;;  %s7314_s6 = inlined_call_operand.vmem [shape: bf16[256,288], index: 6, kind: input, shape index: {}]   ;;  %s7315_s5 = inlined_call_operand.vmem [shape: f32[9,32], index: 5, kind: input, shape index: {}]   ;;  %s7316_s7 = inlined_call_operand.vmem [shape: f32[16,1], index: 7, kind: input, shape index: {}]   ;;  %s7317_s8 = inlined_call_operand.vmem [shape: f32[16,1], index: 8, kind: input, shape index: {}]   ;;  %s7318_s10 = inlined_call_operand.vmem [shape: bf16[128,144], index: 10, kind: input, shape index: {}]   ;;  %s7319_s9 = inlined_call_operand.vmem [shape: f32[9,128], index: 9, kind: input, shape index: {}]   ;;  %s7320_s11 = inlined_call_operand.vmem [shape: f32[8,1], index: 11, kind: input, shape index: {}]   ;;  %s7321_s12 = inlined_call_operand.vmem [shape: f32[8,1], index: 12, kind: input, shape index: {}]   ;;  %s7322_s14 = inlined_call_operand.vmem [shape: bf16[128,72], index: 14, kind: input, shape index: {}]   ;;  %s7323_s13 = inlined_call_operand.vmem [shape: f32[9,512], index: 13, kind: input, shape index: {}]   ;;  %s7324_s15 = inlined_call_operand.vmem [shape: f32[8,1], index: 15, kind: input, shape index: {}]   ;;  %s7325_s16 = inlined_call_operand.vmem [shape: f32[8,1], index: 16, kind: input, shape index: {}]   ;;  %s7326_s19 = inlined_call_operand.vmem [shape: f32[3,1], index: 19, kind: input, shape index: {}]   ;;  %s7327_s17 = inlined_call_operand.vmem [shape: f32[9,2048], index: 17, kind: input, shape index: {}]   ;;  %s7328_s18 = inlined_call_operand.vmem [shape: bf16[3,72], index: 18, kind: input, shape index: {}]   ;;  %s7329_s20 = inlined_call_operand.vmem [shape: f32[3,2048], index: 20, kind: output, shape index: {}]  }
   0x1   :  { %7357 = sst [smem:[#allocation44_spill]] %s7309_s3  ;;  %158 = vmatprep.mubr.bf16.mxu0 %v7331_v2  ;;  %4503 = vset.pattern.permute.xlu1 %v7331_v2  ;;  %s4656_s27 = smov 16   ;;  %vm266_vm2 = vcmask 1040384   ;;  %vm268_vm3 = vcmask 1041408   ;;  %vm270_vm4 = vcmask 1042432   ;;  %vm273_vm5 = vcmask 1044480  }
   0x2   :  { %7358 = sst [smem:[#allocation45_spill]] %s7310_s1  ;;  %s7362_s23 = sld [smem:[#allocation44_spill]]  ;;  %4504 = vset.pattern.permute.xlu0 %v7331_v2  ;;  %v4793_v19 = vshrl.u32 %v79_v18, 7  ;;  %vm275_vm6 = vcmask 1045504   ;;  %vm277_vm7 = vcmask 1046528   ;;  %vm490_vm8 = vcmask 130048  }
   0x3   :  { %7359 = sst [smem:[#allocation46_spill]] %s7311_s2  ;;  %s7363_s26 = sld [smem:[#allocation45_spill]]  ;;  %vm1029_vm9 = vcmask 261120   ;;  %vm513_vm10 = vcmask 39936   ;;  %vm613_vm11 = vcmask 252928   ;;  %vm538_vm12 = vcmask 31744  }
   0x4   :  { %7360 = sst [smem:[#allocation47_spill]] %s7312_s0  ;;  %v4796_v20 = vsub.s32 0, %v4793_v19  ;;  %v4802_v22 = vsub.s32 1, %v4793_v19  ;;  %s4652_s2 = smov 80   ;;  %v4834_v45 = vsub.s32 2, %v4793_v19  ;;  %v4839_v47 = vsub.s32 3, %v4793_v19 }
   0x5   :  { %7361 = sst [smem:[#allocation48_spill]] %s7313_s4  ;;  %s7364_s4 = sld [smem:[#allocation46_spill]]  ;;  %vm638_vm13 = vcmask 236544   ;;  %vm563_vm14 = vcmask 23552   ;;  %vm663_vm15 = vcmask 228352  }
   0x6   :  { %s7365_s3 = sld [smem:[#allocation47_spill]]  ;;  %s7366_s22 = sld [smem:[#allocation48_spill]] }
   0x7   :  { %s4654_s0 = smov 48   ;;  %s4657_s28 = smov 5  }
   0x8   :  { %v75_v0 = vld [vmem:[%s7362_s23] sm:$0xff]  ;;  %v76_v1 = vld [vmem:[%s7362_s23 + $0x8] sm:$0xff]  ;;  %s4650_s23 = smov 112   ;;  %s4659_s29 = smov 4  }
   0x9   :  { %v4162_v3 = vcombine.high %v75_v0, %v75_v0  ;;  %v4164_v4 = vcombine.high %v76_v1, %v76_v1  ;;  %v4161_v5 = vcombine.low %v75_v0, %v75_v0  ;;  %v67_v6 = vld [vmem:[%s7363_s26] sm:$0x3]  ;;  %v4163_v14 = vcombine.low %v76_v1, %v76_v1  ;;  %s4655_s26 = smov 32   ;;  %s4660_s30 = smov 125  }
   0xa   :  { %v68_v7 = vmul.f32 0.5, %v67_v6  ;;  %s4662_s21 = smov 124   ;;  %s4663_s1 = smov 1  }
   0xb   :  { %4165 = vmatprep.subr.msk.bf16.mxu0 %vm113_vm0, %v4162_v3  ;;  %v115_v8 = vsel %vm113_vm0, %v4161_v5, 0  ;;  %v71_v10 = vld [vmem:[%s7364_s4] sm:$0x3]  ;;  %v121_v17 = vsel %vm113_vm0, %v4163_v14, 0  ;;  %s4658_s4 = smov 127  }
   0xc   :  { %127 = vmatpush1.bf16.msra.mxu0 %v115_v8  ;;  %v69_v9 = vmul.f32 1.442695, %v68_v7  ;;  %v66_v12 = vld [vmem:[%s7365_s3] sm:$0x3]  ;;  %s4661_s3 = smov 3  }
   0xd   :  { %4167 = vmatprep.subr.msk.bf16.mxu0 %vm113_vm0, %v4164_v4  ;;  %v77_v21 = vld [vmem:[%s7366_s22] sm:$0xf] }
   0xe   :  { %4605 = vpow2.f32 %v69_v9  ;;  %v82_v23 = vrot.slane %v77_v21, %v4796_v20  ;;  %v86_v24 = vrot.slane %v77_v21, %v4802_v22  ;;  %v90_v49 = vrot.slane %v77_v21, %v4834_v45 }
   0xf   :  { %v94_v50 = vrot.slane %v77_v21, %v4839_v47 }
  0x18   :  { %v4606_v11 = vpop.eup %4605 }
  0x19   :  { %v72_v13 = vmul.f32 %v4606_v11, %v71_v10 }
  0x1b   :  { %v73_v15 = vadd.f32 %v72_v13, %v66_v12 }
  0x1d   :  { %v74_v16 = vpack.c.bf16 %v73_v15, %v73_v15 }
  0x1f   :  { %4166 = vmatmul.mubr.msk.bf16.vlgmr.msra.gmra.mrb[0].mxu0 %vm109_vm1, %v74_v16 }
  0x20   :  { %168 = vmatpush1.bf16.msra.mxu0 %v121_v17  ;;  %199 = vmatprep.mubr.bf16.mxu0 %v7331_v2 }
  0x27   :  { %4168 = vmatmul.mubr.msk.bf16.vlgmr.msra.gmra.mrb[4].mxu0 %vm109_vm1, %v74_v16  ;;  %vm588_vm1 = vcmask 7168  }
  0xf2   :  { %v160_v25 = vpop.f32.mrb[0].mxu0 }
  0xf3   :  { %v4806_v26 = vadd.f32 %v160_v25, %v82_v23  ;;  %v162_v27 = vpop.f32.mrb[1].mxu0 }
  0xf4   :  { %v164_v28 = vpop.f32.mrb[2].mxu0  ;;  %v4808_v29 = vadd.f32 %v162_v27, %v86_v24 }
  0xf5   :  { %v165_v30 = vpop.f32.mrb[3].mxu0  ;;  %359 = vrot.lane.b32.xlu0 %v4806_v26, %s4650_s23  ;;  %v209_v31 = vrot.slane %v4806_v26, 7  ;;  %v213_v34 = vrot.slane %v4806_v26, 6  ;;  %v217_v39 = vrot.slane %v4806_v26, 5  ;;  %v221_v41 = vrot.slane %v4806_v26, 4 }
  0xf6   :  { %v238_v32 = vrot.slane %v4808_v29, 7  ;;  %v242_v37 = vrot.slane %v4808_v29, 6  ;;  %v246_v40 = vrot.slane %v4808_v29, 5  ;;  %v250_v42 = vrot.slane %v4808_v29, 4 }
  0xf7   :  { %362 = vrot.lane.b32.xlu1 %v209_v31, %s4651_s24  ;;  %v225_v43 = vrot.slane %v4806_v26, 3  ;;  %v254_v44 = vrot.slane %v4808_v29, 3  ;;  %v229_v46 = vrot.slane %v4806_v26, 2  ;;  %v258_v48 = vrot.slane %v4808_v29, 2 }
  0xf8   :  { %v262_v1 = vrot.slane %v4808_v29, 1  ;;  %v233_v3 = vrot.slane %v4806_v26, 1 }
  0xf9   :  { %381 = vrot.lane.b32.xlu0 %v4808_v29, %s4650_s23 }
  0xfa   :  { %v201_v33 = vpop.f32.mrb[4].mxu0 }
  0xfb   :  { %384 = vrot.lane.b32.xlu1 %v238_v32, %s4651_s24  ;;  %v203_v35 = vpop.f32.mrb[5].mxu0  ;;  %v4846_v51 = vadd.f32 %v201_v33, %v90_v49 }
  0xfc   :  { %v205_v36 = vpop.f32.mrb[6].mxu0  ;;  %v4849_v52 = vadd.f32 %v203_v35, %v94_v50 }
  0xfd   :  { %365 = vrot.lane.b32.xlu0 %v213_v34, %s4652_s2  ;;  %v206_v38 = vpop.f32.mrb[7].mxu0  ;;  %v287_v53 = vrot.slane %v4846_v51, 7  ;;  %v291_v55 = vrot.slane %v4846_v51, 6  ;;  %v295_v57 = vrot.slane %v4846_v51, 5  ;;  %v299_v59 = vrot.slane %v4846_v51, 4 }
  0xfe   :  { %v316_v54 = vrot.slane %v4849_v52, 7  ;;  %v320_v56 = vrot.slane %v4849_v52, 6  ;;  %v324_v58 = vrot.slane %v4849_v52, 5  ;;  %v328_v60 = vrot.slane %v4849_v52, 4 }
  0xff   :  { %387 = vrot.lane.b32.xlu1 %v242_v37, %s4652_s2  ;;  %v303_v61 = vrot.slane %v4846_v51, 3  ;;  %v332_v62 = vrot.slane %v4849_v52, 3  ;;  %v307_v63 = vrot.slane %v4846_v51, 2  ;;  %v336_v0 = vrot.slane %v4849_v52, 2 }
 0x100   :  { %v311_v4 = vrot.slane %v4846_v51, 1  ;;  %v340_v5 = vrot.slane %v4849_v52, 1 }
 0x101   :  { %368 = vrot.lane.b32.xlu0 %v217_v39, %s4653_s25 }
 0x103   :  { %390 = vrot.lane.b32.xlu1 %v246_v40, %s4653_s25 }
 0x105   :  { %371 = vrot.lane.b32.xlu0 %v221_v41, %s4654_s0 }
 0x107   :  { %393 = vrot.lane.b32.xlu1 %v250_v42, %s4654_s0 }
 0x109   :  { %374 = vrot.lane.b32.xlu0 %v225_v43, %s4655_s26 }
 0x10b   :  { %396 = vrot.lane.b32.xlu1 %v254_v44, %s4655_s26 }
 0x10d   :  { %377 = vrot.lane.b32.xlu0 %v229_v46, %s4656_s27 }
 0x10f   :  { %399 = vrot.lane.b32.xlu1 %v258_v48, %s4656_s27 }
 0x111   :  { %210 = vrot.lane.b32.xlu0 %v209_v31, %s4650_s23 }
 0x113   :  { %239 = vrot.lane.b32.xlu1 %v238_v32, %s4650_s23 }
 0x115   :  { %417 = vrot.lane.b32.xlu0 %v4846_v51, %s4650_s23 }
 0x117   :  { %439 = vrot.lane.b32.xlu1 %v4849_v52, %s4650_s23 }
 0x119   :  { %420 = vrot.lane.b32.xlu0 %v287_v53, %s4651_s24 }
 0x11b   :  { %442 = vrot.lane.b32.xlu1 %v316_v54, %s4651_s24 }
 0x11d   :  { %423 = vrot.lane.b32.xlu0 %v291_v55, %s4652_s2 }
 0x11f   :  { %445 = vrot.lane.b32.xlu1 %v320_v56, %s4652_s2 }
 0x121   :  { %426 = vrot.lane.b32.xlu0 %v295_v57, %s4653_s25 }
 0x123   :  { %448 = vrot.lane.b32.xlu1 %v324_v58, %s4653_s25 }
 0x125   :  { %429 = vrot.lane.b32.xlu0 %v299_v59, %s4654_s0 }
 0x127   :  { %451 = vrot.lane.b32.xlu1 %v328_v60, %s4654_s0 }
 0x129   :  { %432 = vrot.lane.b32.xlu0 %v303_v61, %s4655_s26 }
 0x12b   :  { %454 = vrot.lane.b32.xlu1 %v332_v62, %s4655_s26 }
 0x12d   :  { %435 = vrot.lane.b32.xlu0 %v307_v63, %s4656_s27 }
 0x12f   :  { %457 = vrot.lane.b32.xlu1 %v336_v0, %s4656_s27 }
 0x131   :  { %214 = vrot.lane.b32.xlu0 %v213_v34, %s4651_s24 }
 0x133   :  { %243 = vrot.lane.b32.xlu1 %v242_v37, %s4651_s24 }
 0x135   :  { %218 = vrot.lane.b32.xlu0 %v217_v39, %s4652_s2 }
 0x137   :  { %247 = vrot.lane.b32.xlu1 %v246_v40, %s4652_s2 }
 0x139   :  { %222 = vrot.lane.b32.xlu0 %v221_v41, %s4653_s25 }
 0x13b   :  { %251 = vrot.lane.b32.xlu1 %v250_v42, %s4653_s25 }
 0x13d   :  { %226 = vrot.lane.b32.xlu0 %v225_v43, %s4654_s0 }
 0x13f   :  { %255 = vrot.lane.b32.xlu1 %v254_v44, %s4654_s0 }
 0x141   :  { %288 = vrot.lane.b32.xlu0 %v287_v53, %s4650_s23 }
 0x143   :  { %259 = vrot.lane.b32.xlu1 %v258_v48, %s4655_s26 }
 0x145   :  { %230 = vrot.lane.b32.xlu0 %v229_v46, %s4655_s26 }
 0x147   :  { %263 = vrot.lane.b32.xlu1 %v262_v1, %s4656_s27 }
 0x149   :  { %292 = vrot.lane.b32.xlu0 %v291_v55, %s4651_s24 }
 0x14b   :  { %317 = vrot.lane.b32.xlu1 %v316_v54, %s4650_s23 }
 0x14d   :  { %234 = vrot.lane.b32.xlu0 %v233_v3, %s4656_s27 }
 0x14f   :  { %321 = vrot.lane.b32.xlu1 %v320_v56, %s4651_s24 }
 0x151   :  { %296 = vrot.lane.b32.xlu0 %v295_v57, %s4652_s2 }
 0x153   :  { %325 = vrot.lane.b32.xlu1 %v324_v58, %s4652_s2  ;;  %s4664_s2 = smov 123  }
 0x155   :  { %300 = vrot.lane.b32.xlu0 %v299_v59, %s4653_s25 }
 0x157   :  { %329 = vrot.lane.b32.xlu1 %v328_v60, %s4653_s25 }
 0x159   :  { %304 = vrot.lane.b32.xlu0 %v303_v61, %s4654_s0 }
 0x15b   :  { %333 = vrot.lane.b32.xlu1 %v332_v62, %s4654_s0 }
 0x15d   :  { %308 = vrot.lane.b32.xlu0 %v307_v63, %s4655_s26 }
 0x15f   :  { %337 = vrot.lane.b32.xlu1 %v336_v0, %s4655_s26 }
 0x161   :  { %312 = vrot.lane.b32.xlu0 %v311_v4, %s4656_s27 }
 0x163   :  { %341 = vrot.lane.b32.xlu1 %v340_v5, %s4656_s27 }
 0x167   :  { %v360_v6 = vpop.permute.xlu0 %359 }
 0x168   :  { %v402_v15 = vsel %vm266_vm2, %v233_v3, %v360_v6 }
 0x169   :  { %v363_v7 = vpop.permute.xlu1 %362 }
 0x16a   :  { %v403_v18 = vsel %vm268_vm3, %v402_v15, %v363_v7 }
 0x16b   :  { %v382_v8 = vpop.permute.xlu0 %381 }
 0x16c   :  { %v409_v17 = vsel %vm266_vm2, %v262_v1, %v382_v8 }
 0x16d   :  { %v385_v9 = vpop.permute.xlu1 %384 }
 0x16e   :  { %v410_v24 = vsel %vm268_vm3, %v409_v17, %v385_v9 }
 0x16f   :  { %v366_v10 = vpop.permute.xlu0 %365 }
 0x170   :  { %v404_v23 = vsel %vm270_vm4, %v403_v18, %v366_v10 }
 0x171   :  { %v388_v11 = vpop.permute.xlu1 %387 }
 0x172   :  { %v411_v28 = vsel %vm270_vm4, %v410_v24, %v388_v11 }
 0x173   :  { %v369_v12 = vpop.permute.xlu0 %368 }
 0x174   :  { %v405_v25 = vsel %vm113_vm0, %v404_v23, %v369_v12 }
 0x175   :  { %v391_v13 = vpop.permute.xlu1 %390 }
 0x176   :  { %v412_v31 = vsel %vm113_vm0, %v411_v28, %v391_v13 }
 0x177   :  { %v372_v14 = vpop.permute.xlu0 %371 }
 0x178   :  { %v406_v30 = vsel %vm273_vm5, %v405_v25, %v372_v14 }
 0x179   :  { %v394_v16 = vpop.permute.xlu1 %393 }
 0x17a   :  { %v413_v34 = vsel %vm273_vm5, %v412_v31, %v394_v16 }
 0x17b   :  { %v375_v21 = vpop.permute.xlu0 %374 }
 0x17c   :  { %v407_v32 = vsel %vm275_vm6, %v406_v30, %v375_v21 }
 0x17d   :  { %v397_v27 = vpop.permute.xlu1 %396 }
 0x17e   :  { %v414_v36 = vsel %vm275_vm6, %v413_v34, %v397_v27 }
 0x17f   :  { %v378_v33 = vpop.permute.xlu0 %377 }
 0x180   :  { %v408_v35 = vsel %vm277_vm7, %v407_v32, %v378_v33 }
 0x181   :  { %478 = vrot.lane.b32.xlu0 %v408_v35, %s4656_s27  ;;  %v400_v37 = vpop.permute.xlu1 %399 }
 0x182   :  { %v415_v38 = vsel %vm277_vm7, %v414_v36, %v400_v37 }
 0x183   :  { %v211_v39 = vpop.permute.xlu0 %210  ;;  %480 = vrot.lane.b32.xlu1 %v415_v38, %s4656_s27 }
 0x185   :  { %v240_v40 = vpop.permute.xlu1 %239 }
 0x187   :  { %v418_v41 = vpop.permute.xlu0 %417 }
 0x188   :  { %v460_v55 = vsel %vm266_vm2, %v311_v4, %v418_v41  ;;  %v267_v41 = vsel %vm266_vm2, %v4806_v26, %v211_v39 }
 0x189   :  { %v440_v42 = vpop.permute.xlu1 %439 }
 0x18a   :  { %v467_v58 = vsel %vm266_vm2, %v340_v5, %v440_v42 }
 0x18b   :  { %v421_v43 = vpop.permute.xlu0 %420 }
 0x18c   :  { %v461_v56 = vsel %vm268_vm3, %v460_v55, %v421_v43  ;;  %v279_v43 = vsel %vm266_vm2, %v4808_v29, %v240_v40 }
 0x18d   :  { %v443_v44 = vpop.permute.xlu1 %442 }
 0x18e   :  { %v468_v60 = vsel %vm268_vm3, %v467_v58, %v443_v44 }
 0x18f   :  { %v424_v46 = vpop.permute.xlu0 %423 }
 0x190   :  { %v462_v59 = vsel %vm270_vm4, %v461_v56, %v424_v46 }
 0x191   :  { %v446_v48 = vpop.permute.xlu1 %445 }
 0x192   :  { %v469_v63 = vsel %vm270_vm4, %v468_v60, %v446_v48 }
 0x193   :  { %v427_v49 = vpop.permute.xlu0 %426 }
 0x194   :  { %v463_v61 = vsel %vm113_vm0, %v462_v59, %v427_v49 }
 0x195   :  { %v449_v50 = vpop.permute.xlu1 %448 }
 0x196   :  { %v470_v1 = vsel %vm113_vm0, %v469_v63, %v449_v50 }
 0x197   :  { %v430_v53 = vpop.permute.xlu0 %429 }
 0x198   :  { %v464_v0 = vsel %vm273_vm5, %v463_v61, %v430_v53 }
 0x199   :  { %v452_v54 = vpop.permute.xlu1 %451 }
 0x19a   :  { %v471_v6 = vsel %vm273_vm5, %v470_v1, %v452_v54 }
 0x19b   :  { %v433_v57 = vpop.permute.xlu0 %432 }
 0x19c   :  { %v465_v3 = vsel %vm275_vm6, %v464_v0, %v433_v57 }
 0x19d   :  { %v455_v62 = vpop.permute.xlu1 %454 }
 0x19e   :  { %v472_v7 = vsel %vm275_vm6, %v471_v6, %v455_v62 }
 0x19f   :  { %v436_v4 = vpop.permute.xlu0 %435 }
 0x1a0   :  { %v466_v5 = vsel %vm277_vm7, %v465_v3, %v436_v4 }
 0x1a1   :  { %482 = vrot.lane.b32.xlu0 %v466_v5, %s4656_s27  ;;  %v458_v8 = vpop.permute.xlu1 %457 }
 0x1a2   :  { %v473_v9 = vsel %vm277_vm7, %v472_v7, %v458_v8 }
 0x1a3   :  { %484 = vrot.lane.b32.xlu1 %v473_v9, %s4656_s27  ;;  %v215_v10 = vpop.permute.xlu0 %214 }
 0x1a4   :  { %v269_v42 = vsel %vm268_vm3, %v267_v41, %v215_v10 }
 0x1a5   :  { %v244_v11 = vpop.permute.xlu1 %243 }
 0x1a6   :  { %v280_v48 = vsel %vm268_vm3, %v279_v43, %v244_v11 }
 0x1a7   :  { %v219_v12 = vpop.permute.xlu0 %218 }
 0x1a8   :  { %v271_v44 = vsel %vm270_vm4, %v269_v42, %v219_v12 }
 0x1a9   :  { %v248_v13 = vpop.permute.xlu1 %247 }
 0x1aa   :  { %v281_v50 = vsel %vm270_vm4, %v280_v48, %v248_v13 }
 0x1ab   :  { %v223_v14 = vpop.permute.xlu0 %222 }
 0x1ac   :  { %v272_v49 = vsel %vm113_vm0, %v271_v44, %v223_v14 }
 0x1ad   :  { %v252_v15 = vpop.permute.xlu1 %251 }
 0x1ae   :  { %v282_v26 = vsel %vm113_vm0, %v281_v50, %v252_v15 }
 0x1af   :  { %v227_v16 = vpop.permute.xlu0 %226 }
 0x1b0   :  { %v274_v53 = vsel %vm273_vm5, %v272_v49, %v227_v16  ;;  %v4511_v16 = vld [vmem:[%s7314_s6 + $0x4] ss:$12 sps:$4 sm:$0xff]  }
 0x1b1   :  { %v256_v17 = vpop.permute.xlu1 %255  ;;  %1110 = vmatprep.mubr.bf16.mxu0 %v4511_v16 }
 0x1b2   :  { %v283_v55 = vsel %vm273_vm5, %v282_v26, %v256_v17  ;;  %v4515_v17 = vld [vmem:[%s7314_s6 + $0x8] ss:$12 sps:$4 sm:$0xff]  }
 0x1b3   :  { %v289_v18 = vpop.permute.xlu0 %288  ;;  %4455 = vmatprep.mubr.msk.bf16.mxu1 %vm1029_vm9, %v4515_v17 }
 0x1b4   :  { %v344_v62 = vsel %vm266_vm2, %v4846_v51, %v289_v18  ;;  %v5027_v18 = vld [vmem:[%s7315_s5] sm:$0xff] }
 0x1b5   :  { %v260_v21 = vpop.permute.xlu1 %259 }
 0x1b6   :  { %v284_v56 = vsel %vm275_vm6, %v283_v55, %v260_v21  ;;  %v521_v21 = vrot.slane %v5027_v18, %v4796_v20 }
 0x1b7   :  { %v231_v23 = vpop.permute.xlu0 %230 }
 0x1b8   :  { %v276_v39 = vsel %vm275_vm6, %v274_v53, %v231_v23 }
 0x1b9   :  { %v264_v24 = vpop.permute.xlu1 %263 }
 0x1ba   :  { %v285_v58 = vsel %vm277_vm7, %v284_v56, %v264_v24  ;;  %v546_v56 = vrot.slane %v5027_v18, %v4802_v22 }
 0x1bb   :  { %v293_v25 = vpop.permute.xlu0 %292 }
 0x1bc   :  { %v345_v63 = vsel %vm268_vm3, %v344_v62, %v293_v25  ;;  %v5055_v62 = vsub.s32 6, %v4793_v19 }
 0x1bd   :  { %v318_v27 = vpop.permute.xlu1 %317 }
 0x1be   :  { %v351_v0 = vsel %vm266_vm2, %v4849_v52, %v318_v27  ;;  %vm688_vm2 = vcmask 220160  }
 0x1bf   :  { %v235_v28 = vpop.permute.xlu0 %234 }
 0x1c0   :  { %v278_v29 = vsel %vm277_vm7, %v276_v39, %v235_v28 }
 0x1c1   :  { %v322_v30 = vpop.permute.xlu1 %321 }
 0x1c2   :  { %v352_v3 = vsel %vm268_vm3, %v351_v0, %v322_v30  ;;  %vm1426_vm3 = vcmask 523264  }
 0x1c3   :  { %v297_v31 = vpop.permute.xlu0 %296 }
 0x1c4   :  { %v346_v1 = vsel %vm270_vm4, %v345_v63, %v297_v31 }
 0x1c5   :  { %v326_v32 = vpop.permute.xlu1 %325 }
 0x1c6   :  { %v353_v6 = vsel %vm270_vm4, %v352_v3, %v326_v32  ;;  %vm1429_vm4 = vcmask 785408  }
 0x1c7   :  { %v301_v33 = vpop.permute.xlu0 %300 }
 0x1c8   :  { %v347_v4 = vsel %vm113_vm0, %v346_v1, %v301_v33 }
 0x1c9   :  { %v330_v34 = vpop.permute.xlu1 %329 }
 0x1ca   :  { %v354_v5 = vsel %vm113_vm0, %v353_v6, %v330_v34 }
 0x1cb   :  { %v305_v35 = vpop.permute.xlu0 %304 }
 0x1cc   :  { %v348_v51 = vsel %vm273_vm5, %v347_v4, %v305_v35 }
 0x1cd   :  { %v334_v36 = vpop.permute.xlu1 %333 }
 0x1ce   :  { %v355_v8 = vsel %vm273_vm5, %v354_v5, %v334_v36  ;;  %vm2343_vm5 = vcmask 588800  }
 0x1cf   :  { %v309_v37 = vpop.permute.xlu0 %308 }
 0x1d0   :  { %v349_v7 = vsel %vm275_vm6, %v348_v51, %v309_v37 }
 0x1d1   :  { %v338_v38 = vpop.permute.xlu1 %337 }
 0x1d2   :  { %v356_v10 = vsel %vm275_vm6, %v355_v8, %v338_v38 }
 0x1d3   :  { %v313_v46 = vpop.permute.xlu0 %312 }
 0x1d4   :  { %v350_v52 = vsel %vm277_vm7, %v349_v7, %v313_v46  ;;  %v5040_v46 = vsub.s32 5, %v4793_v19 }
 0x1d5   :  { %v342_v54 = vpop.permute.xlu1 %341 }
 0x1d6   :  { %v357_v12 = vsel %vm277_vm7, %v356_v10, %v342_v54  ;;  %v621_v53 = vrot.slane %v5027_v18, %v5040_v46 }
 0x1f3   :  { %v479_v40 = vpop.permute.xlu0 %478 }
 0x1f4   :  { %v4958_v57 = vsel %vm490_vm8, %v278_v29, %v479_v40 }
 0x1f5   :  { %501 = vrot.lane.b32.xlu0 %v4958_v57, %s4657_s28  ;;  %v481_v59 = vpop.permute.xlu1 %480 }
 0x1f6   :  { %v492_v60 = vsel %vm490_vm8, %v285_v58, %v481_v59 }
 0x1f7   :  { %503 = vrot.lane.b32.xlu1 %v492_v60, %s4657_s28  ;;  %v779_v61 = vpack.c.bf16 %v492_v60, %v4958_v57 }
 0x1f9   :  { %601 = vrot.lane.b32.xlu0 %v4958_v57, %s4658_s4  ;;  %4321 = vmatprep.subr.bf16.mxu0 %v779_v61 }
 0x1fb   :  { %603 = vrot.lane.b32.xlu1 %v492_v60, %s4658_s4 }
 0x1fd   :  { %526 = vrot.lane.b32.xlu0 %v4958_v57, %s4659_s29 }
 0x1ff   :  { %528 = vrot.lane.b32.xlu1 %v492_v60, %s4659_s29 }
 0x201   :  { %626 = vrot.lane.b32.xlu0 %v4958_v57, %s4660_s30 }
 0x203   :  { %628 = vrot.lane.b32.xlu1 %v492_v60, %s4660_s30 }
 0x205   :  { %551 = vrot.lane.b32.xlu0 %v4958_v57, %s4661_s3 }
 0x207   :  { %553 = vrot.lane.b32.xlu1 %v492_v60, %s4661_s3 }
 0x209   :  { %651 = vrot.lane.b32.xlu0 %v4958_v57, %s4662_s21 }
 0x20b   :  { %653 = vrot.lane.b32.xlu1 %v492_v60, %s4662_s21 }
 0x20d   :  { %576 = vrot.lane.b32.xlu0 %v4958_v57, %s4663_s1 }
 0x20f   :  { %578 = vrot.lane.b32.xlu1 %v492_v60, %s4663_s1 }
 0x213   :  { %v483_v9 = vpop.permute.xlu0 %482 }
 0x214   :  { %v493_v11 = vsel %vm490_vm8, %v350_v52, %v483_v9  ;;  %v646_v9 = vrot.slane %v5027_v18, %v5055_v62 }
 0x215   :  { %505 = vrot.lane.b32.xlu0 %v493_v11, %s4657_s28  ;;  %v485_v13 = vpop.permute.xlu1 %484 }
 0x216   :  { %v494_v14 = vsel %vm490_vm8, %v357_v12, %v485_v13 }
 0x217   :  { %507 = vrot.lane.b32.xlu1 %v494_v14, %s4657_s28  ;;  %v780_v15 = vpack.c.bf16 %v494_v14, %v493_v11 }
 0x219   :  { %605 = vrot.lane.b32.xlu0 %v493_v11, %s4658_s4 }
 0x21b   :  { %607 = vrot.lane.b32.xlu1 %v494_v14, %s4658_s4 }
 0x21d   :  { %530 = vrot.lane.b32.xlu0 %v493_v11, %s4659_s29 }
 0x21f   :  { %532 = vrot.lane.b32.xlu1 %v494_v14, %s4659_s29 }
 0x221   :  { %630 = vrot.lane.b32.xlu0 %v493_v11, %s4660_s30 }
 0x223   :  { %632 = vrot.lane.b32.xlu1 %v494_v14, %s4660_s30 }
 0x225   :  { %555 = vrot.lane.b32.xlu0 %v493_v11, %s4661_s3 }
 0x227   :  { %557 = vrot.lane.b32.xlu1 %v494_v14, %s4661_s3 }
 0x229   :  { %655 = vrot.lane.b32.xlu0 %v493_v11, %s4662_s21 }
 0x22b   :  { %657 = vrot.lane.b32.xlu1 %v494_v14, %s4662_s21 }
 0x22d   :  { %580 = vrot.lane.b32.xlu0 %v493_v11, %s4663_s1 }
 0x22f   :  { %582 = vrot.lane.b32.xlu1 %v494_v14, %s4663_s1 }
 0x231   :  { %676 = vrot.lane.b32.xlu0 %v4958_v57, %s4664_s2 }
 0x233   :  { %678 = vrot.lane.b32.xlu1 %v492_v60, %s4664_s2 }
 0x235   :  { %680 = vrot.lane.b32.xlu0 %v493_v11, %s4664_s2 }
 0x237   :  { %682 = vrot.lane.b32.xlu1 %v494_v14, %s4664_s2 }
 0x267   :  { %v502_v23 = vpop.permute.xlu0 %501 }
 0x268   :  { %v514_v24 = vsel %vm513_vm10, 0.0, %v502_v23 }
 0x269   :  { %v504_v25 = vpop.permute.xlu1 %503  ;;  %v522_v28 = vmul.f32 %v521_v21, %v514_v24 }
 0x26a   :  { %v515_v27 = vsel %vm513_vm10, 0.0, %v504_v25 }
 0x26b   :  { %v523_v30 = vmul.f32 %v521_v21, %v515_v27  ;;  %v602_v31 = vpop.permute.xlu0 %601 }
 0x26c   :  { %v614_v26 = vsel %vm613_vm11, %v602_v31, 0.0 }
 0x26d   :  { %v771_v32 = vpack.c.bf16 %v523_v30, %v522_v28  ;;  %v604_v33 = vpop.permute.xlu1 %603  ;;  %v622_v60 = vmul.f32 %v621_v53, %v614_v26  ;;  %v5070_v30 = vsub.s32 7, %v4793_v19 }
 0x26e   :  { %v615_v49 = vsel %vm613_vm11, %v604_v33, 0.0 }
 0x26f   :  { %v527_v34 = vpop.permute.xlu0 %526  ;;  %4322 = vmatpush3.bf16.msra.mxu0 %v771_v32  ;;  %v623_v55 = vmul.f32 %v621_v53, %v615_v49  ;;  %v671_v19 = vrot.slane %v5027_v18, %v5070_v30 }
 0x270   :  { %4323 = vmatprep.subr.bf16.mxu0 %v780_v15  ;;  %v539_v61 = vsel %vm538_vm12, 0.0, %v527_v34 }
 0x271   :  { %v529_v35 = vpop.permute.xlu1 %528  ;;  %v781_v6 = vpack.c.bf16 %v623_v55, %v622_v60  ;;  %v547_v51 = vmul.f32 %v546_v56, %v539_v61 }
 0x272   :  { %v540_v29 = vsel %vm538_vm12, 0.0, %v529_v35 }
 0x273   :  { %v627_v36 = vpop.permute.xlu0 %626  ;;  %v548_v0 = vmul.f32 %v546_v56, %v540_v29 }
 0x274   :  { %v639_v12 = vsel %vm638_vm13, %v627_v36, 0.0 }
 0x275   :  { %v629_v37 = vpop.permute.xlu1 %628  ;;  %v773_v11 = vpack.c.bf16 %v548_v0, %v547_v51  ;;  %v647_v27 = vmul.f32 %v646_v9, %v639_v12  ;;  %v4169_v12 = vld [vmem:[%s7315_s5 + $0x8] ss:$0 sm:$0xff] }
 0x276   :  { %v640_v5 = vsel %vm638_vm13, %v629_v37, 0.0 }
 0x277   :  { %v552_v38 = vpop.permute.xlu0 %551  ;;  %v648_v15 = vmul.f32 %v646_v9, %v640_v5 }
 0x278   :  { %v564_v28 = vsel %vm563_vm14, 0.0, %v552_v38 }
 0x279   :  { %v554_v41 = vpop.permute.xlu1 %553  ;;  %v783_v36 = vpack.c.bf16 %v648_v15, %v647_v27 }
 0x27a   :  { %v565_v16 = vsel %vm563_vm14, 0.0, %v554_v41 }
 0x27b   :  { %v5033_v42 = vpop.permute.xlu0 %651 }
 0x27c   :  { %v664_v26 = vsel %vm663_vm15, %v5033_v42, 0.0 }
 0x27d   :  { %v5035_v43 = vpop.permute.xlu1 %653  ;;  %v672_v60 = vmul.f32 %v671_v19, %v664_v26  ;;  %v4525_v26 = vld [vmem:[%s7314_s6 + $0x64] ss:$12 sps:$4 sm:$0xff]  }
 0x27e   :  { %v665_v41 = vsel %vm663_vm15, %v5035_v43, 0.0 }
 0x27f   :  { %v5037_v44 = vpop.permute.xlu0 %576  ;;  %v673_v29 = vmul.f32 %v671_v19, %v665_v41  ;;  %v4517_v41 = vld [vmem:[%s7314_s6 + $0x34] ss:$12 sps:$4 sm:$0xff]  }
 0x280   :  { %v589_v42 = vsel %vm588_vm1, 0.0, %v5037_v44 }
 0x281   :  { %v5042_v48 = vpop.permute.xlu1 %578 }
 0x282   :  { %v590_v43 = vsel %vm588_vm1, 0.0, %v5042_v48  ;;  %v785_v48 = vpack.c.bf16 %v673_v29, %v672_v60  ;;  %v4527_v29 = vld [vmem:[%s7314_s6 + $0x60] ss:$12 sps:$4 sm:$0xff]   ;;  %v4549_v60 = vld [vmem:[%s7314_s6 + $0xf8] ss:$12 sps:$4 sm:$0xff]  }
 0x287   :  { %v506_v50 = vpop.permute.xlu0 %505 }
 0x288   :  { %v516_v54 = vsel %vm513_vm10, 0.0, %v506_v50 }
 0x289   :  { %v508_v39 = vpop.permute.xlu1 %507  ;;  %v524_v57 = vmul.f32 %v521_v21, %v516_v54 }
 0x28a   :  { %v517_v40 = vsel %vm513_vm10, 0.0, %v508_v39 }
 0x28b   :  { %v525_v58 = vmul.f32 %v521_v21, %v517_v40  ;;  %v606_v59 = vpop.permute.xlu0 %605  ;;  %v571_v21 = vrot.slane %v5027_v18, %v4834_v45 }
 0x28c   :  { %v616_v63 = vsel %vm613_vm11, %v606_v59, 0.0 }
 0x28d   :  { %v772_v1 = vpack.c.bf16 %v525_v58, %v524_v57  ;;  %v608_v3 = vpop.permute.xlu1 %607  ;;  %v624_v7 = vmul.f32 %v621_v53, %v616_v63  ;;  %v573_v32 = vmul.f32 %v571_v21, %v565_v16  ;;  %v572_v37 = vmul.f32 %v571_v21, %v564_v28 }
 0x28e   :  { %v617_v4 = vsel %vm613_vm11, %v608_v3, 0.0 }
 0x28f   :  { %v625_v8 = vmul.f32 %v621_v53, %v617_v4  ;;  %v531_v52 = vpop.permute.xlu0 %530  ;;  %4324 = vmatpush3.bf16.msra.mxu0 %v772_v1  ;;  %v775_v54 = vpack.c.bf16 %v573_v32, %v572_v37  ;;  %v4516_v37 = vld [vmem:[%s7314_s6 + $0x20] ss:$12 sps:$4 sm:$0xff]  }
 0x290   :  { %v541_v10 = vsel %vm538_vm12, 0.0, %v531_v52  ;;  %4325 = vmatprep.subr.bf16.mxu0 %v781_v6 }
 0x291   :  { %v782_v13 = vpack.c.bf16 %v625_v8, %v624_v7  ;;  %v533_v14 = vpop.permute.xlu1 %532  ;;  %v549_v23 = vmul.f32 %v546_v56, %v541_v10 }
 0x292   :  { %v542_v17 = vsel %vm538_vm12, 0.0, %v533_v14 }
 0x293   :  { %v550_v24 = vmul.f32 %v546_v56, %v542_v17  ;;  %v631_v25 = vpop.permute.xlu0 %630  ;;  %4326 = vmatpush3.bf16.msra.mxu0 %v773_v11  ;;  %v596_v56 = vrot.slane %v5027_v18, %v4839_v47  ;;  %v4509_v17 = vld [vmem:[%s7314_s6] ss:$12 sps:$4 sm:$0xff]  }
 0x294   :  { %v641_v31 = vsel %vm638_vm13, %v631_v25, 0.0  ;;  %4327 = vmatprep.subr.bf16.mxu0 %v782_v13  ;;  %v4512_v25 = vld [vmem:[%s7314_s6 + $0x1c] ss:$12 sps:$4 sm:$0xff]  }
 0x295   :  { %v774_v33 = vpack.c.bf16 %v550_v24, %v549_v23  ;;  %v633_v34 = vpop.permute.xlu1 %632  ;;  %v649_v49 = vmul.f32 %v646_v9, %v641_v31  ;;  %v598_v63 = vmul.f32 %v596_v56, %v590_v43  ;;  %v597_v4 = vmul.f32 %v596_v56, %v589_v42  ;;  %v4530_v43 = vld [vmem:[%s7314_s6 + $0x7c] ss:$12 sps:$4 sm:$0xff]  }
 0x296   :  { %v642_v35 = vsel %vm638_vm13, %v633_v34, 0.0  ;;  %v4535_v42 = vld [vmem:[%s7314_s6 + $0x90] ss:$12 sps:$4 sm:$0xff]  }
 0x297   :  { %v650_v50 = vmul.f32 %v646_v9, %v642_v35  ;;  %v556_v38 = vpop.permute.xlu0 %555  ;;  %4328 = vmatpush3.bf16.msra.mxu0 %v774_v33  ;;  %v777_v7 = vpack.c.bf16 %v598_v63, %v597_v4  ;;  %v4552_v63 = vld [vmem:[%s7314_s6 + $0x110] ss:$12 sps:$4 sm:$0xff]   ;;  %v4548_v4 = vld [vmem:[%s7314_s6 + $0xd8] ss:$12 sps:$4 sm:$0xff]  }
 0x298   :  { %v566_v53 = vsel %vm563_vm14, 0.0, %v556_v38  ;;  %4329 = vmatprep.subr.bf16.mxu0 %v783_v36  ;;  %v4514_v36 = vld [vmem:[%s7314_s6 + $0x18] ss:$12 sps:$4 sm:$0xff]   ;;  %v4521_v38 = vld [vmem:[%s7314_s6 + $0x50] ss:$12 sps:$4 sm:$0xff]  }
 0x299   :  { %v784_v39 = vpack.c.bf16 %v650_v50, %v649_v49  ;;  %v558_v55 = vpop.permute.xlu1 %557  ;;  %v574_v57 = vmul.f32 %v571_v21, %v566_v53  ;;  %v4520_v49 = vld [vmem:[%s7314_s6 + $0x38] ss:$12 sps:$4 sm:$0xff]   ;;  %v4519_v50 = vld [vmem:[%s7314_s6 + $0x30] ss:$12 sps:$4 sm:$0xff]   ;;  %v4528_v53 = vld [vmem:[%s7314_s6 + $0x68] ss:$12 sps:$4 sm:$0xff]  }
 0x29a   :  { %v567_v40 = vsel %vm563_vm14, 0.0, %v558_v55  ;;  %v4536_v55 = vld [vmem:[%s7314_s6 + $0x98] ss:$12 sps:$4 sm:$0xff]  }
 0x29b   :  { %v575_v58 = vmul.f32 %v571_v21, %v567_v40  ;;  %v656_v59 = vpop.permute.xlu0 %655  ;;  %4330 = vmatpush3.bf16.msra.mxu0 %v775_v54  ;;  %v4524_v54 = vld [vmem:[%s7314_s6 + $0x48] ss:$12 sps:$4 sm:$0xff]   ;;  %v4537_v40 = vld [vmem:[%s7314_s6 + $0xb0] ss:$12 sps:$4 sm:$0xff]  }
 0x29c   :  { %v666_v61 = vsel %vm663_vm15, %v656_v59, 0.0  ;;  %4331 = vmatprep.subr.bf16.mxu0 %v784_v39  ;;  %v4529_v39 = vld [vmem:[%s7314_s6 + $0x80] ss:$12 sps:$4 sm:$0xff]  }
 0x29d   :  { %v776_v0 = vpack.c.bf16 %v575_v58, %v574_v57  ;;  %v658_v1 = vpop.permute.xlu1 %657  ;;  %v674_v6 = vmul.f32 %v671_v19, %v666_v61  ;;  %v4532_v57 = vld [vmem:[%s7314_s6 + $0x78] ss:$12 sps:$4 sm:$0xff]   ;;  %v4533_v58 = vld [vmem:[%s7314_s6 + $0x94] ss:$12 sps:$4 sm:$0xff]  }
 0x29e   :  { %v667_v3 = vsel %vm663_vm15, %v658_v1, 0.0  ;;  %v4545_v59 = vld [vmem:[%s7314_s6 + $0xe0] ss:$12 sps:$4 sm:$0xff]   ;;  %v4541_v1 = vld [vmem:[%s7314_s6 + $0xc4] ss:$12 sps:$4 sm:$0xff]  }
 0x29f   :  { %v675_v18 = vmul.f32 %v671_v19, %v667_v3  ;;  %v581_v51 = vpop.permute.xlu0 %580  ;;  %4332 = vmatpush3.bf16.msra.mxu0 %v776_v0  ;;  %v4522_v19 = vld [vmem:[%s7314_s6 + $0x4c] ss:$12 sps:$4 sm:$0xff]   ;;  %v4540_v0 = vld [vmem:[%s7314_s6 + $0xa8] ss:$12 sps:$4 sm:$0xff]  }
 0x2a0   :  { %v591_v5 = vsel %vm588_vm1, 0.0, %v581_v51  ;;  %4333 = vmatprep.subr.bf16.mxu0 %v785_v48  ;;  %v4538_v61 = vld [vmem:[%s7314_s6 + $0xac] ss:$12 sps:$4 sm:$0xff]   ;;  %v4546_v3 = vld [vmem:[%s7314_s6 + $0xdc] ss:$12 sps:$4 sm:$0xff]  }
 0x2a1   :  { %v786_v8 = vpack.c.bf16 %v675_v18, %v674_v6  ;;  %v583_v44 = vpop.permute.xlu1 %582  ;;  %v599_v9 = vmul.f32 %v596_v56, %v591_v5  ;;  %v4543_v48 = vld [vmem:[%s7314_s6 + $0xc0] ss:$12 sps:$4 sm:$0xff]   ;;  %v4553_v18 = vld [vmem:[%s7314_s6 + $0xf0] ss:$12 sps:$4 sm:$0xff]   ;;  %v4556_v5 = vld [vmem:[%s7314_s6 + $0x108] ss:$12 sps:$4 sm:$0xff]  }
 0x2a2   :  { %v592_v52 = vsel %vm588_vm1, 0.0, %v583_v44  ;;  %v4550_v6 = vld [vmem:[%s7314_s6 + $0xf4] ss:$12 sps:$4 sm:$0xff]   ;;  %v4554_v51 = vld [vmem:[%s7314_s6 + $0x10c] ss:$12 sps:$4 sm:$0xff]  }
 0x2a3   :  { %v600_v10 = vmul.f32 %v596_v56, %v592_v52  ;;  %v677_v11 = vpop.permute.xlu0 %676  ;;  %4334 = vmatpush3.bf16.msra.mxu0 %v777_v7  ;;  %v4544_v56 = vld [vmem:[%s7314_s6 + $0xc8] ss:$12 sps:$4 sm:$0xff]   ;;  %v4557_v7 = vld [vmem:[%s7314_s6 + $0x124] ss:$12 sps:$4 sm:$0xff]   ;;  %v4561_v52 = vld [vmem:[%s7314_s6 + $0x140] ss:$12 sps:$4 sm:$0xff]  }
 0x2a4   :  { %v689_v13 = vsel %vm688_vm2, %v677_v11, 0.0  ;;  %4335 = vmatprep.subr.bf16.mxu0 %v786_v8  ;;  %v4559_v8 = vld [vmem:[%s7314_s6 + $0x120] ss:$12 sps:$4 sm:$0xff]   ;;  %v4560_v44 = vld [vmem:[%s7314_s6 + $0x128] ss:$12 sps:$4 sm:$0xff]  }
 0x2a5   :  { %v778_v14 = vpack.c.bf16 %v600_v10, %v599_v9  ;;  %v679_v15 = vpop.permute.xlu1 %678  ;;  %v697_v21 = vmul.f32 %v4169_v12, %v689_v13 }
 0x2a6   :  { %v690_v16 = vsel %vm688_vm2, %v679_v15, 0.0 }
 0x2a7   :  { %v698_v23 = vmul.f32 %v4169_v12, %v690_v16  ;;  %v681_v24 = vpop.permute.xlu0 %680  ;;  %4336 = vmatpush3.bf16.msra.mxu0 %v778_v14 }
 0x2a8   :  { %v691_v27 = vsel %vm688_vm2, %v681_v24, 0.0 }
 0x2a9   :  { %v683_v28 = vpop.permute.xlu1 %682  ;;  %v787_v31 = vpack.c.bf16 %v698_v23, %v697_v21  ;;  %v699_v33 = vmul.f32 %v4169_v12, %v691_v27 }
 0x2aa   :  { %v692_v32 = vsel %vm688_vm2, %v683_v28, 0.0  ;;  %1111 = vmatmul.mubr.bf16.vlgmr.msra.gmra.mrb[8].mxu0 %v4509_v17 }
 0x2ab   :  { %v700_v34 = vmul.f32 %v4169_v12, %v692_v32  ;;  %4451 = vmatprep.subr.bf16.mxu1 %v787_v31  ;;  %1118 = vmatprep.mubr.bf16.mxu0 %v4512_v25 }
 0x2ac   :  { %4452 = vmatpush3.bf16.msra.mxu1 %v787_v31 }
 0x2ad   :  { %v788_v35 = vpack.c.bf16 %v700_v34, %v699_v33 }
 0x2af   :  { %4453 = vmatprep.subr.bf16.mxu1 %v788_v35 }
 0x2b0   :  { %4454 = vmatpush3.bf16.msra.mxu1 %v788_v35 }
 0x2b1   :  { %1911 = vmatprep.subr.bf16.mxu1 %v7331_v2 }
 0x2b2   :  { %1119 = vmatmul.mubr.bf16.gmra.mrb[12].mxu0 %v4514_v36 }
 0x2b3   :  { %4456 = vmatmul.mubr.msk.bf16.vlgmr.msra.gmra.mrb[0].mxu1 %vm1029_vm9, %v4516_v37  ;;  %1126 = vmatprep.mubr.bf16.mxu0 %v4517_v41 }
 0x2b4   :  { %4459 = vmatprep.mubr.msk.bf16.mxu1 %vm1029_vm9, %v4520_v49 }
 0x2ba   :  { %1127 = vmatmul.mubr.bf16.gmra.mrb[16].mxu0 %v4519_v50 }
 0x2bb   :  { %4460 = vmatmul.mubr.msk.bf16.gmra.mrb[4].mxu1 %vm1029_vm9, %v4521_v38  ;;  %1134 = vmatprep.mubr.bf16.mxu0 %v4522_v19 }
 0x2bc   :  { %4463 = vmatprep.mubr.msk.bf16.mxu1 %vm1029_vm9, %v4528_v53 }
 0x2c2   :  { %1135 = vmatmul.mubr.bf16.gmra.mrb[20].mxu0 %v4524_v54 }
 0x2c3   :  { %1142 = vmatprep.mubr.bf16.mxu0 %v4525_v26  ;;  %4464 = vmatmul.mubr.msk.bf16.gmra.mrb[8].mxu1 %vm1029_vm9, %v4529_v39 }
 0x2c4   :  { %4467 = vmatprep.mubr.msk.bf16.mxu1 %vm1029_vm9, %v4536_v55 }
 0x2ca   :  { %1143 = vmatmul.mubr.bf16.gmra.mrb[24].mxu0 %v4527_v29 }
 0x2cb   :  { %1150 = vmatprep.mubr.bf16.mxu0 %v4530_v43  ;;  %4468 = vmatmul.mubr.msk.bf16.gmra.mrb[12].mxu1 %vm1029_vm9, %v4537_v40 }
 0x2cc   :  { %4471 = vmatprep.mubr.msk.bf16.mxu1 %vm1029_vm9, %v4544_v56 }
 0x2d2   :  { %1151 = vmatmul.mubr.bf16.gmra.mrb[28].mxu0 %v4532_v57 }
 0x2d3   :  { %1158 = vmatprep.mubr.bf16.mxu0 %v4533_v58  ;;  %4472 = vmatmul.mubr.msk.bf16.gmra.mrb[16].mxu1 %vm1029_vm9, %v4545_v59 }
 0x2d4   :  { %4475 = vmatprep.mubr.msk.bf16.mxu1 %vm1029_vm9, %v4549_v60 }
 0x2da   :  { %1159 = vmatmul.mubr.bf16.gmra.mrb[32].mxu0 %v4535_v42 }
 0x2db   :  { %1166 = vmatprep.mubr.bf16.mxu0 %v4538_v61  ;;  %4476 = vmatmul.mubr.msk.bf16.gmra.mrb[20].mxu1 %vm1029_vm9, %v4552_v63 }
 0x2dc   :  { %4479 = vmatprep.mubr.msk.bf16.mxu1 %vm1029_vm9, %v4560_v44 }
 0x2e2   :  { %1167 = vmatmul.mubr.bf16.gmra.mrb[36].mxu0 %v4540_v0 }
 0x2e3   :  { %1174 = vmatprep.mubr.bf16.mxu0 %v4541_v1  ;;  %4480 = vmatmul.mubr.msk.bf16.gmra.mrb[24].mxu1 %vm1029_vm9, %v4561_v52 }
 0x2ea   :  { %1175 = vmatmul.mubr.bf16.gmra.mrb[40].mxu0 %v4543_v48 }
 0x2eb   :  { %1182 = vmatprep.mubr.bf16.mxu0 %v4546_v3 }
 0x2f2   :  { %1183 = vmatmul.mubr.bf16.gmra.mrb[44].mxu0 %v4548_v4 }
 0x2f3   :  { %1190 = vmatprep.mubr.bf16.mxu0 %v4550_v6 }
 0x2fa   :  { %1191 = vmatmul.mubr.bf16.gmra.mrb[48].mxu0 %v4553_v18 }
 0x2fb   :  { %1198 = vmatprep.mubr.bf16.mxu0 %v4554_v51 }
 0x302   :  { %1199 = vmatmul.mubr.bf16.gmra.mrb[52].mxu0 %v4556_v5 }
 0x303   :  { %1206 = vmatprep.mubr.bf16.mxu0 %v4557_v7 }
 0x30a   :  { %1207 = vmatmul.mubr.bf16.gmra.mrb[56].mxu0 %v4559_v8 }
 0x37d   :  { %v4337_v9 = vpop.f32.mrb[8].mxu0 }
 0x37e   :  { %v4338_v10 = vpop.f32.mrb[9].mxu0 }
 0x37f   :  { %v4339_v11 = vadd.f32 %v4338_v10, %v4337_v9  ;;  %v4340_v12 = vpop.f32.mrb[10].mxu0 }
 0x380   :  { %v4341_v13 = vpop.f32.mrb[11].mxu0 }
 0x381   :  { %v4342_v14 = vadd.f32 %v4341_v13, %v4340_v12  ;;  %v4562_v12 = vld [vmem:[%s7314_s6 + $0x13c] ss:$12 sps:$4 sm:$0xff]   ;;  %v4564_v13 = vld [vmem:[%s7314_s6 + $0x138] ss:$12 sps:$4 sm:$0xff]  }
 0x382   :  { %1214 = vmatprep.mubr.bf16.mxu0 %v4562_v12 }
 0x383   :  { %1215 = vmatmul.mubr.bf16.gmra.mrb[60].mxu0 %v4564_v13 }
 0x385   :  { %v4343_v15 = vpop.f32.mrb[12].mxu0 }
 0x386   :  { %v4344_v16 = vpop.f32.mrb[13].mxu0  ;;  %v4457_v17 = vpop.f32.mrb[0].mxu1 }
 0x387   :  { %v4345_v21 = vadd.f32 %v4344_v16, %v4343_v15  ;;  %v4346_v23 = vpop.f32.mrb[14].mxu0  ;;  %v1273_v24 = vpop.f32.mrb[1].mxu1 }
 0x388   :  { %v5227_v25 = vadd.f32 %v4339_v11, %v1273_v24  ;;  %v4347_v27 = vpop.f32.mrb[15].mxu0  ;;  %v4458_v28 = vpop.f32.mrb[2].mxu1 }
 0x389   :  { %v5229_v31 = vadd.f32 %v4457_v17, %v4345_v21  ;;  %v4348_v32 = vadd.f32 %v4347_v27, %v4346_v23  ;;  %v1276_v33 = vpop.f32.mrb[3].mxu1  ;;  %v4565_v23 = vld [vmem:[%s7314_s6 + $0x154] ss:$12 sps:$4 sm:$0xff]  }
 0x38a   :  { %v5231_v34 = vadd.f32 %v4342_v14, %v1276_v33  ;;  %v4569_v33 = vld [vmem:[%s7314_s6 + $0x170] ss:$12 sps:$4 sm:$0xff]   ;;  %1222 = vmatprep.mubr.bf16.mxu0 %v4565_v23 }
 0x38b   :  { %v5233_v35 = vadd.f32 %v4458_v28, %v4348_v32  ;;  %v4568_v32 = vld [vmem:[%s7314_s6 + $0x158] ss:$12 sps:$4 sm:$0xff]  }
 0x38c   :  { %4483 = vmatprep.mubr.msk.bf16.mxu1 %vm1029_vm9, %v4568_v32 }
 0x38d   :  { %v4349_v36 = vpop.f32.mrb[16].mxu0  ;;  %4484 = vmatmul.mubr.msk.bf16.gmra.mrb[28].mxu1 %vm1029_vm9, %v4569_v33 }
 0x38e   :  { %v4350_v37 = vpop.f32.mrb[17].mxu0  ;;  %v4461_v41 = vpop.f32.mrb[4].mxu1 }
 0x38f   :  { %v4351_v49 = vadd.f32 %v4350_v37, %v4349_v36  ;;  %v4352_v50 = vpop.f32.mrb[18].mxu0  ;;  %v1289_v38 = vpop.f32.mrb[5].mxu1 }
 0x390   :  { %v4353_v19 = vpop.f32.mrb[19].mxu0  ;;  %v4462_v53 = vpop.f32.mrb[6].mxu1 }
 0x391   :  { %v4354_v54 = vadd.f32 %v4353_v19, %v4352_v50  ;;  %v5235_v26 = vadd.f32 %v4351_v49, %v1289_v38  ;;  %v1292_v39 = vpop.f32.mrb[7].mxu1 }
 0x393   :  { %v5237_v55 = vadd.f32 %v4354_v54, %v1292_v39 }
 0x395   :  { %v4355_v29 = vpop.f32.mrb[20].mxu0 }
 0x396   :  { %v4356_v43 = vpop.f32.mrb[21].mxu0  ;;  %v4465_v40 = vpop.f32.mrb[8].mxu1 }
 0x397   :  { %v4357_v56 = vadd.f32 %v4356_v43, %v4355_v29  ;;  %v4358_v57 = vpop.f32.mrb[22].mxu0  ;;  %v1305_v58 = vpop.f32.mrb[9].mxu1 }
 0x398   :  { %v4359_v59 = vpop.f32.mrb[23].mxu0  ;;  %v4466_v60 = vpop.f32.mrb[10].mxu1 }
 0x399   :  { %v5239_v42 = vadd.f32 %v4461_v41, %v4357_v56  ;;  %v4360_v61 = vadd.f32 %v4359_v59, %v4358_v57  ;;  %v1308_v63 = vpop.f32.mrb[11].mxu1  ;;  %v4567_v41 = vld [vmem:[%s7314_s6 + $0x150] ss:$12 sps:$4 sm:$0xff]  }
 0x39a   :  { %1223 = vmatmul.mubr.bf16.gmra.mrb[64].mxu0 %v4567_v41 }
 0x39b   :  { %v5241_v0 = vadd.f32 %v4462_v53, %v4360_v61 }
 0x39d   :  { %v4361_v1 = vpop.f32.mrb[24].mxu0 }
 0x39e   :  { %v4362_v48 = vpop.f32.mrb[25].mxu0  ;;  %v4469_v3 = vpop.f32.mrb[12].mxu1 }
 0x39f   :  { %v4363_v4 = vadd.f32 %v4362_v48, %v4361_v1  ;;  %v4364_v6 = vpop.f32.mrb[26].mxu0  ;;  %v1321_v18 = vpop.f32.mrb[13].mxu1 }
 0x3a0   :  { %v4365_v51 = vpop.f32.mrb[27].mxu0  ;;  %v4470_v5 = vpop.f32.mrb[14].mxu1 }
 0x3a1   :  { %v4366_v7 = vadd.f32 %v4365_v51, %v4364_v6  ;;  %v5243_v8 = vadd.f32 %v4363_v4, %v1305_v58  ;;  %v1324_v44 = vpop.f32.mrb[15].mxu1  ;;  %v4572_v51 = vld [vmem:[%s7314_s6 + $0x168] ss:$12 sps:$4 sm:$0xff]  }
 0x3a3   :  { %v5245_v52 = vadd.f32 %v4366_v7, %v1308_v63 }
 0x3a5   :  { %v4367_v9 = vpop.f32.mrb[28].mxu0 }
 0x3a6   :  { %v4368_v10 = vpop.f32.mrb[29].mxu0  ;;  %v4473_v11 = vpop.f32.mrb[16].mxu1 }
 0x3a7   :  { %v4369_v14 = vadd.f32 %v4368_v10, %v4367_v9  ;;  %v4370_v15 = vpop.f32.mrb[30].mxu0  ;;  %v1337_v16 = vpop.f32.mrb[17].mxu1 }
 0x3a8   :  { %v4371_v17 = vpop.f32.mrb[31].mxu0  ;;  %v4474_v21 = vpop.f32.mrb[18].mxu1 }
 0x3a9   :  { %v5256_v24 = vadd.f32 %v4465_v40, %v4369_v14  ;;  %v4372_v27 = vadd.f32 %v4371_v17, %v4370_v15  ;;  %v1340_v28 = vpop.f32.mrb[19].mxu1 }
 0x3ab   :  { %v5264_v36 = vadd.f32 %v4466_v60, %v4372_v27 }
 0x3ad   :  { %v4373_v37 = vpop.f32.mrb[32].mxu0 }
 0x3ae   :  { %v4374_v49 = vpop.f32.mrb[33].mxu0  ;;  %v4477_v50 = vpop.f32.mrb[20].mxu1 }
 0x3af   :  { %v4375_v38 = vadd.f32 %v4374_v49, %v4373_v37  ;;  %v4376_v19 = vpop.f32.mrb[34].mxu0  ;;  %v1353_v53 = vpop.f32.mrb[21].mxu1 }
 0x3b0   :  { %v4377_v54 = vpop.f32.mrb[35].mxu0  ;;  %v4478_v39 = vpop.f32.mrb[22].mxu1 }
 0x3b1   :  { %v4378_v29 = vadd.f32 %v4377_v54, %v4376_v19  ;;  %v5271_v43 = vadd.f32 %v4375_v38, %v1321_v18  ;;  %v1356_v40 = vpop.f32.mrb[23].mxu1  ;;  %v4570_v18 = vld [vmem:[%s7314_s6 + $0x16c] ss:$12 sps:$4 sm:$0xff]  }
 0x3b2   :  { %1230 = vmatprep.mubr.bf16.mxu0 %v4570_v18 }
 0x3b3   :  { %v5273_v56 = vadd.f32 %v4378_v29, %v1324_v44  ;;  %1516 = vrot.lane.b32.xlu0 %v5271_v43, %s4655_s26  ;;  %1231 = vmatmul.mubr.bf16.gmra.mrb[68].mxu0 %v4572_v51 }
 0x3b4   :  { %2525 = vmatprep.mubr.bf16.mxu0 %v7331_v2 }
 0x3b5   :  { %v4379_v57 = vpop.f32.mrb[36].mxu0  ;;  %1518 = vrot.lane.b32.xlu1 %v5273_v56, %s4655_s26 }
 0x3b6   :  { %v4380_v58 = vpop.f32.mrb[37].mxu0 }
 0x3b7   :  { %v4381_v59 = vadd.f32 %v4380_v58, %v4379_v57  ;;  %v4382_v60 = vpop.f32.mrb[38].mxu0 }
 0x3b8   :  { %v4383_v61 = vpop.f32.mrb[39].mxu0 }
 0x3b9   :  { %v5279_v63 = vadd.f32 %v4469_v3, %v4381_v59  ;;  %v4384_v1 = vadd.f32 %v4383_v61, %v4382_v60 }
 0x3bb   :  { %v5281_v48 = vadd.f32 %v4470_v5, %v4384_v1 }
 0x3bd   :  { %v4385_v4 = vpop.f32.mrb[40].mxu0 }
 0x3be   :  { %v4386_v6 = vpop.f32.mrb[41].mxu0 }
 0x3bf   :  { %v4387_v7 = vadd.f32 %v4386_v6, %v4385_v4  ;;  %v4388_v44 = vpop.f32.mrb[42].mxu0 }
 0x3c0   :  { %v4389_v9 = vpop.f32.mrb[43].mxu0 }
 0x3c1   :  { %v4390_v10 = vadd.f32 %v4389_v9, %v4388_v44  ;;  %v5289_v3 = vadd.f32 %v4387_v7, %v1337_v16 }
 0x3c3   :  { %v5292_v5 = vadd.f32 %v4390_v10, %v1340_v28 }
 0x3c5   :  { %v4391_v12 = vpop.f32.mrb[44].mxu0 }
 0x3c6   :  { %v4392_v13 = vpop.f32.mrb[45].mxu0 }
 0x3c7   :  { %v4393_v14 = vadd.f32 %v4392_v13, %v4391_v12  ;;  %v4394_v15 = vpop.f32.mrb[46].mxu0 }
 0x3c8   :  { %v4395_v17 = vpop.f32.mrb[47].mxu0 }
 0x3c9   :  { %v5294_v23 = vadd.f32 %v4473_v11, %v4393_v14  ;;  %v4396_v27 = vadd.f32 %v4395_v17, %v4394_v15  ;;  %v4481_v14 = vpop.f32.mrb[24].mxu1 }
 0x3cb   :  { %v5296_v32 = vadd.f32 %v4474_v21, %v4396_v27  ;;  %1522 = vrot.lane.b32.xlu0 %v5294_v23, %s4653_s25 }
 0x3cd   :  { %v4397_v16 = vpop.f32.mrb[48].mxu0  ;;  %1524 = vrot.lane.b32.xlu1 %v5296_v32, %s4653_s25 }
 0x3ce   :  { %v4398_v33 = vpop.f32.mrb[49].mxu0 }
 0x3cf   :  { %v4399_v28 = vadd.f32 %v4398_v33, %v4397_v16  ;;  %v4400_v37 = vpop.f32.mrb[50].mxu0  ;;  %v1369_v16 = vpop.f32.mrb[25].mxu1 }
 0x3d0   :  { %v4401_v41 = vpop.f32.mrb[51].mxu0 }
 0x3d1   :  { %v5302_v49 = vadd.f32 %v4399_v28, %v1353_v53  ;;  %v4402_v38 = vadd.f32 %v4401_v41, %v4400_v37  ;;  %v4482_v28 = vpop.f32.mrb[26].mxu1 }
 0x3d3   :  { %v5304_v19 = vadd.f32 %v4402_v38, %v1356_v40  ;;  %1530 = vrot.lane.b32.xlu0 %v5302_v49, %s4651_s24  ;;  %v1372_v38 = vpop.f32.mrb[27].mxu1 }
 0x3d5   :  { %v4403_v11 = vpop.f32.mrb[52].mxu0  ;;  %1532 = vrot.lane.b32.xlu1 %v5304_v19, %s4651_s24 }
 0x3d6   :  { %v4404_v21 = vpop.f32.mrb[53].mxu0 }
 0x3d7   :  { %v4405_v54 = vadd.f32 %v4404_v21, %v4403_v11  ;;  %v4406_v29 = vpop.f32.mrb[54].mxu0 }
 0x3d8   :  { %v4407_v57 = vpop.f32.mrb[55].mxu0 }
 0x3d9   :  { %v5310_v58 = vadd.f32 %v4477_v50, %v4405_v54  ;;  %v4408_v59 = vadd.f32 %v4407_v57, %v4406_v29 }
 0x3db   :  { %v5312_v60 = vadd.f32 %v4478_v39, %v4408_v59 }
 0x3dd   :  { %v4409_v12 = vpop.f32.mrb[56].mxu0 }
 0x3de   :  { %v4410_v13 = vpop.f32.mrb[57].mxu0 }
 0x3df   :  { %v4411_v15 = vadd.f32 %v4410_v13, %v4409_v12  ;;  %v4412_v17 = vpop.f32.mrb[58].mxu0 }
 0x3e0   :  { %v4413_v27 = vpop.f32.mrb[59].mxu0 }
 0x3e1   :  { %v5362_v33 = vadd.f32 %v4411_v15, %v1369_v16 }
 0x425   :  { %v1517_v53 = vpop.permute.xlu0 %1516 }
 0x426   :  { %v1536_v4 = vsel %vm1029_vm9, %v5256_v24, %v1517_v53 }
 0x427   :  { %v1519_v61 = vpop.permute.xlu1 %1518 }
 0x428   :  { %v1537_v51 = vsel %vm1029_vm9, %v5264_v36, %v1519_v61 }
 0x43d   :  { %v1523_v40 = vpop.permute.xlu0 %1522 }
 0x43e   :  { %v1538_v6 = vsel %vm1426_vm3, %v1536_v4, %v1523_v40 }
 0x43f   :  { %v1525_v1 = vpop.permute.xlu1 %1524 }
 0x440   :  { %v1539_v39 = vsel %vm1426_vm3, %v1537_v51, %v1525_v1 }
 0x445   :  { %v1531_v18 = vpop.permute.xlu0 %1530 }
 0x446   :  { %v5320_v50 = vsel %vm1429_vm4, %v1538_v6, %v1531_v18 }
 0x447   :  { %v1533_v7 = vpop.permute.xlu1 %1532  ;;  %1648 = vadd.xlane.f32.xlu0 %v5320_v50  ;;  %v1654_v9 = vmul.f32 %v5320_v50, %v5320_v50 }
 0x448   :  { %v5325_v44 = vsel %vm1429_vm4, %v1539_v39, %v1533_v7 }
 0x449   :  { %1650 = vadd.xlane.f32.xlu1 %v5325_v44  ;;  %v1655_v10 = vmul.f32 %v5325_v44, %v5325_v44 }
 0x44b   :  { %1656 = vadd.xlane.f32.xlu0 %v1654_v9 }
 0x44f   :  { %1658 = vadd.xlane.f32.xlu0 %v1655_v10 }
 0x456   :  { %v4415_v37 = vpop.f32.mrb[60].mxu0 }
 0x457   :  { %v4416_v41 = vpop.f32.mrb[61].mxu0 }
 0x458   :  { %v4417_v11 = vadd.f32 %v4416_v41, %v4415_v37  ;;  %v4418_v54 = vpop.f32.mrb[62].mxu0 }
 0x459   :  { %v4419_v29 = vpop.f32.mrb[63].mxu0 }
 0x45a   :  { %1402 = vrot.lane.b32.xlu1 %v5229_v31, %s4655_s26  ;;  %v5370_v57 = vadd.f32 %v4481_v14, %v4417_v11  ;;  %v4420_v59 = vadd.f32 %v4419_v29, %v4418_v54 }
 0x45e   :  { %1404 = vrot.lane.b32.xlu1 %v5233_v35, %s4655_s26 }
 0x460   :  { %v4485_v61 = vpop.f32.mrb[28].mxu1 }
 0x461   :  { %v1385_v1 = vpop.f32.mrb[29].mxu1 }
 0x462   :  { %1410 = vrot.lane.b32.xlu1 %v5243_v8, %s4653_s25  ;;  %v4486_v51 = vpop.f32.mrb[30].mxu1 }
 0x463   :  { %v1388_v7 = vpop.f32.mrb[31].mxu1 }
 0x465   :  { %1434 = vrot.lane.b32.xlu0 %v5235_v26, %s4655_s26 }
 0x466   :  { %1412 = vrot.lane.b32.xlu1 %v5245_v52, %s4653_s25 }
 0x469   :  { %1440 = vrot.lane.b32.xlu0 %v5256_v24, %s4653_s25 }
 0x46a   :  { %1418 = vrot.lane.b32.xlu1 %v5256_v24, %s4651_s24 }
 0x46d   :  { %1448 = vrot.lane.b32.xlu0 %v5271_v43, %s4651_s24 }
 0x46e   :  { %1420 = vrot.lane.b32.xlu1 %v5264_v36, %s4651_s24 }
 0x471   :  { %1462 = vrot.lane.b32.xlu0 %v5239_v42, %s4655_s26  ;;  %v4414_v42 = vadd.f32 %v4413_v27, %v4412_v17 }
 0x472   :  { %1436 = vrot.lane.b32.xlu1 %v5237_v55, %s4655_s26 }
 0x473   :  { %v5368_v21 = vadd.f32 %v4414_v42, %v1372_v38 }
 0x475   :  { %1468 = vrot.lane.b32.xlu0 %v5271_v43, %s4653_s25 }
 0x476   :  { %1442 = vrot.lane.b32.xlu1 %v5264_v36, %s4653_s25 }
 0x479   :  { %1476 = vrot.lane.b32.xlu0 %v5279_v63, %s4651_s24 }
 0x47a   :  { %1450 = vrot.lane.b32.xlu1 %v5273_v56, %s4651_s24 }
 0x47d   :  { %1488 = vrot.lane.b32.xlu0 %v5256_v24, %s4655_s26  ;;  %v5376_v24 = vadd.f32 %v4482_v28, %v4420_v59 }
 0x47e   :  { %1464 = vrot.lane.b32.xlu1 %v5241_v0, %s4655_s26  ;;  %v4421_v0 = vpop.f32.mrb[64].mxu0 }
 0x47f   :  { %v4422_v53 = vpop.f32.mrb[65].mxu0 }
 0x480   :  { %v4423_v40 = vadd.f32 %v4422_v53, %v4421_v0  ;;  %v4424_v4 = vpop.f32.mrb[66].mxu0 }
 0x481   :  { %1496 = vrot.lane.b32.xlu0 %v5289_v3, %s4653_s25  ;;  %v4425_v18 = vpop.f32.mrb[67].mxu0 }
 0x482   :  { %1470 = vrot.lane.b32.xlu1 %v5273_v56, %s4653_s25  ;;  %v5386_v6 = vadd.f32 %v4423_v40, %v1385_v1  ;;  %v4426_v39 = vadd.f32 %v4425_v18, %v4424_v4 }
 0x484   :  { %v5392_v9 = vadd.f32 %v4426_v39, %v1388_v7 }
 0x485   :  { %1504 = vrot.lane.b32.xlu0 %v5294_v23, %s4651_s24 }
 0x486   :  { %1478 = vrot.lane.b32.xlu1 %v5281_v48, %s4651_s24 }
 0x489   :  { %1542 = vrot.lane.b32.xlu0 %v5279_v63, %s4655_s26  ;;  %v4427_v63 = vpop.f32.mrb[68].mxu0 }
 0x48a   :  { %1490 = vrot.lane.b32.xlu1 %v5264_v36, %s4655_s26  ;;  %v4428_v10 = vpop.f32.mrb[69].mxu0 }
 0x48b   :  { %v4429_v36 = vadd.f32 %v4428_v10, %v4427_v63  ;;  %v4430_v12 = vpop.f32.mrb[70].mxu0 }
 0x48c   :  { %v4431_v13 = vpop.f32.mrb[71].mxu0 }
 0x48d   :  { %1548 = vrot.lane.b32.xlu0 %v5302_v49, %s4653_s25  ;;  %v5398_v14 = vadd.f32 %v4485_v61, %v4429_v36  ;;  %v4432_v15 = vadd.f32 %v4431_v13, %v4430_v12 }
 0x48e   :  { %1498 = vrot.lane.b32.xlu1 %v5292_v5, %s4653_s25 }
 0x48f   :  { %v1397_v17 = vadd.f32 %v4486_v51, %v4432_v15  ;;  %v767_v15 = vld [vmem:[%s7317_s8] sm:$0xff] }
 0x492   :  { %1506 = vrot.lane.b32.xlu1 %v5296_v32, %s4651_s24 }
 0x496   :  { %1544 = vrot.lane.b32.xlu1 %v5281_v48, %s4655_s26 }
 0x49a   :  { %1550 = vrot.lane.b32.xlu1 %v5304_v19, %s4653_s25 }
 0x4d4   :  { %v1649_v27 = vpop.xlane.xlu0 %1648 }
 0x4d5   :  { %v1652_v16 = vmul.f32 0.0078125, %v1649_v27 }
 0x4d6   :  { %v1651_v42 = vpop.xlane.xlu1 %1650 }
 0x4d7   :  { %v1662_v37 = vmul.f32 %v1652_v16, %v1652_v16  ;;  %v1653_v41 = vmul.f32 0.0078125, %v1651_v42 }
 0x4d8   :  { %v1657_v28 = vpop.xlane.xlu0 %1656 }
 0x4d9   :  { %v1660_v38 = vmul.f32 0.0078125, %v1657_v28  ;;  %v1663_v59 = vmul.f32 %v1653_v41, %v1653_v41  ;;  %v768_v28 = vld [vmem:[%s7317_s8 + $0x8] sm:$0xff] }
 0x4da   :  { %v1403_v11 = vpop.permute.xlu1 %1402 }
 0x4db   :  { %v1664_v54 = vsub.f32 %v1660_v38, %v1662_v37  ;;  %v1424_v48 = vsel %vm1029_vm9, %v5227_v25, %v1403_v11  ;;  %v765_v25 = vld [vmem:[%s7316_s7] sm:$0xff] }
 0x4dc   :  { %v1659_v29 = vpop.xlane.xlu0 %1658 }
 0x4dd   :  { %v1666_v0 = vadd.f32 1e-05, %v1664_v54  ;;  %v1661_v53 = vmul.f32 0.0078125, %v1659_v29 }
 0x4de   :  { %v1405_v61 = vpop.permute.xlu1 %1404 }
 0x4df   :  { %4607 = vrsqrt.f32 %v1666_v0  ;;  %v1665_v40 = vsub.f32 %v1661_v53, %v1663_v59  ;;  %v1425_v1 = vsel %vm1029_vm9, %v5231_v34, %v1405_v61  ;;  %v766_v34 = vld [vmem:[%s7316_s7 + $0x8] sm:$0xff] }
 0x4e1   :  { %v1667_v4 = vadd.f32 1e-05, %v1665_v40 }
 0x4e2   :  { %v1411_v18 = vpop.permute.xlu1 %1410 }
 0x4e3   :  { %4609 = vrsqrt.f32 %v1667_v4  ;;  %v5407_v51 = vsel %vm1426_vm3, %v1424_v48, %v1411_v18 }
 0x4e6   :  { %v1413_v39 = vpop.permute.xlu1 %1412 }
 0x4e7   :  { %v5410_v7 = vsel %vm1426_vm3, %v1425_v1, %v1413_v39 }
 0x4e9   :  { %v4608_v63 = vpop.eup %4607 }
 0x4ea   :  { %v1670_v10 = vmul.f32 %v4608_v63, %v765_v25 }
 0x4ec   :  { %1678 = vperm.xlu1 %4503, %v1670_v10   ;;  %v1672_v13 = vmul.f32 %v1670_v10, %v1652_v16 }
 0x4ed   :  { %v4610_v36 = vpop.eup %4609 }
 0x4ee   :  { %v1671_v12 = vmul.f32 %v4610_v36, %v766_v34  ;;  %v1674_v27 = vsub.f32 %v767_v15, %v1672_v13 }
 0x4f0   :  { %1558 = vrot.lane.b32.xlu1 %v5312_v60, %s4651_s24  ;;  %1683 = vperm.xlu0 %4504, %v1671_v12   ;;  %v1673_v42 = vmul.f32 %v1671_v12, %v1653_v41  ;;  %v5486_v12 = vld [vmem:[%s7319_s9] sm:$0xff] }
 0x4f2   :  { %v1675_v37 = vsub.f32 %v768_v28, %v1673_v42 }
 0x4f4   :  { %1690 = vperm.xlu1 %4503, %v1674_v27   ;;  %1556 = vrot.lane.b32.xlu0 %v5310_v58, %s4651_s24 }
 0x4f8   :  { %1695 = vperm.xlu1 %4503, %v1675_v37   ;;  %1568 = vrot.lane.b32.xlu0 %v5294_v23, %s4655_s26 }
 0x4fc   :  { %1570 = vrot.lane.b32.xlu1 %v5296_v32, %s4655_s26  ;;  %1576 = vrot.lane.b32.xlu0 %v5362_v33, %s4653_s25  ;;  %v1419_v33 = vpop.permute.xlu1 %1418 }
 0x4fd   :  { %v1430_v10 = vsel %vm1429_vm4, %v5407_v51, %v1419_v33 }
 0x500   :  { %1578 = vrot.lane.b32.xlu1 %v5368_v21, %s4653_s25  ;;  %1584 = vrot.lane.b32.xlu0 %v5370_v57, %s4651_s24  ;;  %v1421_v21 = vpop.permute.xlu1 %1420 }
 0x501   :  { %v1431_v28 = vsel %vm1429_vm4, %v5410_v7, %v1421_v21 }
 0x504   :  { %1586 = vrot.lane.b32.xlu1 %v5376_v24, %s4651_s24  ;;  %1596 = vrot.lane.b32.xlu0 %v5302_v49, %s4655_s26 }
 0x508   :  { %1598 = vrot.lane.b32.xlu1 %v5304_v19, %s4655_s26  ;;  %1602 = vrot.lane.b32.xlu0 %v5370_v57, %s4653_s25  ;;  %v1435_v57 = vpop.permute.xlu0 %1434 }
 0x509   :  { %v1454_v15 = vsel %vm1029_vm9, %v5229_v31, %v1435_v57  ;;  %v1703_v31 = vrot.slane %v5486_v12, %v4796_v20 }
 0x50c   :  { %1604 = vrot.lane.b32.xlu1 %v5376_v24, %s4653_s25  ;;  %1610 = vrot.lane.b32.xlu0 %v5386_v6, %s4651_s24 }
 0x510   :  { %1612 = vrot.lane.b32.xlu1 %v5392_v9, %s4651_s24  ;;  %1622 = vrot.lane.b32.xlu0 %v5310_v58, %s4655_s26  ;;  %v4575_v58 = vld [vmem:[%s7318_s10 + $0x4] ss:$8 sps:$4 sm:$0xff]  }
 0x511   :  { %4251 = vmatprep.mubr.msk.bf16.mxu1 %vm490_vm8, %v4575_v58 }
 0x514   :  { %1624 = vrot.lane.b32.xlu1 %v5312_v60, %s4655_s26  ;;  %1628 = vrot.lane.b32.xlu0 %v5386_v6, %s4653_s25  ;;  %v1437_v60 = vpop.permute.xlu1 %1436  ;;  %v1441_v6 = vpop.permute.xlu0 %1440 }
 0x515   :  { %v1455_v34 = vsel %vm1029_vm9, %v5233_v35, %v1437_v60  ;;  %v1456_v51 = vsel %vm1426_vm3, %v1454_v15, %v1441_v6 }
 0x518   :  { %1630 = vrot.lane.b32.xlu1 %v5392_v9, %s4653_s25  ;;  %1636 = vrot.lane.b32.xlu0 %v5398_v14, %s4651_s24  ;;  %v1443_v24 = vpop.permute.xlu1 %1442  ;;  %v1449_v41 = vpop.permute.xlu0 %1448 }
 0x519   :  { %v1457_v27 = vsel %vm1426_vm3, %v1455_v34, %v1443_v24  ;;  %v1458_v57 = vsel %vm1429_vm4, %v1456_v51, %v1449_v41 }
 0x51c   :  { %1638 = vrot.lane.b32.xlu1 %v1397_v17, %s4651_s24  ;;  %v1451_v16 = vpop.permute.xlu1 %1450  ;;  %v1463_v38 = vpop.permute.xlu0 %1462 }
 0x51d   :  { %v1482_v35 = vsel %vm1029_vm9, %v5235_v26, %v1463_v38  ;;  %v1459_v37 = vsel %vm1429_vm4, %v1457_v27, %v1451_v16 }
 0x520   :  { %v1465_v9 = vpop.permute.xlu1 %1464  ;;  %v1469_v14 = vpop.permute.xlu0 %1468 }
 0x521   :  { %v1484_v24 = vsel %vm1426_vm3, %v1482_v35, %v1469_v14  ;;  %v1483_v26 = vsel %vm1029_vm9, %v5237_v55, %v1465_v9  ;;  %v1713_v55 = vrot.slane %v5486_v12, %v4802_v22 }
 0x524   :  { %v1471_v11 = vpop.permute.xlu1 %1470  ;;  %v1477_v17 = vpop.permute.xlu0 %1476 }
 0x525   :  { %v1485_v21 = vsel %vm1426_vm3, %v1483_v26, %v1471_v11 }
 0x528   :  { %v1479_v54 = vpop.permute.xlu1 %1478  ;;  %v1489_v29 = vpop.permute.xlu0 %1488 }
 0x529   :  { %v1510_v34 = vsel %vm1029_vm9, %v5243_v8, %v1489_v29  ;;  %v1487_v41 = vsel %vm1429_vm4, %v1485_v21, %v1479_v54 }
 0x52c   :  { %v1491_v48 = vpop.permute.xlu1 %1490  ;;  %v1497_v0 = vpop.permute.xlu0 %1496 }
 0x52d   :  { %v1511_v14 = vsel %vm1029_vm9, %v5245_v52, %v1491_v48  ;;  %v1512_v51 = vsel %vm1426_vm3, %v1510_v34, %v1497_v0 }
 0x530   :  { %v1499_v59 = vpop.permute.xlu1 %1498  ;;  %v1505_v61 = vpop.permute.xlu0 %1504 }
 0x531   :  { %v1513_v8 = vsel %vm1426_vm3, %v1511_v14, %v1499_v59 }
 0x534   :  { %v1507_v53 = vpop.permute.xlu1 %1506  ;;  %v1543_v1 = vpop.permute.xlu0 %1542 }
 0x538   :  { %v5467_v40 = vpop.permute.xlu1 %1544  ;;  %v1549_v18 = vpop.permute.xlu0 %1548 }
 0x53c   :  { %v5469_v4 = vpop.permute.xlu1 %1550 }
 0x56b   :  { %v5471_v39 = vpop.permute.xlu1 %1678 }
 0x56c   :  { %v1686_v42 = vmul.f32 %v5471_v39, %v1430_v10  ;;  %v1706_v38 = vmul.f32 %v5471_v39, %v1458_v57 }
 0x56f   :  { %v5473_v25 = vpop.permute.xlu1 %1558  ;;  %v5475_v63 = vpop.permute.xlu0 %1683 }
 0x570   :  { %v1687_v33 = vmul.f32 %v5475_v63, %v1431_v28  ;;  %v1707_v60 = vmul.f32 %v5475_v63, %v1459_v37  ;;  %v1717_v27 = vmul.f32 %v5475_v63, %v1487_v41  ;;  %v1514_v37 = vsel %vm1429_vm4, %v1512_v51, %v1505_v61 }
 0x573   :  { %v5481_v36 = vpop.permute.xlu1 %1690  ;;  %v1557_v13 = vpop.permute.xlu0 %1556 }
 0x574   :  { %v1698_v58 = vadd.f32 %v5481_v36, %v1686_v42  ;;  %v1708_v11 = vadd.f32 %v1706_v38, %v5481_v36  ;;  %v1486_v42 = vsel %vm1429_vm4, %v1484_v24, %v1477_v17  ;;  %v1562_v17 = vsel %vm1029_vm9, %v5271_v43, %v1543_v1 }
 0x575   :  { %v1716_v52 = vmul.f32 %v5471_v39, %v1486_v42  ;;  %v1563_v1 = vsel %vm1029_vm9, %v5273_v56, %v5467_v40  ;;  %v1747_v42 = vrot.slane %v5486_v12, %v5040_v46 }
 0x576   :  { %v1704_v9 = vmul.f32 %v1703_v31, %v1698_v58  ;;  %v1723_v58 = vrot.slane %v5486_v12, %v4834_v45  ;;  %v1714_v59 = vmul.f32 %v1713_v55, %v1708_v11 }
 0x577   :  { %v5507_v6 = vpop.permute.xlu1 %1695  ;;  %v1569_v7 = vpop.permute.xlu0 %1568  ;;  %v1718_v0 = vadd.f32 %v1716_v52, %v5481_v36 }
 0x578   :  { %v1699_v16 = vadd.f32 %v5507_v6, %v1687_v33  ;;  %v1709_v10 = vadd.f32 %v1707_v60, %v5507_v6  ;;  %v1719_v48 = vadd.f32 %v1717_v27, %v5507_v6  ;;  %v1515_v33 = vsel %vm1429_vm4, %v1513_v8, %v1507_v53 }
 0x579   :  { %v1564_v60 = vsel %vm1426_vm3, %v1562_v17, %v1549_v18  ;;  %v1726_v53 = vmul.f32 %v5471_v39, %v1514_v37  ;;  %v1724_v18 = vmul.f32 %v1723_v58, %v1718_v0 }
 0x57a   :  { %v1705_v15 = vmul.f32 %v1703_v31, %v1699_v16  ;;  %v1715_v28 = vmul.f32 %v1713_v55, %v1709_v10  ;;  %v1727_v31 = vmul.f32 %v5475_v63, %v1515_v33  ;;  %v1566_v61 = vsel %vm1429_vm4, %v1564_v60, %v1557_v13 }
 0x57b   :  { %v1571_v29 = vpop.permute.xlu1 %1570  ;;  %v1577_v54 = vpop.permute.xlu0 %1576  ;;  %v1725_v21 = vmul.f32 %v1723_v58, %v1719_v48  ;;  %v1565_v16 = vsel %vm1426_vm3, %v1563_v1, %v5469_v4  ;;  %v1728_v38 = vadd.f32 %v1726_v53, %v5481_v36  ;;  %v1733_v10 = vrot.slane %v5486_v12, %v4839_v47 }
 0x57c   :  { %v1806_v35 = vpack.c.bf16 %v1705_v15, %v1704_v9  ;;  %v1807_v26 = vpack.c.bf16 %v1715_v28, %v1714_v59  ;;  %v1729_v43 = vadd.f32 %v1727_v31, %v5507_v6  ;;  %v1567_v13 = vsel %vm1429_vm4, %v1565_v16, %v5473_v25 }
 0x57d   :  { %v1740_v34 = vmul.f32 %v5471_v39, %v1566_v61  ;;  %v1591_v41 = vsel %vm1029_vm9, %v5292_v5, %v1571_v29  ;;  %v1808_v4 = vpack.c.bf16 %v1725_v21, %v1724_v18  ;;  %v1590_v9 = vsel %vm1029_vm9, %v5289_v3, %v1569_v7 }
 0x57e   :  { %1912 = vmatpush1.bf16.msra.mxu1 %v1806_v35  ;;  %v1735_v55 = vmul.f32 %v1733_v10, %v1729_v43  ;;  %v1592_v25 = vsel %vm1426_vm3, %v1590_v9, %v1577_v54  ;;  %v1734_v11 = vmul.f32 %v1733_v10, %v1728_v38  ;;  %v1737_v5 = vmul.f32 %v5475_v63, %v5325_v44 }
 0x57f   :  { %v1579_v57 = vpop.permute.xlu1 %1578  ;;  %v1585_v24 = vpop.permute.xlu0 %1584  ;;  %1913 = vmatprep.subr.bf16.mxu1 %v7331_v2  ;;  %v1741_v27 = vmul.f32 %v5475_v63, %v1567_v13  ;;  %v1742_v51 = vadd.f32 %v1740_v34, %v5481_v36  ;;  %v1736_v7 = vmul.f32 %v5471_v39, %v5320_v50  ;;  %v1767_v18 = vrot.slane %v5486_v12, %v5070_v30 }
 0x580   :  { %v1593_v40 = vsel %vm1426_vm3, %v1591_v41, %v1579_v57  ;;  %v1594_v8 = vsel %vm1429_vm4, %v1592_v25, %v1585_v24  ;;  %v1809_v35 = vpack.c.bf16 %v1735_v55, %v1734_v11  ;;  %v1739_v44 = vadd.f32 %v1737_v5, %v5507_v6 }
 0x581   :  { %v1743_v28 = vadd.f32 %v1741_v27, %v5507_v6  ;;  %v1750_v52 = vmul.f32 %v5471_v39, %v1594_v8  ;;  %v1738_v37 = vadd.f32 %v1736_v7, %v5481_v36  ;;  %v1748_v33 = vmul.f32 %v1747_v42, %v1742_v51 }
 0x582   :  { %1914 = vmatpush1.bf16.msra.mxu1 %v1807_v26 }
 0x583   :  { %v1587_v14 = vpop.permute.xlu1 %1586  ;;  %v1597_v56 = vpop.permute.xlu0 %1596  ;;  %1915 = vmatprep.subr.bf16.mxu1 %v7331_v2  ;;  %v1810_v31 = vpack.c.bf16 %v1739_v44, %v1738_v37  ;;  %v1749_v60 = vmul.f32 %v1747_v42, %v1743_v28  ;;  %v1752_v24 = vadd.f32 %v1750_v52, %v5481_v36  ;;  %v4582_v44 = vld [vmem:[%s7318_s10 + $0x34] ss:$8 sps:$4 sm:$0xff]   ;;  %v4584_v28 = vld [vmem:[%s7318_s10 + $0x30] ss:$8 sps:$4 sm:$0xff]   ;;  %v4585_v52 = vld [vmem:[%s7318_s10 + $0x44] ss:$8 sps:$4 sm:$0xff]  }
 0x584   :  { %v1595_v15 = vsel %vm1429_vm4, %v1593_v40, %v1587_v14  ;;  %v1616_v48 = vsel %vm1029_vm9, %v5294_v23, %v1597_v56  ;;  %v1757_v23 = vrot.slane %v5486_v12, %v5055_v62  ;;  %v4588_v37 = vld [vmem:[%s7318_s10 + $0x54] ss:$8 sps:$4 sm:$0xff]  }
 0x585   :  { %v1751_v54 = vmul.f32 %v5475_v63, %v1595_v15  ;;  %v1811_v16 = vpack.c.bf16 %v1749_v60, %v1748_v33  ;;  %v4590_v33 = vld [vmem:[%s7318_s10 + $0x50] ss:$8 sps:$4 sm:$0xff]  }
 0x586   :  { %1916 = vmatpush1.bf16.msra.mxu1 %v1808_v4  ;;  %v1758_v13 = vmul.f32 %v1757_v23, %v1752_v24 }
 0x587   :  { %v1599_v29 = vpop.permute.xlu1 %1598  ;;  %v1603_v3 = vpop.permute.xlu0 %1602  ;;  %1917 = vmatprep.subr.bf16.mxu1 %v7331_v2  ;;  %v1753_v59 = vadd.f32 %v1751_v54, %v5507_v6  ;;  %v4573_v54 = vld [vmem:[%s7318_s10] ss:$8 sps:$4 sm:$0xff]  }
 0x588   :  { %v1618_v58 = vsel %vm1426_vm3, %v1616_v48, %v1603_v3  ;;  %v1617_v53 = vsel %vm1029_vm9, %v5296_v32, %v1599_v29  ;;  %v4234_v29 = vld [vmem:[%s7319_s9 + $0x8] ss:$0 sm:$0xff] }
 0x589   :  { %v1759_v43 = vmul.f32 %v1757_v23, %v1753_v59  ;;  %v4587_v48 = vld [vmem:[%s7318_s10 + $0x40] ss:$8 sps:$4 sm:$0xff]   ;;  %v4596_v59 = vld [vmem:[%s7318_s10 + $0x70] ss:$8 sps:$4 sm:$0xff]  }
 0x58a   :  { %1918 = vmatpush1.bf16.msra.mxu1 %v1809_v35  ;;  %v4581_v35 = vld [vmem:[%s7318_s10 + $0x20] ss:$8 sps:$4 sm:$0xff]  }
 0x58b   :  { %v1605_v17 = vpop.permute.xlu1 %1604  ;;  %v1611_v50 = vpop.permute.xlu0 %1610  ;;  %1919 = vmatprep.subr.bf16.mxu1 %v7331_v2  ;;  %v1812_v14 = vpack.c.bf16 %v1759_v43, %v1758_v13 }
 0x58c   :  { %v1620_v0 = vsel %vm1429_vm4, %v1618_v58, %v1611_v50  ;;  %v1619_v61 = vsel %vm1426_vm3, %v1617_v53, %v1605_v17  ;;  %v4591_v58 = vld [vmem:[%s7318_s10 + $0x64] ss:$8 sps:$4 sm:$0xff]   ;;  %v4593_v17 = vld [vmem:[%s7318_s10 + $0x60] ss:$8 sps:$4 sm:$0xff]   ;;  %v4594_v50 = vld [vmem:[%s7318_s10 + $0x74] ss:$8 sps:$4 sm:$0xff]  }
 0x58d   :  { %v1760_v57 = vmul.f32 %v5471_v39, %v1620_v0 }
 0x58e   :  { %1920 = vmatpush1.bf16.msra.mxu1 %v1810_v31 }
 0x58f   :  { %v1613_v26 = vpop.permute.xlu1 %1612  ;;  %v1623_v21 = vpop.permute.xlu0 %1622  ;;  %1921 = vmatprep.subr.bf16.mxu1 %v7331_v2  ;;  %v1762_v38 = vadd.f32 %v1760_v57, %v5481_v36 }
 0x590   :  { %v1621_v1 = vsel %vm1429_vm4, %v1619_v61, %v1613_v26  ;;  %v1642_v4 = vsel %vm1029_vm9, %v5302_v49, %v1623_v21 }
 0x591   :  { %v1761_v10 = vmul.f32 %v5475_v63, %v1621_v1  ;;  %v1768_v56 = vmul.f32 %v1767_v18, %v1762_v38 }
 0x592   :  { %1922 = vmatpush1.bf16.msra.mxu1 %v1811_v16 }
 0x593   :  { %v1763_v32 = vadd.f32 %v1761_v10, %v5507_v6  ;;  %v1625_v34 = vpop.permute.xlu1 %1624  ;;  %v1629_v41 = vpop.permute.xlu0 %1628  ;;  %1923 = vmatprep.subr.bf16.mxu1 %v7331_v2 }
 0x594   :  { %v1644_v12 = vsel %vm1426_vm3, %v1642_v4, %v1629_v41  ;;  %v1643_v5 = vsel %vm1029_vm9, %v5304_v19, %v1625_v34 }
 0x595   :  { %v1769_v40 = vmul.f32 %v1767_v18, %v1763_v32 }
 0x596   :  { %1924 = vmatpush1.bf16.msra.mxu1 %v1812_v14 }
 0x597   :  { %v1631_v55 = vpop.permute.xlu1 %1630  ;;  %v1637_v9 = vpop.permute.xlu0 %1636  ;;  %1925 = vmatprep.subr.bf16.mxu1 %v7331_v2  ;;  %v1813_v15 = vpack.c.bf16 %v1769_v40, %v1768_v56 }
 0x598   :  { %v1646_v25 = vsel %vm1429_vm4, %v1644_v12, %v1637_v9  ;;  %v1645_v27 = vsel %vm1426_vm3, %v1643_v5, %v1631_v55 }
 0x599   :  { %v1770_v11 = vmul.f32 %v5471_v39, %v1646_v25 }
 0x59a   :  { %1926 = vmatpush1.bf16.msra.mxu1 %v1813_v15 }
 0x59b   :  { %v1639_v42 = vpop.permute.xlu1 %1638  ;;  %1927 = vmatprep.subr.bf16.mxu1 %v7331_v2  ;;  %v1772_v51 = vadd.f32 %v1770_v11, %v5481_v36  ;;  %v4576_v36 = vld [vmem:[%s7318_s10 + $0x14] ss:$8 sps:$4 sm:$0xff]  }
 0x59c   :  { %v1647_v49 = vsel %vm1429_vm4, %v1645_v27, %v1639_v42 }
 0x59d   :  { %v1771_v8 = vmul.f32 %v5475_v63, %v1647_v49  ;;  %v1778_v3 = vmul.f32 %v4234_v29, %v1772_v51  ;;  %v4578_v63 = vld [vmem:[%s7318_s10 + $0x10] ss:$8 sps:$4 sm:$0xff]  }
 0x59f   :  { %v1773_v39 = vadd.f32 %v1771_v8, %v5507_v6  ;;  %v4579_v6 = vld [vmem:[%s7318_s10 + $0x24] ss:$8 sps:$4 sm:$0xff]  }
 0x5a1   :  { %v1779_v19 = vmul.f32 %v4234_v29, %v1773_v39 }
 0x5a3   :  { %v1814_v7 = vpack.c.bf16 %v1779_v19, %v1778_v3 }
 0x5a5   :  { %1928 = vmatpush1.bf16.msra.mxu1 %v1814_v7 }
 0x5a8   :  { %1944 = vmatmul.mubr.bf16.vlgmr.msra.gmra.mrb[32].mxu1 %v4573_v54 }
 0x5a9   :  { %4252 = vmatprep.mubr.msk.bf16.mxu1 %vm490_vm8, %v4576_v36 }
 0x5b0   :  { %1952 = vmatmul.mubr.bf16.gmra.mrb[36].mxu1 %v4578_v63 }
 0x5b1   :  { %4253 = vmatprep.mubr.msk.bf16.mxu1 %vm490_vm8, %v4579_v6 }
 0x5b8   :  { %1960 = vmatmul.mubr.bf16.gmra.mrb[40].mxu1 %v4581_v35 }
 0x5b9   :  { %4254 = vmatprep.mubr.msk.bf16.mxu1 %vm490_vm8, %v4582_v44 }
 0x5c0   :  { %1968 = vmatmul.mubr.bf16.gmra.mrb[44].mxu1 %v4584_v28  ;;  %v1796_v28 = vld [vmem:[%s7320_s11] sm:$0xff] }
 0x5c1   :  { %4255 = vmatprep.mubr.msk.bf16.mxu1 %vm490_vm8, %v4585_v52 }
 0x5c8   :  { %1976 = vmatmul.mubr.bf16.gmra.mrb[48].mxu1 %v4587_v48 }
 0x5c9   :  { %4256 = vmatprep.mubr.msk.bf16.mxu1 %vm490_vm8, %v4588_v37  ;;  %v1797_v37 = vld [vmem:[%s7321_s12] sm:$0xff] }
 0x5d0   :  { %1984 = vmatmul.mubr.bf16.gmra.mrb[52].mxu1 %v4590_v33 }
 0x5d1   :  { %4257 = vmatprep.mubr.msk.bf16.mxu1 %vm490_vm8, %v4591_v58 }
 0x5d8   :  { %1992 = vmatmul.mubr.bf16.gmra.mrb[56].mxu1 %v4593_v17 }
 0x5d9   :  { %4258 = vmatprep.mubr.msk.bf16.mxu1 %vm490_vm8, %v4594_v50 }
 0x5e0   :  { %2000 = vmatmul.mubr.bf16.gmra.mrb[60].mxu1 %v4596_v59  ;;  %v5716_v59 = vld [vmem:[%s7323_s13 + $0x8] sm:$0xff] }
 0x5e1   :  { %2412 = vmatprep.mubr.bf16.mxu1 %v7331_v2 }
 0x67b   :  { %v5665_v0 = vpop.f32.mrb[32].mxu1 }
 0x67c   :  { %v1947_v31 = vpop.f32.mrb[33].mxu1 }
 0x67d   :  { %v5667_v60 = vpop.f32.mrb[34].mxu1  ;;  %v5721_v31 = vld [vmem:[%s7323_s13 + $0x18] sm:$0xff] }
 0x67e   :  { %v1950_v57 = vpop.f32.mrb[35].mxu1 }
 0x67f   :  { %v5726_v57 = vld [vmem:[%s7323_s13] sm:$0xff] }
 0x683   :  { %v5669_v23 = vpop.f32.mrb[36].mxu1 }
 0x684   :  { %v1955_v24 = vpop.f32.mrb[37].mxu1 }
 0x685   :  { %v5671_v53 = vpop.f32.mrb[38].mxu1  ;;  %v5731_v24 = vld [vmem:[%s7323_s13 + $0x10] sm:$0xff] }
 0x686   :  { %v1958_v61 = vpop.f32.mrb[39].mxu1 }
 0x687   :  { %v2056_v61 = vrot.slane %v5716_v59, %v4796_v20 }
 0x68b   :  { %v5673_v26 = vpop.f32.mrb[40].mxu1 }
 0x68c   :  { %v1963_v21 = vpop.f32.mrb[41].mxu1 }
 0x68d   :  { %v5675_v43 = vpop.f32.mrb[42].mxu1  ;;  %v2080_v21 = vrot.slane %v5716_v59, %v4802_v22 }
 0x68e   :  { %v1966_v1 = vpop.f32.mrb[43].mxu1  ;;  %v2014_v18 = vmul.f32 %v5675_v43, %v5675_v43 }
 0x68f   :  { %v2064_v1 = vrot.slane %v5721_v31, %v4796_v20 }
 0x693   :  { %v5677_v16 = vpop.f32.mrb[44].mxu1 }
 0x694   :  { %v2008_v38 = vadd.f32 %v5677_v16, %v5675_v43  ;;  %v2015_v10 = vmul.f32 %v5677_v16, %v5677_v16  ;;  %v1971_v13 = vpop.f32.mrb[45].mxu1 }
 0x695   :  { %v5685_v32 = vpop.f32.mrb[46].mxu1  ;;  %v2060_v13 = vrot.slane %v5731_v24, %v4796_v20 }
 0x696   :  { %v2018_v34 = vadd.f32 %v2015_v10, %v2014_v18  ;;  %v1974_v41 = vpop.f32.mrb[47].mxu1  ;;  %v2088_v18 = vrot.slane %v5721_v31, %v4802_v22  ;;  %v2076_v10 = vrot.slane %v5726_v57, %v4802_v22 }
 0x697   :  { %v2104_v41 = vrot.slane %v5716_v59, %v4834_v45 }
 0x69b   :  { %v5687_v14 = vpop.f32.mrb[48].mxu1 }
 0x69c   :  { %v1979_v56 = vpop.f32.mrb[49].mxu1 }
 0x69d   :  { %v5689_v40 = vpop.f32.mrb[50].mxu1  ;;  %v2128_v56 = vrot.slane %v5716_v59, %v4839_v47 }
 0x69e   :  { %v2009_v4 = vadd.f32 %v2008_v38, %v5689_v40  ;;  %v2016_v12 = vmul.f32 %v5689_v40, %v5689_v40  ;;  %v1982_v55 = vpop.f32.mrb[51].mxu1  ;;  %v2052_v38 = vrot.slane %v5726_v57, %v4796_v20 }
 0x69f   :  { %v2100_v55 = vrot.slane %v5726_v57, %v4834_v45 }
 0x6a0   :  { %v2019_v9 = vadd.f32 %v2018_v34, %v2016_v12  ;;  %v2084_v34 = vrot.slane %v5731_v24, %v4802_v22  ;;  %v2136_v12 = vrot.slane %v5721_v31, %v4839_v47 }
 0x6a3   :  { %v5694_v15 = vpop.f32.mrb[52].mxu1 }
 0x6a4   :  { %v2010_v25 = vadd.f32 %v2009_v4, %v5694_v15  ;;  %v2017_v11 = vmul.f32 %v5694_v15, %v5694_v15  ;;  %v1987_v5 = vpop.f32.mrb[53].mxu1  ;;  %v2112_v4 = vrot.slane %v5721_v31, %v4834_v45 }
 0x6a5   :  { %v5699_v27 = vpop.f32.mrb[54].mxu1  ;;  %v2152_v5 = vrot.slane %v5716_v59, %v5040_v46 }
 0x6a6   :  { %2011 = vadd.xlane.f32.xlu0 %v2010_v25  ;;  %v1990_v42 = vpop.f32.mrb[55].mxu1  ;;  %v2020_v49 = vadd.f32 %v2019_v9, %v2017_v11  ;;  %v2124_v9 = vrot.slane %v5726_v57, %v4839_v47  ;;  %v2108_v25 = vrot.slane %v5731_v24, %v4834_v45  ;;  %v2132_v11 = vrot.slane %v5731_v24, %v4839_v47 }
 0x6a7   :  { %v2160_v42 = vrot.slane %v5721_v31, %v5040_v46 }
 0x6a8   :  { %2021 = vadd.xlane.f32.xlu1 %v2020_v49  ;;  %v2148_v49 = vrot.slane %v5726_v57, %v5040_v46 }
 0x6ab   :  { %v5701_v51 = vpop.f32.mrb[56].mxu1 }
 0x6ac   :  { %v1995_v8 = vpop.f32.mrb[57].mxu1 }
 0x6ad   :  { %v5703_v29 = vpop.f32.mrb[58].mxu1 }
 0x6ae   :  { %v1998_v39 = vpop.f32.mrb[59].mxu1 }
 0x6af   :  { %v2176_v39 = vrot.slane %v5716_v59, %v5055_v62 }
 0x6b3   :  { %v5705_v3 = vpop.f32.mrb[60].mxu1 }
 0x6b4   :  { %v2003_v19 = vpop.f32.mrb[61].mxu1 }
 0x6b5   :  { %v2004_v33 = vpop.f32.mrb[62].mxu1 }
 0x6b6   :  { %v2006_v17 = vpop.f32.mrb[63].mxu1 }
 0x733   :  { %v2012_v7 = vpop.xlane.xlu0 %2011 }
 0x734   :  { %v2013_v54 = vmul.f32 0.001953125, %v2012_v7 }
 0x735   :  { %v2022_v36 = vpop.xlane.xlu1 %2021 }
 0x736   :  { %v2024_v63 = vmul.f32 %v2013_v54, %v2013_v54  ;;  %v2023_v6 = vmul.f32 0.001953125, %v2022_v36 }
 0x738   :  { %v2025_v35 = vsub.f32 %v2023_v6, %v2024_v63 }
 0x73a   :  { %v2026_v44 = vadd.f32 1e-05, %v2025_v35 }
 0x73c   :  { %4611 = vrsqrt.f32 %v2026_v44 }
 0x746   :  { %v4612_v52 = vpop.eup %4611 }
 0x747   :  { %v2028_v48 = vmul.f32 %v4612_v52, %v1796_v28 }
 0x749   :  { %2033 = vperm.xlu0 %4504, %v2028_v48   ;;  %v2029_v58 = vmul.f32 %v2028_v48, %v2013_v54 }
 0x74b   :  { %v2030_v50 = vsub.f32 %v1797_v37, %v2029_v58 }
 0x74d   :  { %2042 = vperm.xlu1 %4503, %v2030_v50  }
 0x7c8   :  { %v2034_v36 = vpop.permute.xlu0 %2033 }
 0x7c9   :  { %v5789_v28 = vmul.f32 %v2034_v36, %v2004_v33  ;;  %v2037_v52 = vmul.f32 %v2034_v36, %v5667_v60  ;;  %v2069_v48 = vmul.f32 %v2034_v36, %v5669_v23  ;;  %v2039_v37 = vmul.f32 %v2034_v36, %v5675_v43 }
 0x7ca   :  { %v2070_v58 = vmul.f32 %v2034_v36, %v5677_v16  ;;  %v2036_v17 = vmul.f32 %v2034_v36, %v5665_v0  ;;  %v2038_v50 = vmul.f32 %v2034_v36, %v5673_v26  ;;  %v2093_v2 = vmul.f32 %v2034_v36, %v5671_v53 }
 0x7cb   :  { %v2094_v35 = vmul.f32 %v2034_v36, %v5685_v32  ;;  %v2118_v44 = vmul.f32 %v2034_v36, %v5689_v40  ;;  %v2117_v33 = vmul.f32 %v2034_v36, %v5687_v14  ;;  %v2141_v60 = vmul.f32 %v2034_v36, %v5694_v15 }
 0x7cc   :  { %v5802_v54 = vpop.permute.xlu1 %2042  ;;  %v2143_v23 = vmul.f32 %v2034_v36, %v5699_v27  ;;  %v2166_v43 = vmul.f32 %v2034_v36, %v5703_v29  ;;  %v2189_v0 = vmul.f32 %v2034_v36, %v5705_v3  ;;  %v5808_v26 = vmul.f32 %v2034_v36, %v5701_v51 }
 0x7cd   :  { %v2046_v53 = vadd.f32 %v5802_v54, %v2037_v52  ;;  %v2071_v16 = vadd.f32 %v2069_v48, %v5802_v54  ;;  %v5813_v32 = vadd.f32 %v5802_v54, %v2039_v37  ;;  %v2072_v14 = vadd.f32 %v2070_v58, %v5802_v54 }
 0x7ce   :  { %v2045_v40 = vadd.f32 %v5802_v54, %v2036_v17  ;;  %v2047_v15 = vadd.f32 %v5802_v54, %v2038_v50  ;;  %v2095_v27 = vadd.f32 %v2093_v2, %v5802_v54  ;;  %v2096_v29 = vadd.f32 %v2094_v35, %v5802_v54 }
 0x7cf   :  { %v2066_v3 = vmul.f32 %v2056_v61, %v2046_v53  ;;  %v2090_v51 = vmul.f32 %v2080_v21, %v2071_v16  ;;  %v2068_v36 = vmul.f32 %v2064_v1, %v5813_v32  ;;  %v2092_v52 = vmul.f32 %v2088_v18, %v2072_v14 }
 0x7d0   :  { %v2065_v6 = vmul.f32 %v2052_v38, %v2045_v40  ;;  %v2089_v48 = vmul.f32 %v2076_v10, %v2046_v53  ;;  %v2067_v63 = vmul.f32 %v2060_v13, %v2047_v15  ;;  %v2091_v37 = vmul.f32 %v2084_v34, %v5813_v32  ;;  %v4262_v40 = vld [vmem:[%s7323_s13 + $0x38] ss:$0 sm:$0xff] }
 0x7d1   :  { %v2284_v7 = vpack.c.bf16 %v2090_v51, %v2066_v3  ;;  %v2286_v58 = vpack.c.bf16 %v2092_v52, %v2068_v36  ;;  %v2114_v19 = vmul.f32 %v2104_v41, %v2095_v27  ;;  %v2138_v17 = vmul.f32 %v2128_v56, %v5813_v32 }
 0x7d2   :  { %v2283_v50 = vpack.c.bf16 %v2089_v48, %v2065_v6  ;;  %v2285_v8 = vpack.c.bf16 %v2091_v37, %v2067_v63  ;;  %v2116_v2 = vmul.f32 %v2112_v4, %v2096_v29  ;;  %v2120_v35 = vadd.f32 %v2118_v44, %v5802_v54  ;;  %v4260_v6 = vld [vmem:[%s7323_s13 + $0x28] ss:$0 sm:$0xff] }
 0x7d3   :  { %2380 = vmatprep.subr.bf16.mxu1 %v2284_v7  ;;  %2493 = vmatprep.subr.bf16.mxu0 %v2286_v58  ;;  %v2288_v61 = vpack.c.bf16 %v2138_v17, %v2114_v19  ;;  %v2113_v21 = vmul.f32 %v2100_v55, %v2071_v16  ;;  %v2137_v1 = vmul.f32 %v2124_v9, %v2047_v15  ;;  %v4261_v15 = vld [vmem:[%s7323_s13 + $0x30] ss:$0 sm:$0xff] }
 0x7d4   :  { %2381 = vmatpush1.bf16.msra.mxu1 %v2283_v50  ;;  %2494 = vmatpush1.bf16.msra.mxu0 %v2285_v8  ;;  %v2140_v18 = vmul.f32 %v2136_v12, %v2120_v35  ;;  %v2115_v38 = vmul.f32 %v2108_v25, %v2072_v14  ;;  %v2119_v10 = vadd.f32 %v2117_v33, %v5802_v54 }
 0x7d5   :  { %2382 = vmatprep.subr.bf16.mxu1 %v2288_v61  ;;  %v2287_v13 = vpack.c.bf16 %v2137_v1, %v2113_v21  ;;  %v2162_v34 = vmul.f32 %v2152_v5, %v2096_v29  ;;  %v2142_v41 = vadd.f32 %v2141_v60, %v5802_v54  ;;  %v2144_v56 = vadd.f32 %v2143_v23, %v5802_v54  ;;  %v4597_v61 = vld [vmem:[%s7322_s14] sm:$0xff]  }
 0x7d6   :  { %v2290_v4 = vpack.c.bf16 %v2140_v18, %v2116_v2  ;;  %v2139_v12 = vmul.f32 %v2132_v11, %v2119_v10  ;;  %v2161_v55 = vmul.f32 %v2148_v49, %v2072_v14  ;;  %v2186_v9 = vmul.f32 %v2176_v39, %v2120_v35  ;;  %v4598_v18 = vld [vmem:[%s7322_s14 + $0x8] sm:$0xff]  }
 0x7d7   :  { %v2292_v25 = vpack.c.bf16 %v2162_v34, %v2072_v14  ;;  %v2164_v5 = vmul.f32 %v2160_v42, %v2144_v56  ;;  %v7367_v8 = vrot.slane %v5731_v24, %v5040_v46  ;;  %v7368_v11 = vrot.slane %v5716_v59, %v5070_v30  ;;  %v4259_v59 = vld [vmem:[%s7323_s13 + $0x20] ss:$0 sm:$0xff]  ;;  %v4602_v34 = vld [vmem:[%s7322_s14 + $0x28] sm:$0xff]  }
 0x7d8   :  { %2495 = vmatprep.subr.bf16.mxu0 %v2290_v4  ;;  %2383 = vmatpush1.bf16.msra.mxu1 %v2287_v13  ;;  %v2289_v49 = vpack.c.bf16 %v2139_v12, %v2115_v38  ;;  %v2291_v63 = vpack.c.bf16 %v2161_v55, %v5813_v32  ;;  %v2168_v39 = vadd.f32 %v2166_v43, %v5802_v54  ;;  %v7375_v1 = vmov 0   ;;  %v4599_v38 = vld [vmem:[%s7322_s14 + $0x10] sm:$0xff]   ;;  %v4601_v13 = vld [vmem:[%s7322_s14 + $0x20] sm:$0xff]  }
 0x7d9   :  { %v2163_v19 = vmul.f32 %v7367_v8, %v2142_v41  ;;  %v2208_v7 = vmul.f32 %v7368_v11, %v2142_v41  ;;  %2384 = vmatprep.subr.bf16.mxu1 %v2292_v25  ;;  %v2294_v42 = vpack.c.bf16 %v2164_v5, %v2142_v41  ;;  %v2190_v60 = vadd.f32 %v2189_v0, %v5802_v54 }
 0x7da   :  { %2496 = vmatpush1.bf16.msra.mxu0 %v2289_v49  ;;  %v7369_v23 = vrot.slane %v5721_v31, %v5055_v62  ;;  %v7370_v43 = vrot.slane %v5726_v57, %v5055_v62  ;;  %v7371_v32 = vrot.slane %v5726_v57, %v5070_v30  ;;  %v2167_v0 = vadd.f32 %v5808_v26, %v5802_v54 }
 0x7db   :  { %v2293_v44 = vpack.c.bf16 %v2163_v19, %v2120_v35  ;;  %v2296_v33 = vpack.c.bf16 %v2208_v7, %v2186_v9  ;;  %2497 = vmatprep.subr.bf16.mxu0 %v2294_v42  ;;  %v7372_v27 = vrot.slane %v5721_v31, %v5070_v30  ;;  %v7373_v57 = vrot.slane %v5731_v24, %v5070_v30 }
 0x7dc   :  { %v2188_v53 = vmul.f32 %v7369_v23, %v2168_v39  ;;  %v2185_v16 = vmul.f32 %v7370_v43, %v2119_v10  ;;  %v2207_v14 = vmul.f32 %v7371_v32, %v2120_v35  ;;  %v2230_v51 = vmul.f32 %v4260_v6, %v2144_v56  ;;  %2385 = vmatpush1.bf16.msra.mxu1 %v2291_v63  ;;  %v4600_v10 = vld [vmem:[%s7322_s14 + $0x18] sm:$0xff]  }
 0x7dd   :  { %v2210_v29 = vmul.f32 %v7372_v27, %v2190_v60  ;;  %v2209_v3 = vmul.f32 %v7373_v57, %v2168_v39  ;;  %v2212_v26 = vadd.f32 %v5789_v28, %v5802_v54  ;;  %v7374_v52 = vrot.slane %v5731_v24, %v5055_v62  ;;  %2386 = vmatprep.subr.bf16.mxu1 %v2296_v33  ;;  %v4604_v56 = vld [vmem:[%s7322_s14 + $0x38] sm:$0xff]  }
 0x7de   :  { %v2295_v36 = vpack.c.bf16 %v2207_v14, %v2185_v16  ;;  %v2229_v37 = vmul.f32 %v4259_v59, %v2142_v41  ;;  %v2231_v31 = vmul.f32 %v4261_v15, %v2190_v60  ;;  %2498 = vmatpush1.bf16.msra.mxu0 %v2293_v44  ;;  %v2300_v2 = vpack.c.bf16 %v2230_v51, %v2230_v51  ;;  %v4603_v41 = vld [vmem:[%s7322_s14 + $0x30] sm:$0xff]  }
 0x7df   :  { %v2187_v48 = vmul.f32 %v7374_v52, %v2167_v0  ;;  %v2298_v58 = vpack.c.bf16 %v2210_v29, %v2188_v53  ;;  %v2232_v17 = vmul.f32 %v4262_v40, %v2212_v26 }
 0x7e0   :  { %v2299_v35 = vpack.c.bf16 %v2229_v37, %v2229_v37  ;;  %2387 = vmatpush1.bf16.msra.mxu1 %v2295_v36  ;;  %v2301_v28 = vpack.c.bf16 %v2231_v31, %v2231_v31 }
 0x7e1   :  { %v2297_v50 = vpack.c.bf16 %v2209_v3, %v2187_v48  ;;  %2499 = vmatprep.subr.bf16.mxu0 %v2298_v58  ;;  %4271 = vmatprep.subr.msk.bf16.mxu1 %vm113_vm0, %v2300_v2  ;;  %v2302_v54 = vpack.c.bf16 %v2232_v17, %v2232_v17 }
 0x7e2   :  { %v2369_v24 = vsel %vm113_vm0, %v2299_v35, 0  ;;  %v2375_v21 = vsel %vm113_vm0, %v2301_v28, 0 }
 0x7e3   :  { %2500 = vmatpush1.bf16.msra.mxu0 %v2297_v50 }
 0x7e4   :  { %4280 = vmatprep.subr.msk.bf16.mxu0 %vm113_vm0, %v2302_v54  ;;  %2389 = vmatpush1.bf16.msra.mxu1 %v2369_v24 }
 0x7e7   :  { %2502 = vmatpush1.bf16.msra.mxu0 %v2375_v21  ;;  %4272 = vmatmul.mubr.msk.bf16.vlgmr.msra.gmra.mrb[64].mxu1 %vm2343_vm5, %v4597_v61 }
 0x7e8   :  { %2422 = vmatprep.mubr.bf16.mxu1 %v7375_v1 }
 0x7ea   :  { %4281 = vmatmul.mubr.msk.bf16.vlgmr.msra.gmra.mrb[72].mxu0 %vm2343_vm5, %v4597_v61 }
 0x7eb   :  { %2535 = vmatprep.mubr.bf16.mxu0 %v7375_v1 }
 0x7ef   :  { %4273 = vmatmul.mubr.msk.bf16.gmra.mrb[68].mxu1 %vm2343_vm5, %v4598_v18 }
 0x7f0   :  { %2432 = vmatprep.mubr.bf16.mxu1 %v7375_v1 }
 0x7f2   :  { %4282 = vmatmul.mubr.msk.bf16.gmra.mrb[76].mxu0 %vm2343_vm5, %v4598_v18 }
 0x7f3   :  { %2545 = vmatprep.mubr.bf16.mxu0 %v7375_v1 }
 0x7f7   :  { %4274 = vmatmul.mubr.msk.bf16.gmra.mrb[72].mxu1 %vm2343_vm5, %v4599_v38 }
 0x7f8   :  { %2442 = vmatprep.mubr.bf16.mxu1 %v7375_v1 }
 0x7fa   :  { %4283 = vmatmul.mubr.msk.bf16.gmra.mrb[80].mxu0 %vm2343_vm5, %v4599_v38 }
 0x7fb   :  { %2555 = vmatprep.mubr.bf16.mxu0 %v7375_v1 }
 0x7ff   :  { %4275 = vmatmul.mubr.msk.bf16.gmra.mrb[76].mxu1 %vm2343_vm5, %v4600_v10 }
 0x800   :  { %2452 = vmatprep.mubr.bf16.mxu1 %v7375_v1 }
 0x802   :  { %4284 = vmatmul.mubr.msk.bf16.gmra.mrb[84].mxu0 %vm2343_vm5, %v4600_v10 }
 0x803   :  { %2565 = vmatprep.mubr.bf16.mxu0 %v7375_v1 }
 0x807   :  { %4276 = vmatmul.mubr.msk.bf16.gmra.mrb[80].mxu1 %vm2343_vm5, %v4601_v13 }
 0x808   :  { %2462 = vmatprep.mubr.bf16.mxu1 %v7375_v1 }
 0x80a   :  { %4285 = vmatmul.mubr.msk.bf16.gmra.mrb[88].mxu0 %vm2343_vm5, %v4601_v13 }
 0x80b   :  { %2575 = vmatprep.mubr.bf16.mxu0 %v7375_v1 }
 0x80f   :  { %4277 = vmatmul.mubr.msk.bf16.gmra.mrb[84].mxu1 %vm2343_vm5, %v4602_v34 }
 0x810   :  { %2472 = vmatprep.mubr.bf16.mxu1 %v7375_v1 }
 0x812   :  { %4286 = vmatmul.mubr.msk.bf16.gmra.mrb[92].mxu0 %vm2343_vm5, %v4602_v34 }
 0x813   :  { %2585 = vmatprep.mubr.bf16.mxu0 %v7375_v1 }
 0x817   :  { %4278 = vmatmul.mubr.msk.bf16.gmra.mrb[88].mxu1 %vm2343_vm5, %v4603_v41 }
 0x818   :  { %2482 = vmatprep.mubr.bf16.mxu1 %v7375_v1 }
 0x81a   :  { %4287 = vmatmul.mubr.msk.bf16.gmra.mrb[96].mxu0 %vm2343_vm5, %v4603_v41 }
 0x81b   :  { %2595 = vmatprep.mubr.bf16.mxu0 %v7375_v1 }
 0x81f   :  { %4279 = vmatmul.mubr.msk.bf16.gmra.mrb[92].mxu1 %vm2343_vm5, %v4604_v56 }
 0x820   :  { %3805 = vmatprep.mubr.bf16.mxu1 %v7375_v1 }
 0x822   :  { %4288 = vmatmul.mubr.msk.bf16.gmra.mrb[100].mxu0 %vm2343_vm5, %v4604_v56 }
 0x823   :  { %3887 = vmatprep.mubr.bf16.mxu0 %v7375_v1 }
 0x8ba   :  { %v5951_v4 = vpop.f32.mrb[64].mxu1 }
 0x8bb   :  { %v5953_v12 = vpop.f32.mrb[65].mxu1 }
 0x8bc   :  { %v5955_v55 = vpop.f32.mrb[66].mxu1 }
 0x8bd   :  { %v5957_v9 = vpop.f32.mrb[72].mxu0  ;;  %v5959_v25 = vpop.f32.mrb[67].mxu1 }
 0x8be   :  { %v5961_v5 = vpop.f32.mrb[73].mxu0 }
 0x8bf   :  { %v5963_v8 = vpop.f32.mrb[74].mxu0 }
 0x8c0   :  { %v5965_v19 = vpop.f32.mrb[75].mxu0 }
 0x8c2   :  { %v5967_v11 = vpop.f32.mrb[68].mxu1 }
 0x8c3   :  { %v5969_v7 = vpop.f32.mrb[69].mxu1 }
 0x8c4   :  { %v5971_v49 = vpop.f32.mrb[70].mxu1 }
 0x8c5   :  { %v5973_v63 = vpop.f32.mrb[76].mxu0  ;;  %v5975_v39 = vpop.f32.mrb[71].mxu1 }
 0x8c6   :  { %7376 = vst [vmem:[#allocation2_spill] sm:$0xff] %v5973_v63  ;;  %v5977_v6 = vpop.f32.mrb[77].mxu0 }
 0x8c7   :  { %v5979_v42 = vpop.f32.mrb[78].mxu0 }
 0x8c8   :  { %7377 = vst [vmem:[#allocation3_spill] sm:$0xff] %v5979_v42  ;;  %v5981_v44 = vpop.f32.mrb[79].mxu0 }
 0x8c9   :  { %7378 = vst [vmem:[#allocation4_spill] sm:$0xff] %v5981_v44 }
 0x8ca   :  { %v5983_v33 = vpop.f32.mrb[72].mxu1 }
 0x8cb   :  { %v5985_v60 = vpop.f32.mrb[73].mxu1 }
 0x8cc   :  { %v5987_v59 = vpop.f32.mrb[74].mxu1 }
 0x8cd   :  { %v5989_v23 = vpop.f32.mrb[80].mxu0  ;;  %v2624_v53 = vmul.f32 %v5987_v59, %v5987_v59  ;;  %v5993_v43 = vpop.f32.mrb[75].mxu1 }
 0x8ce   :  { %7379 = vst [vmem:[#allocation5_spill] sm:$0xff] %v5989_v23  ;;  %v5995_v16 = vpop.f32.mrb[81].mxu0  ;;  %v2606_v32 = vadd.f32 %v5993_v43, %v5987_v59  ;;  %v2625_v14 = vmul.f32 %v5993_v43, %v5993_v43 }
 0x8cf   :  { %v6001_v0 = vpop.f32.mrb[82].mxu0 }
 0x8d0   :  { %7380 = vst [vmem:[#allocation6_spill] sm:$0xff] %v6001_v0  ;;  %v2626_v40 = vmul.f32 %v6001_v0, %v6001_v0  ;;  %v6005_v15 = vpop.f32.mrb[83].mxu0  ;;  %v2640_v27 = vadd.f32 %v2625_v14, %v2624_v53  ;;  %v2607_v29 = vadd.f32 %v2606_v32, %v6001_v0 }
 0x8d1   :  { %7381 = vst [vmem:[#allocation7_spill] sm:$0xff] %v6005_v15  ;;  %v2627_v51 = vmul.f32 %v6005_v15, %v6005_v15 }
 0x8d2   :  { %v2641_v57 = vadd.f32 %v2640_v27, %v2626_v40  ;;  %v2608_v3 = vadd.f32 %v2607_v29, %v6005_v15  ;;  %v6011_v26 = vpop.f32.mrb[76].mxu1 }
 0x8d3   :  { %v2628_v36 = vmul.f32 %v6011_v26, %v6011_v26  ;;  %v6015_v52 = vpop.f32.mrb[77].mxu1 }
 0x8d4   :  { %v2642_v48 = vadd.f32 %v2641_v57, %v2627_v51  ;;  %v2609_v37 = vadd.f32 %v2608_v3, %v6011_v26  ;;  %v6018_v58 = vpop.f32.mrb[78].mxu1  ;;  %v2629_v54 = vmul.f32 %v6015_v52, %v6015_v52 }
 0x8d5   :  { %v6020_v17 = vpop.f32.mrb[84].mxu0  ;;  %v6022_v31 = vpop.f32.mrb[79].mxu1 }
 0x8d6   :  { %7382 = vst [vmem:[#allocation8_spill] sm:$0xff] %v6020_v17  ;;  %v6024_v50 = vpop.f32.mrb[85].mxu0  ;;  %v2643_v2 = vadd.f32 %v2642_v48, %v2628_v36  ;;  %v2610_v35 = vadd.f32 %v2609_v37, %v6015_v52  ;;  %v2630_v28 = vmul.f32 %v6020_v17, %v6020_v17 }
 0x8d7   :  { %7383 = vst [vmem:[#allocation9_spill] sm:$0xff] %v6024_v50  ;;  %v6031_v24 = vpop.f32.mrb[86].mxu0  ;;  %v2631_v34 = vmul.f32 %v6024_v50, %v6024_v50 }
 0x8d8   :  { %7384 = vst [vmem:[#allocation10_spill] sm:$0xff] %v6031_v24  ;;  %v6033_v61 = vpop.f32.mrb[87].mxu0  ;;  %v2644_v21 = vadd.f32 %v2643_v2, %v2629_v54  ;;  %v2611_v18 = vadd.f32 %v2610_v35, %v6020_v17 }
 0x8d9   :  { %7385 = vst [vmem:[#allocation11_spill] sm:$0xff] %v6033_v61 }
 0x8da   :  { %v2645_v38 = vadd.f32 %v2644_v21, %v2630_v28  ;;  %v6036_v10 = vpop.f32.mrb[80].mxu1  ;;  %v2612_v13 = vadd.f32 %v2611_v18, %v6024_v50 }
 0x8db   :  { %v6041_v41 = vpop.f32.mrb[81].mxu1 }
 0x8dc   :  { %v2646_v56 = vadd.f32 %v2645_v38, %v2631_v34  ;;  %v6043_v53 = vpop.f32.mrb[82].mxu1 }
 0x8dd   :  { %v6045_v32 = vpop.f32.mrb[88].mxu0  ;;  %v2613_v14 = vadd.f32 %v2612_v13, %v6043_v53  ;;  %v2632_v40 = vmul.f32 %v6043_v53, %v6043_v53  ;;  %v6050_v27 = vpop.f32.mrb[83].mxu1 }
 0x8de   :  { %7386 = vst [vmem:[#allocation12_spill] sm:$0xff] %v6045_v32  ;;  %v6052_v29 = vpop.f32.mrb[89].mxu0  ;;  %v2633_v57 = vmul.f32 %v6050_v27, %v6050_v27  ;;  %v6287_v32 = vld [vmem:[%s7327_s17 + $0x68] sm:$0xff] }
 0x8df   :  { %7387 = vst [vmem:[#allocation13_spill] sm:$0xff] %v6052_v29  ;;  %v6056_v3 = vpop.f32.mrb[90].mxu0  ;;  %v2647_v51 = vadd.f32 %v2646_v56, %v2632_v40  ;;  %v2614_v36 = vadd.f32 %v2613_v14, %v6050_v27  ;;  %7411 = vst [vmem:[#allocation37_spill] sm:$0xff] %v6287_v32  ;;  %v6345_v29 = vld [vmem:[%s7327_s17 + $0x70] sm:$0xff] }
 0x8e0   :  { %7388 = vst [vmem:[#allocation14_spill] sm:$0xff] %v6056_v3  ;;  %v6059_v48 = vpop.f32.mrb[91].mxu0  ;;  %v2634_v35 = vmul.f32 %v6056_v3, %v6056_v3  ;;  %7413 = vst [vmem:[#allocation39_spill] sm:$0xff] %v6345_v29 }
 0x8e1   :  { %7389 = vst [vmem:[#allocation15_spill] sm:$0xff] %v6059_v48  ;;  %v2648_v37 = vadd.f32 %v2647_v51, %v2633_v57  ;;  %v2615_v2 = vadd.f32 %v2614_v36, %v6056_v3  ;;  %v2635_v18 = vmul.f32 %v6059_v48, %v6059_v48 }
 0x8e2   :  { %v6064_v54 = vpop.f32.mrb[84].mxu1 }
 0x8e3   :  { %v2649_v28 = vadd.f32 %v2648_v37, %v2634_v35  ;;  %v2616_v21 = vadd.f32 %v2615_v2, %v6059_v48  ;;  %v2636_v38 = vmul.f32 %v6064_v54, %v6064_v54  ;;  %v6071_v13 = vpop.f32.mrb[85].mxu1  ;;  %v6358_v48 = vld [vmem:[%s7327_s17 + $0x58] sm:$0xff] }
 0x8e4   :  { %v6075_v56 = vpop.f32.mrb[86].mxu1  ;;  %v2637_v35 = vmul.f32 %v6071_v13, %v6071_v13  ;;  %7414 = vst [vmem:[#allocation40_spill] sm:$0xff] %v6358_v48 }
 0x8e5   :  { %v6073_v34 = vpop.f32.mrb[92].mxu0  ;;  %v2650_v14 = vadd.f32 %v2649_v28, %v2635_v18  ;;  %v2617_v40 = vadd.f32 %v2616_v21, %v6064_v54  ;;  %v6080_v51 = vpop.f32.mrb[87].mxu1 }
 0x8e6   :  { %7390 = vst [vmem:[#allocation16_spill] sm:$0xff] %v6073_v34  ;;  %v6078_v57 = vpop.f32.mrb[93].mxu0  ;;  %v2638_v24 = vmul.f32 %v6073_v34, %v6073_v34 }
 0x8e7   :  { %7391 = vst [vmem:[#allocation17_spill] sm:$0xff] %v6078_v57  ;;  %v6082_v36 = vpop.f32.mrb[94].mxu0  ;;  %v2651_v37 = vadd.f32 %v2650_v14, %v2636_v38  ;;  %v2618_v2 = vadd.f32 %v2617_v40, %v6071_v13 }
 0x8e8   :  { %7392 = vst [vmem:[#allocation18_spill] sm:$0xff] %v6082_v36  ;;  %v6089_v61 = vpop.f32.mrb[95].mxu0  ;;  %v2639_v36 = vmul.f32 %v6078_v57, %v6078_v57 }
 0x8e9   :  { %7393 = vst [vmem:[#allocation19_spill] sm:$0xff] %v6089_v61  ;;  %v2652_v28 = vadd.f32 %v2651_v37, %v2637_v35  ;;  %v2619_v21 = vadd.f32 %v2618_v2, %v6073_v34 }
 0x8ea   :  { %v6095_v14 = vpop.f32.mrb[88].mxu1 }
 0x8eb   :  { %v2653_v18 = vadd.f32 %v2652_v28, %v2638_v24  ;;  %v2620_v42 = vadd.f32 %v2619_v21, %v6078_v57  ;;  %7394 = vst [vmem:[#allocation20_spill] sm:$0xff] %v6095_v14  ;;  %v6099_v44 = vpop.f32.mrb[89].mxu1  ;;  %v6300_v14 = vld [vmem:[%s7327_s17 + $0x30] sm:$0xff] }
 0x8ec   :  { %7396 = vst [vmem:[#allocation22_spill] sm:$0xff] %v6099_v44  ;;  %v6103_v37 = vpop.f32.mrb[90].mxu1  ;;  %7412 = vst [vmem:[#allocation38_spill] sm:$0xff] %v6300_v14 }
 0x8ed   :  { %2621 = vadd.xlane.f32.xlu0 %v2620_v42  ;;  %v2654_v38 = vadd.f32 %v2653_v18, %v2639_v36  ;;  %v6097_v40 = vpop.f32.mrb[96].mxu0  ;;  %7398 = vst [vmem:[#allocation24_spill] sm:$0xff] %v6103_v37  ;;  %v6107_v24 = vpop.f32.mrb[91].mxu1 }
 0x8ee   :  { %7395 = vst [vmem:[#allocation21_spill] sm:$0xff] %v6097_v40  ;;  %v6101_v3 = vpop.f32.mrb[97].mxu0  ;;  %7400 = vst [vmem:[#allocation26_spill] sm:$0xff] %v6107_v24  ;;  %v6408_v24 = vld [vmem:[%s7327_s17 + $0x78] sm:$0xff] }
 0x8ef   :  { %2655 = vadd.xlane.f32.xlu1 %v2654_v38  ;;  %7397 = vst [vmem:[#allocation23_spill] sm:$0xff] %v6101_v3  ;;  %v6105_v2 = vpop.f32.mrb[98].mxu0  ;;  %7416 = vst [vmem:[#allocation42_spill] sm:$0xff] %v6408_v24 }
 0x8f0   :  { %7399 = vst [vmem:[#allocation25_spill] sm:$0xff] %v6105_v2  ;;  %v6109_v35 = vpop.f32.mrb[99].mxu0 }
 0x8f1   :  { %7401 = vst [vmem:[#allocation27_spill] sm:$0xff] %v6109_v35 }
 0x8f2   :  { %v6111_v28 = vpop.f32.mrb[92].mxu1 }
 0x8f3   :  { %7402 = vst [vmem:[#allocation28_spill] sm:$0xff] %v6111_v28  ;;  %v6115_v36 = vpop.f32.mrb[93].mxu1 }
 0x8f4   :  { %7404 = vst [vmem:[#allocation30_spill] sm:$0xff] %v6115_v36  ;;  %v6119_v18 = vpop.f32.mrb[94].mxu1  ;;  %v6229_v36 = vld [vmem:[%s7327_s17 + $0x40] sm:$0xff] }
 0x8f5   :  { %v6113_v42 = vpop.f32.mrb[100].mxu0  ;;  %7406 = vst [vmem:[#allocation32_spill] sm:$0xff] %v6119_v18  ;;  %v6131_v18 = vpop.f32.mrb[95].mxu1 }
 0x8f6   :  { %7403 = vst [vmem:[#allocation29_spill] sm:$0xff] %v6113_v42  ;;  %v6117_v21 = vpop.f32.mrb[101].mxu0  ;;  %v2249_v42 = vld [vmem:[%s7324_s15] sm:$0xff] }
 0x8f7   :  { %7405 = vst [vmem:[#allocation31_spill] sm:$0xff] %v6117_v21  ;;  %v6121_v38 = vpop.f32.mrb[102].mxu0 }
 0x8f8   :  { %7407 = vst [vmem:[#allocation33_spill] sm:$0xff] %v6121_v38  ;;  %v6123_v40 = vpop.f32.mrb[103].mxu0  ;;  %v2250_v38 = vld [vmem:[%s7325_s16] sm:$0xff] }
 0x8f9   :  { %7408 = vst [vmem:[#allocation34_spill] sm:$0xff] %v6123_v40  ;;  %v6224_v40 = vld [vmem:[%s7327_s17 + $0x10] sm:$0xff] }
 0x8fa   :  { %7409 = vst [vmem:[#allocation35_spill] sm:$0xff] %v6224_v40 }
 0x97a   :  { %v2622_v3 = vpop.xlane.xlu0 %2621 }
 0x97b   :  { %v2623_v2 = vmul.f32 0.00048828125, %v2622_v3 }
 0x97c   :  { %v2656_v61 = vpop.xlane.xlu1 %2655 }
 0x97d   :  { %v2658_v34 = vmul.f32 %v2623_v2, %v2623_v2  ;;  %v2657_v57 = vmul.f32 0.00048828125, %v2656_v61  ;;  %v3716_v61 = vld [vmem:[%s7326_s19] sm:$0x7] }
 0x97f   :  { %v2659_v35 = vsub.f32 %v2657_v57, %v2658_v34  ;;  %v6139_v57 = vld [vmem:[%s7327_s17 + $0x8] sm:$0xff] }
 0x981   :  { %v2660_v37 = vadd.f32 1e-05, %v2659_v35  ;;  %v6154_v35 = vld [vmem:[%s7327_s17 + $0x20] sm:$0xff] }
 0x983   :  { %4613 = vrsqrt.f32 %v2660_v37  ;;  %v6144_v37 = vld [vmem:[%s7327_s17 + $0x28] sm:$0xff] }
 0x984   :  { %v7420_v50 = vrot.slane %v6144_v37, %v4796_v20  ;;  %v7421_v63 = vrot.slane %v6144_v37, %v4802_v22 }
 0x98d   :  { %v4614_v28 = vpop.eup %4613 }
 0x98e   :  { %v2662_v21 = vmul.f32 %v4614_v28, %v2249_v42  ;;  %v6282_v42 = vld [vmem:[%s7327_s17 + $0x38] sm:$0xff]  ;;  %v6371_v28 = vld [vmem:[%s7327_s17 + $0x50] sm:$0xff] }
 0x98f   :  { %7410 = vst [vmem:[#allocation36_spill] sm:$0xff] %v6282_v42  ;;  %7415 = vst [vmem:[#allocation41_spill] sm:$0xff] %v6371_v28 }
 0x990   :  { %2667 = vperm.xlu0 %4504, %v2662_v21   ;;  %v2663_v3 = vmul.f32 %v2662_v21, %v2623_v2  ;;  %v6149_v2 = vld [vmem:[%s7327_s17] sm:$0xff]  ;;  %v6206_v21 = vld [vmem:[%s7327_s17 + $0x18] sm:$0xff] }
 0x992   :  { %v2664_v34 = vsub.f32 %v2250_v38, %v2663_v3  ;;  %v6193_v38 = vld [vmem:[%s7327_s17 + $0x60] sm:$0xff] }
 0x994   :  { %3719 = vperm.xlu0 %4504, %v3716_v61   ;;  %2688 = vperm.xlu1 %4503, %v2664_v34   ;;  %v6211_v61 = vld [vmem:[%s7327_s17 + $0x48] sm:$0xff] }
 0xa0f   :  { %v6426_v14 = vpop.permute.xlu0 %2667 }
 0xa10   :  { %v6438_v48 = vmul.f32 %v6426_v14, %v6131_v18  ;;  %v2671_v34 = vmul.f32 %v6426_v14, %v5953_v12  ;;  %v2675_v17 = vmul.f32 %v6426_v14, %v5959_v25  ;;  %v2836_v42 = vmul.f32 %v6426_v14, %v5969_v7 }
 0xa11   :  { %v2670_v32 = vmul.f32 %v6426_v14, %v5951_v4  ;;  %v2674_v44 = vmul.f32 %v6426_v14, %v5955_v55  ;;  %v2835_v3 = vmul.f32 %v6426_v14, %v5967_v11  ;;  %v2679_v18 = vmul.f32 %v6426_v14, %v5985_v60 }
 0xa12   :  { %7417 = vst [vmem:[#allocation43_spill] sm:$0xff] %v6438_v48  ;;  %v2683_v12 = vmul.f32 %v6426_v14, %v5993_v43  ;;  %v2956_v25 = vmul.f32 %v6426_v14, %v5975_v39  ;;  %v2678_v7 = vmul.f32 %v6426_v14, %v5983_v33  ;;  %v6462_v4 = vmul.f32 %v6426_v14, %v5987_v59 }
 0xa13   :  { %v6464_v55 = vpop.permute.xlu1 %2688  ;;  %v6468_v11 = vmul.f32 %v6426_v14, %v5971_v49  ;;  %v6472_v60 = vmul.f32 %v6426_v14, %v6015_v52  ;;  %v6476_v39 = vmul.f32 %v6426_v14, %v6022_v31  ;;  %v6480_v33 = vmul.f32 %v6426_v14, %v6011_v26 }
 0xa14   :  { %v2692_v59 = vadd.f32 %v6464_v55, %v2671_v34  ;;  %v2696_v43 = vadd.f32 %v6464_v55, %v2675_v17  ;;  %v2844_v24 = vadd.f32 %v2836_v42, %v6464_v55  ;;  %v2691_v49 = vadd.f32 %v6464_v55, %v2670_v32 }
 0xa15   :  { %v2695_v29 = vadd.f32 %v6464_v55, %v2674_v44  ;;  %v2843_v52 = vadd.f32 %v2835_v3, %v6464_v55  ;;  %v2700_v28 = vadd.f32 %v6464_v55, %v2679_v18  ;;  %v2704_v31 = vadd.f32 %v6464_v55, %v2683_v12 }
 0xa16   :  { %vm2708_vm6 = vcmp.ge.f32.partialorder %v2692_v59, 0.0  ;;  %vm2712_vm7 = vcmp.ge.f32.partialorder %v2696_v43, 0.0  ;;  %v2724_v26 = vmul.f32 0.01, %v2692_v59  ;;  %v2728_v48 = vmul.f32 0.01, %v2696_v43 }
 0xa17   :  { %vm2852_vm8 = vcmp.ge.f32.partialorder %v2844_v24, 0.0  ;;  %v2860_v34 = vmul.f32 0.01, %v2844_v24  ;;  %vm2707_vm9 = vcmp.ge.f32.partialorder %v2691_v49, 0.0  ;;  %vm2711_vm10 = vcmp.ge.f32.partialorder %v2695_v29, 0.0 }
 0xa18   :  { %v2740_v17 = vsel %vm2708_vm6, %v2692_v59, %v2724_v26  ;;  %v2744_v42 = vsel %vm2712_vm7, %v2696_v43, %v2728_v48  ;;  %v2723_v0 = vmul.f32 0.01, %v2691_v49  ;;  %v2727_v32 = vmul.f32 0.01, %v2695_v29 }
 0xa19   :  { %v7418_v44 = vrot.slane %v6139_v57, %v4796_v20  ;;  %v7419_v18 = vrot.slane %v6139_v57, %v4802_v22  ;;  %v2824_v15 = vmul.f32 %v7420_v50, %v2744_v42  ;;  %v2868_v40 = vsel %vm2852_vm8, %v2844_v24, %v2860_v34 }
 0xa1a   :  { %v2944_v59 = vmul.f32 %v7421_v63, %v2868_v40  ;;  %v2739_v48 = vsel %vm2707_vm9, %v2691_v49, %v2723_v0  ;;  %v2743_v43 = vsel %vm2711_vm10, %v2695_v29, %v2727_v32  ;;  %vm2851_vm11 = vcmp.ge.f32.partialorder %v2843_v52, 0.0 }
 0xa1b   :  { %v2820_v3 = vmul.f32 %v7418_v44, %v2740_v17  ;;  %v2940_v12 = vmul.f32 %v7419_v18, %v2744_v42  ;;  %v7422_v17 = vrot.slane %v6149_v2, %v4796_v20  ;;  %v7423_v18 = vrot.slane %v6149_v2, %v4802_v22 }
 0xa1c   :  { %v7424_v50 = vrot.slane %v6154_v35, %v4796_v20  ;;  %v3640_v34 = vpack.c.bf16 %v2944_v59, %v2824_v15  ;;  %v2859_v42 = vmul.f32 0.01, %v2843_v52  ;;  %vm2716_vm12 = vcmp.ge.f32.partialorder %v2700_v28, 0.0 }
 0xa1d   :  { %v3636_v26 = vpack.c.bf16 %v2940_v12, %v2820_v3  ;;  %v2819_v44 = vmul.f32 %v7422_v17, %v2739_v48  ;;  %v2939_v23 = vmul.f32 %v7423_v18, %v2743_v43  ;;  %v2732_v63 = vmul.f32 0.01, %v2700_v28 }
 0xa1e   :  { %v2823_v24 = vmul.f32 %v7424_v50, %v2743_v43  ;;  %v7425_v29 = vrot.slane %v6139_v57, %v4834_v45  ;;  %vm2720_vm13 = vcmp.ge.f32.partialorder %v2704_v31, 0.0  ;;  %v2736_v32 = vmul.f32 0.01, %v2704_v31  ;;  %3855 = vmatprep.subr.bf16.mxu0 %v3640_v34 }
 0xa1f   :  { %3773 = vmatprep.subr.bf16.mxu1 %v3636_v26  ;;  %v3635_v0 = vpack.c.bf16 %v2939_v23, %v2819_v44  ;;  %v2867_v3 = vsel %vm2851_vm11, %v2843_v52, %v2859_v42  ;;  %v6514_v12 = vsel %vm2716_vm12, %v2700_v28, %v2732_v63  ;;  %v2964_v48 = vadd.f32 %v2956_v25, %v6464_v55 }
 0xa20   :  { %v3060_v49 = vmul.f32 %v7425_v29, %v2868_v40  ;;  %v2699_v43 = vadd.f32 %v6464_v55, %v2678_v7  ;;  %v7426_v15 = vrot.slane %v6154_v35, %v4802_v22  ;;  %v7427_v23 = vrot.slane %v6139_v57, %v4839_v47 }
 0xa21   :  { %3774 = vmatpush1.bf16.msra.mxu1 %v3635_v0  ;;  %v6525_v26 = vsel %vm2720_vm13, %v2704_v31, %v2736_v32  ;;  %v7428_v28 = vrot.slane %v6149_v2, %v4834_v45  ;;  %vm2972_vm14 = vcmp.ge.f32.partialorder %v2964_v48, 0.0  ;;  %v2980_v25 = vmul.f32 0.01, %v2964_v48 }
 0xa22   :  { %v2943_v59 = vmul.f32 %v7426_v15, %v2867_v3  ;;  %v3180_v40 = vmul.f32 %v7427_v23, %v6514_v12  ;;  %v7429_v7 = vrot.slane %v6144_v37, %v4839_v47  ;;  %vm2715_vm15 = vcmp.ge.f32.partialorder %v2699_v43, 0.0 }
 0xa23   :  { %v3059_v52 = vmul.f32 %v7428_v28, %v2867_v3  ;;  %v2731_v50 = vmul.f32 0.01, %v2699_v43  ;;  %v2703_v34 = vadd.f32 %v6464_v55, %v6462_v4  ;;  %v2988_v31 = vsel %vm2972_vm14, %v2964_v48, %v2980_v25 }
 0xa24   :  { %v3184_v17 = vmul.f32 %v7429_v7, %v6525_v26  ;;  %v3639_v44 = vpack.c.bf16 %v2943_v59, %v2823_v24  ;;  %v3652_v18 = vpack.c.bf16 %v3180_v40, %v3060_v49  ;;  %v2963_v42 = vadd.f32 %v6468_v11, %v6464_v55 }
 0xa25   :  { %v2848_v63 = vadd.f32 %v6472_v60, %v6464_v55  ;;  %v2968_v0 = vadd.f32 %v6476_v39, %v6464_v55  ;;  %v7430_v24 = vrot.slane %v6144_v37, %v4834_v45  ;;  %v6545_v49 = vsel %vm2715_vm15, %v2699_v43, %v2731_v50 }
 0xa26   :  { %3856 = vmatpush1.bf16.msra.mxu0 %v3639_v44  ;;  %3775 = vmatprep.subr.bf16.mxu1 %v3652_v18  ;;  %vm2719_vm1 = vcmp.ge.f32.partialorder %v2703_v34, 0.0  ;;  %v2735_v4 = vmul.f32 0.01, %v2703_v34  ;;  %v7431_v11 = vrot.slane %v6149_v2, %v4839_v47  ;;  %vm2971_vm2 = vcmp.ge.f32.partialorder %v2963_v42, 0.0 }
 0xa27   :  { %v3064_v29 = vmul.f32 %v7430_v24, %v2988_v31  ;;  %v2979_v60 = vmul.f32 0.01, %v2963_v42  ;;  %vm2856_vm3 = vcmp.ge.f32.partialorder %v2848_v63, 0.0  ;;  %v2864_v48 = vmul.f32 0.01, %v2848_v63 }
 0xa28   :  { %v3179_v32 = vmul.f32 %v7431_v11, %v6545_v49  ;;  %v6551_v39 = vsel %vm2719_vm1, %v2703_v34, %v2735_v4  ;;  %vm2976_vm4 = vcmp.ge.f32.partialorder %v2968_v0, 0.0  ;;  %v7432_v43 = vrot.slane %v6154_v35, %v4839_v47 }
 0xa29   :  { %v3656_v3 = vpack.c.bf16 %v3184_v17, %v3064_v29  ;;  %v2987_v59 = vsel %vm2971_vm2, %v2963_v42, %v2979_v60  ;;  %v2984_v40 = vmul.f32 0.01, %v2968_v0  ;;  %v7433_v28 = vrot.slane %v6154_v35, %v4834_v45 }
 0xa2a   :  { %v3651_v15 = vpack.c.bf16 %v3179_v32, %v3059_v52  ;;  %v3183_v23 = vmul.f32 %v7432_v43, %v6551_v39  ;;  %v6560_v7 = vsel %vm2856_vm3, %v2848_v63, %v2864_v48  ;;  %v2847_v17 = vadd.f32 %v6480_v33, %v6464_v55 }
 0xa2b   :  { %3857 = vmatprep.subr.bf16.mxu0 %v3656_v3  ;;  %v3063_v25 = vmul.f32 %v7433_v28, %v2987_v59  ;;  %v2959_v52 = vmul.f32 %v6426_v14, %v6018_v58  ;;  %v7434_v44 = vrot.slane %v6139_v57, %v5040_v46  ;;  %v6570_v50 = vsel %vm2976_vm4, %v2968_v0, %v2984_v40 }
 0xa2c   :  { %3776 = vmatpush1.bf16.msra.mxu1 %v3651_v15  ;;  %v3076_v34 = vmul.f32 %v6426_v14, %v6041_v41  ;;  %v3080_v31 = vmul.f32 %v6426_v14, %v6050_v27  ;;  %v7435_v33 = vrot.slane %v6144_v37, %v5040_v46  ;;  %vm2855_vm6 = vcmp.ge.f32.partialorder %v2847_v17, 0.0 }
 0xa2d   :  { %v3300_v18 = vmul.f32 %v7434_v44, %v6560_v7  ;;  %v3655_v42 = vpack.c.bf16 %v3183_v23, %v3063_v25  ;;  %v2863_v63 = vmul.f32 0.01, %v2847_v17  ;;  %v2967_v29 = vadd.f32 %v2959_v52, %v6464_v55 }
 0xa2e   :  { %v3304_v58 = vmul.f32 %v7435_v33, %v6570_v50  ;;  %v3084_v0 = vadd.f32 %v3076_v34, %v6464_v55  ;;  %v3088_v4 = vadd.f32 %v3080_v31, %v6464_v55  ;;  %v3196_v11 = vmul.f32 %v6426_v14, %v6071_v13 }
 0xa2f   :  { %v3668_v24 = vpack.c.bf16 %v3300_v18, %v6525_v26  ;;  %3858 = vmatpush1.bf16.msra.mxu0 %v3655_v42  ;;  %v6585_v27 = vsel %vm2855_vm6, %v2847_v17, %v2863_v63  ;;  %v3075_v32 = vmul.f32 %v6426_v14, %v6036_v10  ;;  %v7436_v60 = vrot.slane %v6149_v2, %v5040_v46 }
 0xa30   :  { %v3672_v41 = vpack.c.bf16 %v3304_v58, %v6560_v7  ;;  %vm2975_vm7 = vcmp.ge.f32.partialorder %v2967_v29, 0.0  ;;  %v2983_v48 = vmul.f32 0.01, %v2967_v29  ;;  %vm3092_vm8 = vcmp.ge.f32.partialorder %v3084_v0, 0.0 }
 0xa31   :  { %3777 = vmatprep.subr.bf16.mxu1 %v3668_v24  ;;  %v3299_v3 = vmul.f32 %v7436_v60, %v6585_v27  ;;  %vm3096_vm9 = vcmp.ge.f32.partialorder %v3088_v4, 0.0  ;;  %v3100_v15 = vmul.f32 0.01, %v3084_v0  ;;  %v3104_v59 = vmul.f32 0.01, %v3088_v4 }
 0xa32   :  { %3859 = vmatprep.subr.bf16.mxu0 %v3672_v41  ;;  %v3200_v43 = vadd.f32 %v3196_v11, %v6464_v55  ;;  %v6597_v23 = vsel %vm2975_vm7, %v2967_v29, %v2983_v48  ;;  %v3079_v10 = vmul.f32 %v6426_v14, %v6043_v53  ;;  %v3083_v40 = vadd.f32 %v3075_v32, %v6464_v55  ;;  %v4290_v29 = vld [vmem:[%s7327_s17 + $0x88] ss:$0 sm:$0xff] }
 0xa33   :  { %v3667_v13 = vpack.c.bf16 %v3299_v3, %v6551_v39  ;;  %v7437_v28 = vrot.slane %v6154_v35, %v5040_v46  ;;  %v6606_v17 = vsel %vm3092_vm8, %v3084_v0, %v3100_v15  ;;  %v6608_v52 = vsel %vm3096_vm9, %v3088_v4, %v3104_v59 }
 0xa34   :  { %vm3204_vm10 = vcmp.ge.f32.partialorder %v3200_v43, 0.0  ;;  %v7438_v44 = vrot.slane %v6139_v57, %v5055_v62  ;;  %v7439_v53 = vrot.slane %v6139_v57, %v5070_v30  ;;  %v3208_v31 = vmul.f32 0.01, %v3200_v43 }
 0xa35   :  { %v3303_v25 = vmul.f32 %v7437_v28, %v6597_v23  ;;  %3778 = vmatpush1.bf16.msra.mxu1 %v3667_v13  ;;  %v7440_v42 = vrot.slane %v6144_v37, %v5055_v62  ;;  %v3087_v63 = vadd.f32 %v3079_v10, %v6464_v55  ;;  %vm3091_vm11 = vcmp.ge.f32.partialorder %v3083_v40, 0.0 }
 0xa36   :  { %v3420_v18 = vmul.f32 %v7438_v44, %v6606_v17  ;;  %v3520_v34 = vmul.f32 %v7439_v53, %v6608_v52  ;;  %v3099_v24 = vmul.f32 0.01, %v3083_v40  ;;  %v6627_v4 = vsel %vm3204_vm10, %v3200_v43, %v3208_v31  ;;  %v4289_v53 = vld [vmem:[%s7327_s17 + $0x80] ss:$0 sm:$0xff] }
 0xa37   :  { %v3424_v33 = vmul.f32 %v7440_v42, %v6608_v52  ;;  %v3671_v58 = vpack.c.bf16 %v3303_v25, %v6585_v27  ;;  %v3195_v57 = vmul.f32 %v6426_v14, %v6064_v54  ;;  %v3216_v41 = vmul.f32 %v6426_v14, %v6080_v51 }
 0xa38   :  { %v3684_v0 = vpack.c.bf16 %v3520_v34, %v3420_v18  ;;  %v7441_v11 = vrot.slane %v6144_v37, %v5070_v30  ;;  %vm3095_vm12 = vcmp.ge.f32.partialorder %v3087_v63, 0.0  ;;  %v3103_v60 = vmul.f32 0.01, %v3087_v63 }
 0xa39   :  { %3860 = vmatpush1.bf16.msra.mxu0 %v3671_v58  ;;  %v6637_v3 = vsel %vm3091_vm11, %v3083_v40, %v3099_v24  ;;  %v7442_v48 = vrot.slane %v6149_v2, %v5055_v62  ;;  %v3199_v54 = vadd.f32 %v3195_v57, %v6464_v55  ;;  %v3620_v51 = vmul.f32 %v4290_v29, %v6627_v4 }
 0xa3a   :  { %v3524_v32 = vmul.f32 %v7441_v11, %v6627_v4  ;;  %3779 = vmatprep.subr.bf16.mxu1 %v3684_v0  ;;  %v3220_v59 = vadd.f32 %v3216_v41, %v6464_v55  ;;  %v6646_v13 = vsel %vm3095_vm12, %v3087_v63, %v3103_v60  ;;  %v3215_v37 = vmul.f32 %v6426_v14, %v6075_v56  ;;  %v4293_v41 = vld [vmem:[%s7327_s17 + $0xa0] ss:$0 sm:$0xff] }
 0xa3b   :  { %v3419_v15 = vmul.f32 %v7442_v48, %v6637_v3  ;;  %v2673_v10 = vmul.f32 %v6426_v14, %v5961_v5  ;;  %v7443_v40 = vrot.slane %v6149_v2, %v5070_v30  ;;  %vm3203_vm13 = vcmp.ge.f32.partialorder %v3199_v54, 0.0  ;;  %v4294_v5 = vld [vmem:[%s7327_s17 + $0xa8] ss:$0 sm:$0xff] }
 0xa3c   :  { %v3688_v43 = vpack.c.bf16 %v3524_v32, %v3424_v33  ;;  %v3207_v25 = vmul.f32 0.01, %v3199_v54  ;;  %v7444_v44 = vrot.slane %v6154_v35, %v5055_v62  ;;  %v3700_v56 = vpack.c.bf16 %v3620_v51, %v3620_v51 }
 0xa3d   :  { %v3519_v28 = vmul.f32 %v7443_v40, %v6646_v13  ;;  %vm3224_vm14 = vcmp.ge.f32.partialorder %v3220_v59, 0.0  ;;  %v3228_v2 = vmul.f32 0.01, %v3220_v59  ;;  %v3219_v34 = vadd.f32 %v3215_v37, %v6464_v55 }
 0xa3e   :  { %v3423_v18 = vmul.f32 %v7444_v44, %v6646_v13  ;;  %3861 = vmatprep.subr.bf16.mxu0 %v3688_v43  ;;  %v6667_v42 = vsel %vm3203_vm13, %v3199_v54, %v3207_v25  ;;  %v2677_v33 = vmul.f32 %v6426_v14, %v5965_v19  ;;  %v2694_v58 = vadd.f32 %v6464_v55, %v2673_v10 }
 0xa3f   :  { %v3683_v31 = vpack.c.bf16 %v3519_v28, %v3419_v15  ;;  %v7445_v63 = vrot.slane %v6154_v35, %v5070_v30  ;;  %v6676_v29 = vsel %vm3224_vm14, %v3220_v59, %v3228_v2  ;;  %v3619_v0 = vmul.f32 %v4289_v53, %v6667_v42 }
 0xa40   :  { %vm3223_vm15 = vcmp.ge.f32.partialorder %v3219_v34, 0.0  ;;  %v3624_v57 = vmul.f32 %v4294_v5, %v6676_v29  ;;  %v3227_v19 = vmul.f32 0.01, %v3219_v34  ;;  %v2698_v11 = vadd.f32 %v6464_v55, %v2677_v33 }
 0xa41   :  { %v3523_v24 = vmul.f32 %v7445_v63, %v6667_v42  ;;  %3780 = vmatpush1.bf16.msra.mxu1 %v3683_v31  ;;  %vm2710_vm1 = vcmp.ge.f32.partialorder %v2694_v58, 0.0  ;;  %v3699_v35 = vpack.c.bf16 %v3619_v0, %v3619_v0  ;;  %v2726_v60 = vmul.f32 0.01, %v2694_v58 }
 0xa42   :  { %4305 = vmatprep.subr.msk.bf16.mxu1 %vm113_vm0, %v3700_v56  ;;  %v7446_v48 = vrot.slane %v6211_v61, %v4796_v20  ;;  %v3704_v54 = vpack.c.bf16 %v3624_v57, %v3624_v57  ;;  %v3231_v51 = vsel %vm3223_vm15, %v3219_v34, %v3227_v19  ;;  %vm2714_vm2 = vcmp.ge.f32.partialorder %v2698_v11, 0.0  ;;  %v6708_v56 = vld [vmem:[%s7328_s18] sm:$0x3] }
 0xa43   :  { %v3687_v32 = vpack.c.bf16 %v3523_v24, %v3423_v18  ;;  %v2730_v59 = vmul.f32 0.01, %v2698_v11  ;;  %v3726_v43 = vsel %vm113_vm0, %v3699_v35, 0  ;;  %v7447_v37 = vrot.slane %v6193_v38, %v5040_v46 }
 0xa44   :  { %v2828_v15 = vmul.f32 %v7446_v48, %v6514_v12  ;;  %v3623_v40 = vmul.f32 %v4293_v41, %v3231_v51  ;;  %v2742_v28 = vsel %vm2710_vm1, %v2694_v58, %v2726_v60  ;;  %v7448_v12 = vrot.slane %v6206_v21, %v4796_v20 }
 0xa45   :  { %3862 = vmatpush1.bf16.msra.mxu0 %v3687_v32  ;;  %v6693_v10 = vmul.f32 %v7447_v37, %v3231_v51  ;;  %3782 = vmatpush1.bf16.msra.mxu1 %v3726_v43  ;;  %v6696_v25 = vsel %vm2714_vm2, %v2698_v11, %v2730_v59  ;;  %v7449_v18 = vrot.slane %v6211_v61, %v4802_v22 }
 0xa46   :  { %4309 = vmatprep.subr.msk.bf16.mxu0 %vm113_vm0, %v3704_v54  ;;  %v2822_v44 = vmul.f32 %v7448_v12, %v2742_v28  ;;  %v3703_v5 = vpack.c.bf16 %v3623_v40, %v3623_v40  ;;  %v7450_v2 = vrot.slane %v6206_v21, %v4802_v22  ;;  %v2672_v31 = vmul.f32 %v6426_v14, %v5957_v9  ;;  %v7455_v40 = vld [vmem:[#allocation5_spill] sm:$0xff]  ;;  %v7456_v12 = vld [vmem:[#allocation2_spill] sm:$0xff] }
 0xa47   :  { %v2948_v53 = vmul.f32 %v7449_v18, %v6525_v26  ;;  %v2676_v33 = vmul.f32 %v6426_v14, %v5963_v8  ;;  %v7451_v63 = vrot.slane %v6229_v36, %v4796_v20  ;;  %v7452_v0 = vrot.slane %v6229_v36, %v4802_v22  ;;  %v7457_v18 = vld [vmem:[#allocation35_spill] sm:$0xff] }
 0xa48   :  { %v2942_v34 = vmul.f32 %v7450_v2, %v6696_v25  ;;  %v2681_v41 = vmul.f32 %v6426_v14, %v5995_v16  ;;  %v3738_v19 = vsel %vm113_vm0, %v3703_v5, 0  ;;  %4306 = vmatmul.mubr.msk.bf16.vlgmr.msra.gmra.mrb[96].mxu1 %vm2343_vm5, %v6708_v56  ;;  %v2693_v8 = vadd.f32 %v6464_v55, %v2672_v31 }
 0xa49   :  { %v3644_v58 = vpack.c.bf16 %v2948_v53, %v2828_v15  ;;  %v2827_v24 = vmul.f32 %v7451_v63, %v6545_v49  ;;  %v2947_v57 = vmul.f32 %v7452_v0, %v6551_v39  ;;  %v2697_v11 = vadd.f32 %v6464_v55, %v2676_v33  ;;  %3864 = vmatpush1.bf16.msra.mxu0 %v3738_v19 }
 0xa4a   :  { %v3638_v9 = vpack.c.bf16 %v2942_v34, %v2822_v44  ;;  %v2702_v32 = vadd.f32 %v6464_v55, %v2681_v41  ;;  %v2838_v35 = vmul.f32 %v6426_v14, %v5977_v6  ;;  %v7453_v16 = vrot.slane %v6211_v61, %v4834_v45  ;;  %3846 = vmatprep.mubr.bf16.mxu1 %v7375_v1 }
 0xa4b   :  { %v3643_v49 = vpack.c.bf16 %v2947_v57, %v2827_v24  ;;  %3937 = vmatprep.subr.bf16.mxu0 %v3644_v58  ;;  %vm2709_vm3 = vcmp.ge.f32.partialorder %v2693_v8, 0.0  ;;  %vm2713_vm4 = vcmp.ge.f32.partialorder %v2697_v11, 0.0  ;;  %v2725_v48 = vmul.f32 0.01, %v2693_v8 }
 0xa4c   :  { %v3068_v60 = vmul.f32 %v7453_v16, %v6560_v7  ;;  %3814 = vmatprep.subr.bf16.mxu1 %v3638_v9  ;;  %v2729_v15 = vmul.f32 0.01, %v2697_v11  ;;  %vm2718_vm6 = vcmp.ge.f32.partialorder %v2702_v32, 0.0  ;;  %v2734_v54 = vmul.f32 0.01, %v2702_v32  ;;  %4310 = vmatmul.mubr.msk.bf16.vlgmr.msra.gmra.mrb[104].mxu0 %vm2343_vm5, %v6708_v56 }
 0xa4d   :  { %v2846_v51 = vadd.f32 %v2838_v35, %v6464_v55  ;;  %v7454_v59 = vrot.slane %v6211_v61, %v4839_v47  ;;  %v2741_v43 = vsel %vm2709_vm3, %v2693_v8, %v2725_v48  ;;  %v2680_v28 = vmul.f32 %v6426_v14, %v7455_v40  ;;  %3938 = vmatpush1.bf16.msra.mxu0 %v3643_v49 }
 0xa4e   :  { %v6748_v37 = vsel %vm2713_vm4, %v2697_v11, %v2729_v15  ;;  %v2837_v44 = vmul.f32 %v6426_v14, %v7456_v12  ;;  %v7458_v53 = vrot.slane %v7457_v18, %v4796_v20  ;;  %v6761_v34 = vsel %vm2718_vm6, %v2702_v32, %v2734_v54  ;;  %3969 = vmatprep.mubr.bf16.mxu0 %v7375_v1  ;;  %v7463_v32 = vld [vmem:[#allocation7_spill] sm:$0xff] }
 0xa4f   :  { %v3188_v6 = vmul.f32 %v7454_v59, %v6606_v17  ;;  %v7459_v17 = vrot.slane %v7457_v18, %v4802_v22  ;;  %vm2854_vm7 = vcmp.ge.f32.partialorder %v2846_v51, 0.0  ;;  %v2862_v31 = vmul.f32 0.01, %v2846_v51 }
 0xa50   :  { %v2821_v5 = vmul.f32 %v7458_v53, %v2741_v43  ;;  %v7460_v33 = vrot.slane %v6206_v21, %v4839_v47  ;;  %v2701_v24 = vadd.f32 %v6464_v55, %v2680_v28  ;;  %v2845_v57 = vadd.f32 %v2837_v44, %v6464_v55  ;;  %v7468_v53 = vld [vmem:[#allocation6_spill] sm:$0xff] }
 0xa51   :  { %v2941_v2 = vmul.f32 %v7459_v17, %v6748_v37  ;;  %v3660_v63 = vpack.c.bf16 %v3188_v6, %v3068_v60  ;;  %v7461_v41 = vrot.slane %v6229_v36, %v4834_v45  ;;  %v7462_v9 = vrot.slane %v6229_v36, %v4839_v47 }
 0xa52   :  { %v3182_v58 = vmul.f32 %v7460_v33, %v6761_v34  ;;  %v6778_v11 = vsel %vm2854_vm7, %v2846_v51, %v2862_v31  ;;  %vm2717_vm8 = vcmp.ge.f32.partialorder %v2701_v24, 0.0  ;;  %v2733_v49 = vmul.f32 0.01, %v2701_v24  ;;  %v7465_v51 = vld [vmem:[#allocation9_spill] sm:$0xff] }
 0xa53   :  { %v3637_v0 = vpack.c.bf16 %v2941_v2, %v2821_v5  ;;  %v3067_v19 = vmul.f32 %v7461_v41, %v6585_v27  ;;  %v3187_v8 = vmul.f32 %v7462_v9, %v6637_v3  ;;  %3939 = vmatprep.subr.bf16.mxu0 %v3660_v63  ;;  %v2685_v35 = vmul.f32 %v6426_v14, %v7463_v32 }
 0xa54   :  { %v7464_v16 = vrot.slane %v6206_v21, %v4834_v45  ;;  %vm2853_vm9 = vcmp.ge.f32.partialorder %v2845_v57, 0.0  ;;  %v2861_v48 = vmul.f32 0.01, %v2845_v57  ;;  %v6786_v54 = vsel %vm2717_vm8, %v2701_v24, %v2733_v49  ;;  %v7470_v24 = vld [vmem:[#allocation8_spill] sm:$0xff] }
 0xa55   :  { %3815 = vmatpush1.bf16.msra.mxu1 %v3637_v0  ;;  %v3659_v15 = vpack.c.bf16 %v3187_v8, %v3067_v19  ;;  %v2706_v3 = vadd.f32 %v6464_v55, %v2685_v35  ;;  %v2842_v59 = vmul.f32 %v6426_v14, %v7465_v51  ;;  %v7466_v6 = vrot.slane %v6211_v61, %v5040_v46 }
 0xa56   :  { %v3062_v60 = vmul.f32 %v7464_v16, %v6778_v11  ;;  %v6795_v28 = vsel %vm2853_vm9, %v2845_v57, %v2861_v48  ;;  %v7467_v12 = vrot.slane %v7457_v18, %v4839_v47  ;;  %v2684_v5 = vmul.f32 %v6426_v14, %v7468_v53 }
 0xa57   :  { %v3308_v43 = vmul.f32 %v7466_v6, %v6627_v4  ;;  %3940 = vmatpush1.bf16.msra.mxu0 %v3659_v15  ;;  %v7469_v17 = vrot.slane %v7457_v18, %v4834_v45  ;;  %vm2722_vm10 = vcmp.ge.f32.partialorder %v2706_v3, 0.0  ;;  %v2738_v31 = vmul.f32 0.01, %v2706_v3  ;;  %v7473_v15 = vld [vmem:[#allocation15_spill] sm:$0xff] }
 0xa58   :  { %v3654_v40 = vpack.c.bf16 %v3182_v58, %v3062_v60  ;;  %v3181_v44 = vmul.f32 %v7467_v12, %v6786_v54  ;;  %v2850_v33 = vadd.f32 %v2842_v59, %v6464_v55  ;;  %v2705_v63 = vadd.f32 %v6464_v55, %v2684_v5  ;;  %v7472_v60 = vld [vmem:[#allocation13_spill] sm:$0xff]  ;;  %v7476_v5 = vld [vmem:[#allocation26_spill] sm:$0xff] }
 0xa59   :  { %v3061_v2 = vmul.f32 %v7469_v17, %v6795_v28  ;;  %v3676_v58 = vpack.c.bf16 %v3308_v43, %v6608_v52  ;;  %v2841_v0 = vmul.f32 %v6426_v14, %v7470_v24  ;;  %v7471_v57 = vrot.slane %v6229_v36, %v5040_v46  ;;  %v7478_v24 = vld [vmem:[#allocation14_spill] sm:$0xff] }
 0xa5a   :  { %3816 = vmatprep.subr.bf16.mxu1 %v3654_v40  ;;  %v6816_v9 = vsel %vm2722_vm10, %v2706_v3, %v2738_v31  ;;  %vm2858_vm11 = vcmp.ge.f32.partialorder %v2850_v33, 0.0  ;;  %v2866_v8 = vmul.f32 0.01, %v2850_v33  ;;  %vm2721_vm12 = vcmp.ge.f32.partialorder %v2705_v63, 0.0  ;;  %v7474_v3 = vld [vmem:[#allocation22_spill] sm:$0xff] }
 0xa5b   :  { %v3307_v41 = vmul.f32 %v7471_v57, %v6667_v42  ;;  %v3653_v19 = vpack.c.bf16 %v3181_v44, %v3061_v2  ;;  %3941 = vmatprep.subr.bf16.mxu0 %v3676_v58  ;;  %v2737_v49 = vmul.f32 0.01, %v2705_v63  ;;  %v2849_v32 = vadd.f32 %v2841_v0, %v6464_v55  ;;  %v7477_v58 = vld [vmem:[#allocation12_spill] sm:$0xff] }
 0xa5c   :  { %v6820_v16 = vsel %vm2858_vm11, %v2850_v33, %v2866_v8  ;;  %v3078_v48 = vmul.f32 %v6426_v14, %v7472_v60  ;;  %v3082_v51 = vmul.f32 %v6426_v14, %v7473_v15  ;;  %v3316_v59 = vmul.f32 %v6426_v14, %v7474_v3 }
 0xa5d   :  { %v3675_v35 = vpack.c.bf16 %v3307_v41, %v6646_v13  ;;  %3817 = vmatpush1.bf16.msra.mxu1 %v3653_v19  ;;  %v7475_v6 = vrot.slane %v6206_v21, %v5040_v46  ;;  %v6832_v40 = vsel %vm2721_vm12, %v2705_v63, %v2737_v49  ;;  %vm2857_vm13 = vcmp.ge.f32.partialorder %v2849_v32, 0.0 }
 0xa5e   :  { %v2865_v12 = vmul.f32 0.01, %v2849_v32  ;;  %v3086_v44 = vadd.f32 %v3078_v48, %v6464_v55  ;;  %v3090_v53 = vadd.f32 %v3082_v51, %v6464_v55  ;;  %v3320_v17 = vmul.f32 %v6426_v14, %v7476_v5 }
 0xa5f   :  { %v3302_v43 = vmul.f32 %v7475_v6, %v6820_v16  ;;  %3942 = vmatpush1.bf16.msra.mxu0 %v3675_v35  ;;  %v3324_v2 = vadd.f32 %v3316_v59, %v6464_v55  ;;  %v3077_v63 = vmul.f32 %v6426_v14, %v7477_v58  ;;  %v3081_v0 = vmul.f32 %v6426_v14, %v7478_v24 }
 0xa60   :  { %v6840_v33 = vsel %vm2857_vm13, %v2849_v32, %v2865_v12  ;;  %v7479_v57 = vrot.slane %v7457_v18, %v5040_v46  ;;  %vm3094_vm14 = vcmp.ge.f32.partialorder %v3086_v44, 0.0  ;;  %vm3098_vm15 = vcmp.ge.f32.partialorder %v3090_v53, 0.0 }
 0xa61   :  { %v3670_v31 = vpack.c.bf16 %v3302_v43, %v6816_v9  ;;  %v3102_v19 = vmul.f32 0.01, %v3086_v44  ;;  %v3106_v8 = vmul.f32 0.01, %v3090_v53  ;;  %v3328_v49 = vadd.f32 %v3320_v17, %v6464_v55 }
 0xa62   :  { %v3301_v41 = vmul.f32 %v7479_v57, %v6840_v33  ;;  %vm3332_vm1 = vcmp.ge.f32.partialorder %v3324_v2, 0.0  ;;  %v3340_v32 = vmul.f32 0.01, %v3324_v2  ;;  %v3085_v48 = vadd.f32 %v3077_v63, %v6464_v55  ;;  %v7484_v57 = vld [vmem:[#allocation20_spill] sm:$0xff] }
 0xa63   :  { %3818 = vmatprep.subr.bf16.mxu1 %v3670_v31  ;;  %v6852_v60 = vsel %vm3094_vm14, %v3086_v44, %v3102_v19  ;;  %v3089_v15 = vadd.f32 %v3081_v0, %v6464_v55  ;;  %v6856_v51 = vsel %vm3098_vm15, %v3090_v53, %v3106_v8  ;;  %v7480_v3 = vrot.slane %v6206_v21, %v5055_v62 }
 0xa64   :  { %v3669_v35 = vpack.c.bf16 %v3301_v41, %v6832_v40  ;;  %vm3336_vm2 = vcmp.ge.f32.partialorder %v3328_v49, 0.0  ;;  %v3344_v6 = vmul.f32 0.01, %v3328_v49  ;;  %v7481_v43 = vrot.slane %v6206_v21, %v5070_v30 }
 0xa65   :  { %v3422_v59 = vmul.f32 %v7480_v3, %v6852_v60  ;;  %v3348_v44 = vsel %vm3332_vm1, %v3324_v2, %v3340_v32  ;;  %vm3093_vm3 = vcmp.ge.f32.partialorder %v3085_v48, 0.0  ;;  %vm3097_vm4 = vcmp.ge.f32.partialorder %v3089_v15, 0.0  ;;  %v7485_v2 = vld [vmem:[#allocation24_spill] sm:$0xff] }
 0xa66   :  { %3819 = vmatpush1.bf16.msra.mxu1 %v3669_v35  ;;  %v3522_v12 = vmul.f32 %v7481_v43, %v6856_v51  ;;  %v6866_v5 = vsel %vm3336_vm2, %v3328_v49, %v3344_v6  ;;  %v7482_v53 = vrot.slane %v6211_v61, %v5055_v62  ;;  %v3101_v31 = vmul.f32 0.01, %v3085_v48  ;;  %v7486_v49 = vld [vmem:[#allocation17_spill] sm:$0xff]  ;;  %v7487_v35 = vld [vmem:[#allocation30_spill] sm:$0xff] }
 0xa67   :  { %v3105_v58 = vmul.f32 0.01, %v3089_v15  ;;  %v7483_v24 = vrot.slane %v6211_v61, %v5070_v30  ;;  %v3315_v21 = vmul.f32 %v6426_v14, %v7484_v57  ;;  %v3319_v41 = vmul.f32 %v6426_v14, %v7485_v2 }
 0xa68   :  { %v3428_v17 = vmul.f32 %v7482_v53, %v3348_v44  ;;  %v3686_v63 = vpack.c.bf16 %v3522_v12, %v3422_v59  ;;  %v6879_v19 = vsel %vm3093_vm3, %v3085_v48, %v3101_v31  ;;  %v3198_v32 = vmul.f32 %v6426_v14, %v7486_v49  ;;  %v7490_v31 = vld [vmem:[#allocation16_spill] sm:$0xff] }
 0xa69   :  { %v3528_v0 = vmul.f32 %v7483_v24, %v6866_v5  ;;  %v6881_v8 = vsel %vm3097_vm4, %v3089_v15, %v3105_v58  ;;  %v3436_v3 = vmul.f32 %v6426_v14, %v7487_v35  ;;  %v7488_v61 = vrot.slane %v7457_v18, %v5055_v62  ;;  %v7491_v24 = vld [vmem:[#allocation28_spill] sm:$0xff] }
 0xa6a   :  { %3820 = vmatprep.subr.bf16.mxu1 %v3686_v63  ;;  %v7489_v48 = vrot.slane %v7457_v18, %v5070_v30  ;;  %v3323_v15 = vadd.f32 %v3315_v21, %v6464_v55  ;;  %v3327_v12 = vadd.f32 %v3319_v41, %v6464_v55  ;;  %v3202_v44 = vadd.f32 %v3198_v32, %v6464_v55  ;;  %v4292_v18 = vld [vmem:[%s7327_s17 + $0x98] ss:$0 sm:$0xff]  ;;  %v4298_v41 = vld [vmem:[%s7327_s17 + $0xc8] ss:$0 sm:$0xff] }
 0xa6b   :  { %v3692_v59 = vpack.c.bf16 %v3528_v0, %v3428_v17  ;;  %v3421_v6 = vmul.f32 %v7488_v61, %v6879_v19  ;;  %v3440_v53 = vadd.f32 %v3436_v3, %v6464_v55  ;;  %v3197_v17 = vmul.f32 %v6426_v14, %v7490_v31 }
 0xa6c   :  { %v3521_v43 = vmul.f32 %v7489_v48, %v6881_v8  ;;  %vm3331_vm6 = vcmp.ge.f32.partialorder %v3323_v15, 0.0  ;;  %v3339_v63 = vmul.f32 0.01, %v3323_v15  ;;  %v3435_v0 = vmul.f32 %v6426_v14, %v7491_v24 }
 0xa6d   :  { %3943 = vmatprep.subr.bf16.mxu0 %v3692_v59  ;;  %vm3335_vm7 = vcmp.ge.f32.partialorder %v3327_v12, 0.0  ;;  %v3343_v57 = vmul.f32 0.01, %v3327_v12  ;;  %vm3206_vm8 = vcmp.ge.f32.partialorder %v3202_v44, 0.0  ;;  %v3210_v21 = vmul.f32 0.01, %v3202_v44 }
 0xa6e   :  { %v3685_v58 = vpack.c.bf16 %v3521_v43, %v3421_v6  ;;  %v3347_v2 = vsel %vm3331_vm6, %v3323_v15, %v3339_v63  ;;  %vm3444_vm9 = vcmp.ge.f32.partialorder %v3440_v53, 0.0  ;;  %v3448_v49 = vmul.f32 0.01, %v3440_v53 }
 0xa6f   :  { %v3201_v32 = vadd.f32 %v3197_v17, %v6464_v55  ;;  %v6910_v35 = vsel %vm3335_vm7, %v3327_v12, %v3343_v57  ;;  %v7492_v3 = vrot.slane %v6229_v36, %v5055_v62  ;;  %v6915_v61 = vsel %vm3206_vm8, %v3202_v44, %v3210_v21  ;;  %v4291_v12 = vld [vmem:[%s7327_s17 + $0x90] ss:$0 sm:$0xff]  ;;  %v4297_v44 = vld [vmem:[%s7327_s17 + $0xc0] ss:$0 sm:$0xff] }
 0xa70   :  { %3821 = vmatpush1.bf16.msra.mxu1 %v3685_v58  ;;  %v3439_v6 = vadd.f32 %v3435_v0, %v6464_v55  ;;  %v7493_v48 = vrot.slane %v6229_v36, %v5070_v30  ;;  %v3622_v15 = vmul.f32 %v4292_v18, %v6915_v61  ;;  %v6923_v31 = vsel %vm3444_vm9, %v3440_v53, %v3448_v49  ;;  %v7494_v18 = vld [vmem:[#allocation36_spill] sm:$0xff] }
 0xa71   :  { %v3427_v59 = vmul.f32 %v7492_v3, %v3347_v2  ;;  %vm3205_vm10 = vcmp.ge.f32.partialorder %v3201_v32, 0.0  ;;  %v3628_v17 = vmul.f32 %v4298_v41, %v6923_v31  ;;  %v3209_v58 = vmul.f32 0.01, %v3201_v32  ;;  %v7497_v41 = vld [vmem:[#allocation37_spill] sm:$0xff] }
 0xa72   :  { %v3527_v43 = vmul.f32 %v7493_v48, %v6910_v35  ;;  %vm3443_vm11 = vcmp.ge.f32.partialorder %v3439_v6, 0.0  ;;  %v3447_v63 = vmul.f32 0.01, %v3439_v6  ;;  %v3702_v24 = vpack.c.bf16 %v3622_v15, %v3622_v15 }
 0xa73   :  { %v7495_v53 = vrot.slane %v7494_v18, %v4796_v20  ;;  %v7496_v57 = vrot.slane %v7494_v18, %v4802_v22  ;;  %v3708_v2 = vpack.c.bf16 %v3628_v17, %v3628_v17  ;;  %v6940_v49 = vsel %vm3205_vm10, %v3201_v32, %v3209_v58 }
 0xa74   :  { %v3691_v36 = vpack.c.bf16 %v3527_v43, %v3427_v59  ;;  %v3451_v3 = vsel %vm3443_vm11, %v3439_v6, %v3447_v63  ;;  %v7498_v48 = vrot.slane %v7497_v41, %v4796_v20  ;;  %4307 = vmatprep.subr.msk.bf16.mxu1 %vm113_vm0, %v3702_v24  ;;  %v3621_v43 = vmul.f32 %v4291_v12, %v6940_v49 }
 0xa75   :  { %v2826_v0 = vmul.f32 %v7495_v53, %v6696_v25  ;;  %v2946_v21 = vmul.f32 %v7496_v57, %v6778_v11  ;;  %v7499_v25 = vrot.slane %v6193_v38, %v5070_v30  ;;  %v3627_v11 = vmul.f32 %v4297_v44, %v3451_v3 }
 0xa76   :  { %v2832_v59 = vmul.f32 %v7498_v48, %v6525_v26  ;;  %3944 = vmatpush1.bf16.msra.mxu0 %v3691_v36  ;;  %v7500_v6 = vrot.slane %v7497_v41, %v4802_v22  ;;  %v7501_v26 = vld [vmem:[#allocation38_spill] sm:$0xff]  ;;  %v3701_v24 = vpack.c.bf16 %v3621_v43, %v3621_v43  ;;  %v7504_v53 = vrot.slane %v6193_v38, %v4796_v20 }
 0xa77   :  { %v6951_v15 = vmul.f32 %v7499_v25, %v3451_v3  ;;  %4313 = vmatprep.subr.msk.bf16.mxu0 %vm113_vm0, %v3708_v2  ;;  %v3642_v32 = vpack.c.bf16 %v2946_v21, %v2826_v0  ;;  %v7502_v58 = vrot.slane %v7501_v26, %v4796_v20  ;;  %v7503_v12 = vrot.slane %v7501_v26, %v4802_v22 }
 0xa78   :  { %v2952_v17 = vmul.f32 %v7500_v6, %v6560_v7  ;;  %v3707_v44 = vpack.c.bf16 %v3627_v11, %v3627_v11  ;;  %v2831_v0 = vmul.f32 %v7504_v53, %v6551_v39  ;;  %v7505_v7 = vrot.slane %v6193_v38, %v4802_v22 }
 0xa79   :  { %v2825_v63 = vmul.f32 %v7502_v58, %v6748_v37  ;;  %v2945_v36 = vmul.f32 %v7503_v12, %v6795_v28  ;;  %v7506_v37 = vld [vmem:[#allocation4_spill] sm:$0xff]  ;;  %v7507_v28 = vrot.slane %v7494_v18, %v4839_v47  ;;  %v3732_v43 = vsel %vm113_vm0, %v3701_v24, 0  ;;  %v7510_v58 = vld [vmem:[#allocation3_spill] sm:$0xff] }
 0xa7a   :  { %v2951_v57 = vmul.f32 %v7505_v7, %v6585_v27  ;;  %v3648_v21 = vpack.c.bf16 %v2952_v17, %v2832_v59  ;;  %v2958_v3 = vmul.f32 %v6426_v14, %v7506_v37  ;;  %v3750_v25 = vsel %vm113_vm0, %v3707_v44, 0  ;;  %3823 = vmatpush1.bf16.msra.mxu1 %v3732_v43 }
 0xa7b   :  { %v3641_v2 = vpack.c.bf16 %v2945_v36, %v2825_v63  ;;  %v3186_v48 = vmul.f32 %v7507_v28, %v6816_v9  ;;  %v7508_v11 = vrot.slane %v7497_v41, %v4834_v45  ;;  %3946 = vmatpush1.bf16.msra.mxu0 %v3750_v25  ;;  %v7509_v6 = vrot.slane %v7497_v41, %v4839_v47  ;;  %v7516_v28 = vld [vmem:[#allocation10_spill] sm:$0xff] }
 0xa7c   :  { %v3647_v39 = vpack.c.bf16 %v2951_v57, %v2831_v0  ;;  %v2966_v59 = vadd.f32 %v2958_v3, %v6464_v55  ;;  %v2957_v63 = vmul.f32 %v6426_v14, %v7510_v58  ;;  %3896 = vmatprep.subr.bf16.mxu1 %v3642_v32  ;;  %4019 = vmatprep.subr.bf16.mxu0 %v3648_v21  ;;  %v7514_v57 = vld [vmem:[#allocation11_spill] sm:$0xff] }
 0xa7d   :  { %v3072_v27 = vmul.f32 %v7508_v11, %v6570_v50  ;;  %v3192_v17 = vmul.f32 %v7509_v6, %v6608_v52  ;;  %v7511_v12 = vrot.slane %v7501_v26, %v4839_v47  ;;  %v7512_v50 = vrot.slane %v6193_v38, %v4834_v45  ;;  %4308 = vmatmul.mubr.msk.bf16.vlgmr.msra.gmra.mrb[100].mxu1 %vm2343_vm5, %v6708_v56 }
 0xa7e   :  { %v7513_v44 = vrot.slane %v6193_v38, %v4839_v47  ;;  %vm2974_vm12 = vcmp.ge.f32.partialorder %v2966_v59, 0.0  ;;  %v2982_v53 = vmul.f32 0.01, %v2966_v59  ;;  %v2965_v32 = vadd.f32 %v2957_v63, %v6464_v55  ;;  %4314 = vmatmul.mubr.msk.bf16.vlgmr.msra.gmra.mrb[108].mxu0 %vm2343_vm5, %v6708_v56  ;;  %3897 = vmatpush1.bf16.msra.mxu1 %v3641_v2 }
 0xa7f   :  { %v3185_v36 = vmul.f32 %v7511_v12, %v6832_v40  ;;  %v3071_v24 = vmul.f32 %v7512_v50, %v6597_v23  ;;  %v3664_v0 = vpack.c.bf16 %v3192_v17, %v3072_v27  ;;  %v2962_v23 = vmul.f32 %v6426_v14, %v7514_v57  ;;  %4020 = vmatpush1.bf16.msra.mxu0 %v3647_v39 }
 0xa80   :  { %v3191_v52 = vmul.f32 %v7513_v44, %v6646_v13  ;;  %v7515_v21 = vrot.slane %v7497_v41, %v5040_v46  ;;  %v2990_v37 = vsel %vm2974_vm12, %v2966_v59, %v2982_v53  ;;  %vm2973_vm13 = vcmp.ge.f32.partialorder %v2965_v32, 0.0  ;;  %3928 = vmatprep.mubr.bf16.mxu1 %v7375_v1  ;;  %4051 = vmatprep.mubr.bf16.mxu0 %v7375_v1 }
 0xa81   :  { %v2981_v3 = vmul.f32 0.01, %v2965_v32  ;;  %v2961_v43 = vmul.f32 %v6426_v14, %v7516_v28  ;;  %v7517_v25 = vrot.slane %v7494_v18, %v4834_v45  ;;  %4021 = vmatprep.subr.bf16.mxu0 %v3664_v0  ;;  %v2970_v27 = vadd.f32 %v2962_v23, %v6464_v55  ;;  %v7528_v28 = vld [vmem:[#allocation19_spill] sm:$0xff] }
 0xa82   :  { %v3663_v7 = vpack.c.bf16 %v3191_v52, %v3071_v24  ;;  %v3312_v13 = vmul.f32 %v7515_v21, %v6676_v29  ;;  %v3679_v29 = vpack.c.bf16 %v6693_v10, %v6667_v42  ;;  %v7518_v59 = vrot.slane %v7494_v18, %v5055_v62 }
 0xa83   :  { %v3066_v11 = vmul.f32 %v7517_v25, %v2990_v37  ;;  %v2989_v2 = vsel %vm2973_vm13, %v2965_v32, %v2981_v3  ;;  %v2969_v39 = vadd.f32 %v2961_v43, %v6464_v55  ;;  %v7519_v58 = vrot.slane %v7494_v18, %v5070_v30 }
 0xa84   :  { %v3680_v6 = vpack.c.bf16 %v3312_v13, %v6627_v4  ;;  %v3426_v17 = vmul.f32 %v7518_v59, %v6856_v51  ;;  %v7520_v4 = vrot.slane %v7501_v26, %v4834_v45  ;;  %vm2978_vm14 = vcmp.ge.f32.partialorder %v2970_v27, 0.0  ;;  %4022 = vmatpush1.bf16.msra.mxu0 %v3663_v7 }
 0xa85   :  { %v3526_v63 = vmul.f32 %v7519_v58, %v6915_v61  ;;  %v3658_v12 = vpack.c.bf16 %v3186_v48, %v3066_v11  ;;  %v2986_v10 = vmul.f32 0.01, %v2970_v27  ;;  %vm2977_vm15 = vcmp.ge.f32.partialorder %v2969_v39, 0.0 }
 0xa86   :  { %v3065_v42 = vmul.f32 %v7520_v4, %v2989_v2  ;;  %v2985_v50 = vmul.f32 0.01, %v2969_v39  ;;  %v7521_v44 = vrot.slane %v7497_v41, %v5055_v62  ;;  %4023 = vmatprep.subr.bf16.mxu0 %v3680_v6  ;;  %v7522_v0 = vrot.slane %v7497_v41, %v5070_v30  ;;  %v7530_v2 = vld [vmem:[#allocation18_spill] sm:$0xff] }
 0xa87   :  { %v3690_v24 = vpack.c.bf16 %v3526_v63, %v3426_v17  ;;  %3898 = vmatprep.subr.bf16.mxu1 %v3658_v12  ;;  %v7043_v48 = vsel %vm2978_vm14, %v2970_v27, %v2986_v10  ;;  %v7523_v7 = vrot.slane %v7494_v18, %v5040_v46  ;;  %v7525_v21 = vrot.slane %v7501_v26, %v5070_v30  ;;  %v7529_v27 = vld [vmem:[#allocation43_spill] sm:$0xff]  ;;  %v7532_v12 = vld [vmem:[#allocation40_spill] sm:$0xff] }
 0xa88   :  { %v3432_v52 = vmul.f32 %v7521_v44, %v6866_v5  ;;  %v3657_v53 = vpack.c.bf16 %v3185_v36, %v3065_v42  ;;  %v3532_v32 = vmul.f32 %v7522_v0, %v6923_v31  ;;  %v7053_v23 = vsel %vm2977_vm15, %v2969_v39, %v2985_v50  ;;  %4024 = vmatpush1.bf16.msra.mxu0 %v3679_v29  ;;  %v4302_v29 = vld [vmem:[%s7327_s17 + $0xe8] ss:$0 sm:$0xff] }
 0xa89   :  { %v3306_v57 = vmul.f32 %v7523_v7, %v7043_v48  ;;  %v7524_v5 = vrot.slane %v7501_v26, %v5055_v62  ;;  %v3525_v13 = vmul.f32 %v7525_v21, %v6940_v49  ;;  %v7526_v31 = vrot.slane %v7501_v26, %v5040_v46 }
 0xa8a   :  { %3899 = vmatpush1.bf16.msra.mxu1 %v3657_v53  ;;  %v3696_v18 = vpack.c.bf16 %v3532_v32, %v3432_v52  ;;  %v7527_v37 = vrot.slane %v6193_v38, %v5055_v62  ;;  %v3218_v43 = vmul.f32 %v6426_v14, %v7528_v28  ;;  %v3540_v6 = vadd.f32 %v7529_v27, %v6464_v55  ;;  %v7535_v32 = vld [vmem:[#allocation41_spill] sm:$0xff] }
 0xa8b   :  { %v3425_v36 = vmul.f32 %v7524_v5, %v6881_v8  ;;  %v3305_v41 = vmul.f32 %v7526_v31, %v7053_v23  ;;  %v3674_v25 = vpack.c.bf16 %v3306_v57, %v6820_v16  ;;  %v3217_v26 = vmul.f32 %v6426_v14, %v7530_v2 }
 0xa8c   :  { %v3431_v3 = vmul.f32 %v7527_v37, %v6910_v35  ;;  %4025 = vmatprep.subr.bf16.mxu0 %v3696_v18  ;;  %v3222_v38 = vadd.f32 %v3218_v43, %v6464_v55  ;;  %v7531_v35 = vld [vmem:[#allocation32_spill] sm:$0xff]  ;;  %vm3544_vm1 = vcmp.ge.f32.partialorder %v3540_v6, 0.0  ;;  %v3548_v58 = vmul.f32 0.01, %v3540_v6 }
 0xa8d   :  { %v3689_v11 = vpack.c.bf16 %v3525_v13, %v3425_v36  ;;  %v3673_v39 = vpack.c.bf16 %v3305_v41, %v6840_v33  ;;  %v3535_v17 = vmul.f32 %v6426_v14, %v7531_v35  ;;  %3900 = vmatprep.subr.bf16.mxu1 %v3674_v25  ;;  %v3221_v63 = vadd.f32 %v3217_v26, %v6464_v55 }
 0xa8e   :  { %v3695_v59 = vpack.c.bf16 %v6951_v15, %v3431_v3  ;;  %v7533_v4 = vrot.slane %v7532_v12, %v4796_v20  ;;  %v4296_v15 = vld [vmem:[%s7327_s17 + $0xb8] ss:$0 sm:$0xff]  ;;  %vm3226_vm2 = vcmp.ge.f32.partialorder %v3222_v38, 0.0  ;;  %v3230_v10 = vmul.f32 0.01, %v3222_v38  ;;  %v7538_v3 = vld [vmem:[#allocation39_spill] sm:$0xff] }
 0xa8f   :  { %3901 = vmatpush1.bf16.msra.mxu1 %v3673_v39  ;;  %v3539_v50 = vadd.f32 %v3535_v17, %v6464_v55  ;;  %v7534_v44 = vrot.slane %v7532_v12, %v4802_v22  ;;  %v3552_v53 = vsel %vm3544_vm1, %v3540_v6, %v3548_v58  ;;  %vm3225_vm3 = vcmp.ge.f32.partialorder %v3221_v63, 0.0 }
 0xa90   :  { %v2830_v42 = vmul.f32 %v7533_v4, %v6761_v34  ;;  %3902 = vmatprep.subr.bf16.mxu1 %v3690_v24  ;;  %4026 = vmatpush1.bf16.msra.mxu0 %v3695_v59  ;;  %v4295_v34 = vld [vmem:[%s7327_s17 + $0xb0] ss:$0 sm:$0xff]  ;;  %v3229_v0 = vmul.f32 0.01, %v3221_v63  ;;  %v7536_v7 = vrot.slane %v7535_v32, %v4796_v20  ;;  %v7106_v5 = vsel %vm3226_vm2, %v3222_v38, %v3230_v10  ;;  %v4301_v24 = vld [vmem:[%s7327_s17 + $0xe0] ss:$0 sm:$0xff] }
 0xa91   :  { %v2950_v52 = vmul.f32 %v7534_v44, %v6816_v9  ;;  %v3632_v36 = vmul.f32 %v4302_v29, %v3552_v53  ;;  %vm3543_vm4 = vcmp.ge.f32.partialorder %v3539_v50, 0.0  ;;  %v3547_v21 = vmul.f32 0.01, %v3539_v50 }
 0xa92   :  { %v2829_v57 = vmul.f32 %v7536_v7, %v6786_v54  ;;  %v3626_v13 = vmul.f32 %v4296_v15, %v7106_v5  ;;  %v3233_v31 = vsel %vm3225_vm3, %v3221_v63, %v3229_v0  ;;  %v7537_v18 = vrot.slane %v7535_v32, %v4802_v22 }
 0xa93   :  { %v3646_v41 = vpack.c.bf16 %v2950_v52, %v2830_v42  ;;  %3903 = vmatpush1.bf16.msra.mxu1 %v3689_v11  ;;  %v3712_v54 = vpack.c.bf16 %v3632_v36, %v3632_v36  ;;  %v7539_v28 = vrot.slane %v7538_v3, %v5040_v46  ;;  %v3625_v25 = vmul.f32 %v4295_v34, %v3233_v31  ;;  %v7547_v34 = vld [vmem:[#allocation27_spill] sm:$0xff] }
 0xa94   :  { %v2949_v37 = vmul.f32 %v7537_v18, %v6832_v40  ;;  %v3551_v27 = vsel %vm3543_vm4, %v3539_v50, %v3547_v21  ;;  %v3706_v6 = vpack.c.bf16 %v3626_v13, %v3626_v13  ;;  %v7540_v39 = vrot.slane %v7532_v12, %v4834_v45  ;;  %v7546_v50 = vld [vmem:[#allocation23_spill] sm:$0xff]  ;;  %v7548_v13 = vld [vmem:[#allocation21_spill] sm:$0xff] }
 0xa95   :  { %v7119_v43 = vmul.f32 %v7539_v28, %v3233_v31  ;;  %v3631_v2 = vmul.f32 %v4301_v24, %v3551_v27  ;;  %4317 = vmatprep.subr.msk.bf16.mxu0 %vm113_vm0, %v3712_v54  ;;  %v3705_v38 = vpack.c.bf16 %v3625_v25, %v3625_v25  ;;  %v7541_v11 = vrot.slane %v7532_v12, %v4839_v47  ;;  %v7549_v18 = vld [vmem:[#allocation25_spill] sm:$0xff]  ;;  %v7550_v28 = vld [vmem:[#allocation31_spill] sm:$0xff] }
 0xa96   :  { %v3645_v26 = vpack.c.bf16 %v2949_v37, %v2829_v57  ;;  %v3070_v59 = vmul.f32 %v7540_v39, %v6820_v16  ;;  %v7542_v17 = vrot.slane %v7535_v32, %v4834_v45  ;;  %v7543_v58 = vrot.slane %v7535_v32, %v4839_v47  ;;  %4311 = vmatprep.subr.msk.bf16.mxu1 %vm113_vm0, %v3706_v6  ;;  %v7551_v27 = vld [vmem:[#allocation29_spill] sm:$0xff] }
 0xa97   :  { %v3190_v35 = vmul.f32 %v7541_v11, %v6852_v60  ;;  %v3711_v4 = vpack.c.bf16 %v3631_v2, %v3631_v2  ;;  %v7544_v42 = vrot.slane %v7532_v12, %v5040_v46  ;;  %v7545_v60 = vrot.slane %v7535_v32, %v5040_v46 }
 0xa98   :  { %v3069_v29 = vmul.f32 %v7542_v17, %v6840_v33  ;;  %v3189_v63 = vmul.f32 %v7543_v58, %v6879_v19  ;;  %v3318_v44 = vmul.f32 %v6426_v14, %v7546_v50  ;;  %v3744_v52 = vsel %vm113_vm0, %v3705_v38, 0  ;;  %v4300_v58 = vld [vmem:[%s7327_s17 + $0xd8] ss:$0 sm:$0xff]  ;;  %v7554_v50 = vld [vmem:[#allocation42_spill] sm:$0xff] }
 0xa99   :  { %v3310_v15 = vmul.f32 %v7544_v42, %v6915_v61  ;;  %v7147_v10 = vmul.f32 %v7545_v60, %v6940_v49  ;;  %v3662_v19 = vpack.c.bf16 %v3190_v35, %v3070_v59  ;;  %v3322_v0 = vmul.f32 %v6426_v14, %v7547_v34  ;;  %3905 = vmatpush1.bf16.msra.mxu1 %v3744_v52 }
 0xa9a   :  { %v3661_v53 = vpack.c.bf16 %v3189_v63, %v3069_v29  ;;  %v3762_v7 = vsel %vm113_vm0, %v3711_v4, 0  ;;  %v3326_v24 = vadd.f32 %v3318_v44, %v6464_v55  ;;  %3978 = vmatprep.subr.bf16.mxu1 %v3646_v41  ;;  %v3317_v31 = vmul.f32 %v6426_v14, %v7548_v13 }
 0xa9b   :  { %v3678_v57 = vpack.c.bf16 %v3310_v15, %v6856_v51  ;;  %v3677_v36 = vpack.c.bf16 %v7147_v10, %v6881_v8  ;;  %4028 = vmatpush1.bf16.msra.mxu0 %v3762_v7  ;;  %v3330_v21 = vadd.f32 %v3322_v0, %v6464_v55  ;;  %v3321_v37 = vmul.f32 %v6426_v14, %v7549_v18 }
 0xa9c   :  { %vm3334_vm6 = vcmp.ge.f32.partialorder %v3326_v24, 0.0  ;;  %v3342_v54 = vmul.f32 0.01, %v3326_v24  ;;  %v3438_v25 = vmul.f32 %v6426_v14, %v7550_v28  ;;  %v3437_v6 = vmul.f32 %v6426_v14, %v7551_v27  ;;  %4312 = vmatmul.mubr.msk.bf16.vlgmr.msra.gmra.mrb[104].mxu1 %vm2343_vm5, %v6708_v56  ;;  %v4647_v28 = vld [vmem:[%s7327_s17 + $0x78] sm:$0xff] }
 0xa9d   :  { %vm3338_vm7 = vcmp.ge.f32.partialorder %v3330_v21, 0.0  ;;  %v3346_v41 = vmul.f32 0.01, %v3330_v21  ;;  %v3325_v2 = vadd.f32 %v3317_v31, %v6464_v55  ;;  %v3329_v39 = vadd.f32 %v3321_v37, %v6464_v55  ;;  %3979 = vmatpush1.bf16.msra.mxu1 %v3645_v26  ;;  %v4299_v26 = vld [vmem:[%s7327_s17 + $0xd0] ss:$0 sm:$0xff]  ;;  %4010 = vmatprep.mubr.bf16.mxu1 %v7375_v1 }
 0xa9e   :  { %4318 = vmatmul.mubr.msk.bf16.vlgmr.msra.gmra.mrb[112].mxu0 %vm2343_vm5, %v6708_v56  ;;  %v3350_v59 = vsel %vm3334_vm6, %v3326_v24, %v3342_v54  ;;  %v3442_v38 = vadd.f32 %v3438_v25, %v6464_v55  ;;  %v3441_v11 = vadd.f32 %v3437_v6, %v6464_v55  ;;  %3980 = vmatprep.subr.bf16.mxu1 %v3662_v19 }
 0xa9f   :  { %v3354_v35 = vsel %vm3338_vm7, %v3330_v21, %v3346_v41  ;;  %v7552_v17 = vrot.slane %v7532_v12, %v5055_v62  ;;  %vm3333_vm8 = vcmp.ge.f32.partialorder %v3325_v2, 0.0  ;;  %vm3337_vm9 = vcmp.ge.f32.partialorder %v3329_v39, 0.0 }
 0xaa0   :  { %v7553_v63 = vrot.slane %v7532_v12, %v5070_v30  ;;  %v3341_v42 = vmul.f32 0.01, %v3325_v2  ;;  %v3345_v15 = vmul.f32 0.01, %v3329_v39  ;;  %vm3446_vm10 = vcmp.ge.f32.partialorder %v3442_v38, 0.0 }
 0xaa1   :  { %v3430_v29 = vmul.f32 %v7552_v17, %v3350_v59  ;;  %v3450_v60 = vmul.f32 0.01, %v3442_v38  ;;  %vm3445_vm11 = vcmp.ge.f32.partialorder %v3441_v11, 0.0  ;;  %v3449_v10 = vmul.f32 0.01, %v3441_v11  ;;  %3981 = vmatpush1.bf16.msra.mxu1 %v3661_v53 }
 0xaa2   :  { %v3530_v4 = vmul.f32 %v7553_v63, %v3354_v35  ;;  %v7555_v44 = vrot.slane %v7554_v50, %v4796_v20  ;;  %v3349_v34 = vsel %vm3333_vm8, %v3325_v2, %v3341_v42  ;;  %v3353_v0 = vsel %vm3337_vm9, %v3329_v39, %v3345_v15  ;;  %3982 = vmatprep.subr.bf16.mxu1 %v3678_v57 }
 0xaa3   :  { %v7556_v12 = vrot.slane %v7554_v50, %v4802_v22  ;;  %v7557_v24 = vrot.slane %v7535_v32, %v5055_v62  ;;  %v7558_v13 = vrot.slane %v7535_v32, %v5070_v30  ;;  %v3454_v18 = vsel %vm3446_vm10, %v3442_v38, %v3450_v60 }
 0xaa4   :  { %v2834_v52 = vmul.f32 %v7555_v44, %v6816_v9  ;;  %v3694_v19 = vpack.c.bf16 %v3530_v4, %v3430_v29  ;;  %v3453_v9 = vsel %vm3445_vm11, %v3441_v11, %v3449_v10  ;;  %v3630_v53 = vmul.f32 %v4300_v58, %v3454_v18 }
 0xaa5   :  { %v2954_v7 = vmul.f32 %v7556_v12, %v6820_v16  ;;  %v3429_v21 = vmul.f32 %v7557_v24, %v3349_v34  ;;  %v3529_v31 = vmul.f32 %v7558_v13, %v3353_v0  ;;  %v3629_v37 = vmul.f32 %v4299_v26, %v3453_v9  ;;  %3983 = vmatpush1.bf16.msra.mxu1 %v3677_v36  ;;  %v7267_v12 = vpop.permute.xlu0 %3719 }
 0xaa6   :  { %v3418_v16 = vrot.slane %v4647_v28, %v5055_v62  ;;  %v7559_v25 = vrot.slane %v7538_v3, %v4796_v20  ;;  %v7560_v32 = vrot.slane %v7538_v3, %v4802_v22  ;;  %v7561_v41 = vrot.slane %v7554_v50, %v4834_v45  ;;  %3984 = vmatprep.subr.bf16.mxu1 %v3694_v19 }
 0xaa7   :  { %v3650_v54 = vpack.c.bf16 %v2954_v7, %v2834_v52  ;;  %v3693_v57 = vpack.c.bf16 %v3529_v31, %v3429_v21  ;;  %v7562_v39 = vrot.slane %v7538_v3, %v5070_v30  ;;  %v7563_v20 = vrot.slane %v7554_v50, %v4839_v47 }
 0xaa8   :  { %v2833_v27 = vmul.f32 %v7559_v25, %v6832_v40  ;;  %v2953_v6 = vmul.f32 %v7560_v32, %v6840_v33  ;;  %v3074_v2 = vmul.f32 %v7561_v41, %v7043_v48  ;;  %v7564_v22 = vrot.slane %v7538_v3, %v4834_v45 }
 0xaa9   :  { %v3533_v59 = vmul.f32 %v7562_v39, %v3453_v9  ;;  %v3194_v40 = vmul.f32 %v7563_v20, %v6856_v51  ;;  %v7565_v48 = vrot.slane %v7538_v3, %v4839_v47  ;;  %v7566_v11 = vrot.slane %v7554_v50, %v5040_v46  ;;  %v4648_v47 = vld [vmem:[%s7327_s17 + $0x70] sm:$0xff]  ;;  %3985 = vmatpush1.bf16.msra.mxu1 %v3693_v57  ;;  %v7567_v3 = vld [vmem:[#allocation34_spill] sm:$0xff] }
 0xaaa   :  { %v3073_v33 = vmul.f32 %v7564_v22, %v7053_v23  ;;  %v3649_v38 = vpack.c.bf16 %v2953_v6, %v2833_v27  ;;  %v3681_v51 = vpack.c.bf16 %v7119_v43, %v6940_v49  ;;  %v3710_v29 = vpack.c.bf16 %v3630_v53, %v3630_v53 }
 0xaab   :  { %v3193_v36 = vmul.f32 %v7565_v48, %v6881_v8  ;;  %v3314_v17 = vmul.f32 %v7566_v11, %v7106_v5  ;;  %v3666_v58 = vpack.c.bf16 %v3194_v40, %v3074_v2  ;;  %v3434_v26 = vmul.f32 %v3418_v16, %v3354_v35 }
 0xaac   :  { %v3518_v45 = vrot.slane %v4647_v28, %v5070_v30  ;;  %v3709_v23 = vpack.c.bf16 %v3629_v37, %v3629_v37  ;;  %v3414_v8 = vrot.slane %v4648_v47, %v5055_v62  ;;  %4315 = vmatprep.subr.msk.bf16.mxu1 %vm113_vm0, %v3710_v29  ;;  %v3538_v43 = vmul.f32 %v6426_v14, %v7567_v3  ;;  %v7568_v30 = vld [vmem:[#allocation33_spill] sm:$0xff] }
 0xaad   :  { %v3665_v63 = vpack.c.bf16 %v3193_v36, %v3073_v33  ;;  %v3682_v4 = vpack.c.bf16 %v3314_v17, %v6915_v61  ;;  %v3537_v35 = vmul.f32 %v6426_v14, %v7568_v30  ;;  %v4304_v14 = vld [vmem:[%s7327_s17 + $0xf8] ss:$0 sm:$0xff] }
 0xaae   :  { %v3534_v46 = vmul.f32 %v3518_v45, %v3454_v18  ;;  %v3433_v49 = vmul.f32 %v3414_v8, %v3353_v0  ;;  %v3756_v61 = vsel %vm113_vm0, %v3709_v23, 0  ;;  %v3542_v15 = vadd.f32 %v3538_v43, %v6464_v55 }
 0xaaf   :  { %3987 = vmatpush1.bf16.msra.mxu1 %v3756_v61  ;;  %v3541_v62 = vadd.f32 %v3537_v35, %v6464_v55  ;;  %v4303_v55 = vld [vmem:[%s7327_s17 + $0xf0] ss:$0 sm:$0xff] }
 0xab0   :  { %v3698_v5 = vpack.c.bf16 %v3534_v46, %v3434_v26  ;;  %v3697_v42 = vpack.c.bf16 %v3533_v59, %v3433_v49  ;;  %4060 = vmatprep.subr.bf16.mxu1 %v3650_v54  ;;  %v3550_v60 = vmul.f32 0.01, %v3542_v15  ;;  %vm3546_vm12 = vcmp.ge.f32.partialorder %v3542_v15, 0.0 }
 0xab1   :  { %v3549_v10 = vmul.f32 0.01, %v3541_v62  ;;  %vm3545_vm13 = vcmp.ge.f32.partialorder %v3541_v62, 0.0 }
 0xab2   :  { %4316 = vmatmul.mubr.msk.bf16.vlgmr.msra.gmra.mrb[108].mxu1 %vm2343_vm5, %v6708_v56  ;;  %v3554_v50 = vsel %vm3546_vm12, %v3542_v15, %v3550_v60 }
 0xab3   :  { %4061 = vmatpush1.bf16.msra.mxu1 %v3649_v38  ;;  %4092 = vmatprep.mubr.bf16.mxu1 %v7375_v1  ;;  %v3553_v44 = vsel %vm3545_vm13, %v3541_v62, %v3549_v10  ;;  %v3634_v52 = vmul.f32 %v4304_v14, %v3554_v50 }
 0xab4   :  { %4062 = vmatprep.subr.bf16.mxu1 %v3666_v58  ;;  %v3633_v19 = vmul.f32 %v4303_v55, %v3553_v44 }
 0xab5   :  { %v3714_v1 = vpack.c.bf16 %v3634_v52, %v3634_v52 }
 0xab6   :  { %v3713_v34 = vpack.c.bf16 %v3633_v19, %v3633_v19 }
 0xab7   :  { %4063 = vmatpush1.bf16.msra.mxu1 %v3665_v63 }
 0xab8   :  { %4064 = vmatprep.subr.bf16.mxu1 %v3682_v4  ;;  %v3768_v0 = vsel %vm113_vm0, %v3713_v34, 0 }
 0xabb   :  { %4065 = vmatpush1.bf16.msra.mxu1 %v3681_v51 }
 0xabc   :  { %4066 = vmatprep.subr.bf16.mxu1 %v3698_v5 }
 0xabf   :  { %4067 = vmatpush1.bf16.msra.mxu1 %v3697_v42 }
 0xac0   :  { %4319 = vmatprep.subr.msk.bf16.mxu1 %vm113_vm0, %v3714_v1 }
 0xac3   :  { %4069 = vmatpush1.bf16.msra.mxu1 %v3768_v0 }
 0xac6   :  { %4320 = vmatmul.mubr.msk.bf16.vlgmr.msra.gmra.mrb[112].mxu1 %vm2343_vm5, %v6708_v56 }
 0xb1b   :  { %v3807_v7 = vpop.f32.mrb[96].mxu1 }
 0xb1c   :  { %v3808_v24 = vadd.f32 %v3807_v7, %v7267_v12  ;;  %v3809_v21 = vpop.f32.mrb[97].mxu1 }
 0xb1d   :  { %v3810_v13 = vadd.f32 %v3809_v21, %v7267_v12  ;;  %v3811_v31 = vpop.f32.mrb[98].mxu1 }
 0xb1e   :  { %4615 = vtanh.f32 %v3808_v24  ;;  %v3812_v18 = vpop.f32.mrb[99].mxu1 }
 0xb1f   :  { %v3889_v9 = vpop.f32.mrb[104].mxu0  ;;  %4617 = vtanh.f32 %v3810_v13 }
 0xb20   :  { %v3890_v53 = vadd.f32 %v3889_v9, %v7267_v12  ;;  %v3891_v37 = vpop.f32.mrb[105].mxu0 }
 0xb21   :  { %v3892_v54 = vadd.f32 %v3891_v37, %v7267_v12  ;;  %v3893_v28 = vpop.f32.mrb[106].mxu0 }
 0xb22   :  { %4619 = vtanh.f32 %v3890_v53  ;;  %v3894_v56 = vpop.f32.mrb[107].mxu0 }
 0xb23   :  { %4621 = vtanh.f32 %v3892_v54 }
 0xb28   :  { %v4616_v16 = vpop.eup %4615 }
 0xb29   :  { %v4618_v57 = vpop.eup %4617 }
 0xb2a   :  { %v4133_v25 = vcombine.low %v4616_v16, %v4618_v57 }
 0xb2c   :  { %v4620_v27 = vpop.eup %4619  ;;  %4149 = vst [vmem:[%s7329_s20] sm:$0x77] %v4133_v25 }
 0xb2d   :  { %v4622_v32 = vpop.eup %4621 }
 0xb2e   :  { %v4135_v6 = vcombine.low %v4620_v27, %v4622_v32 }
 0xb30   :  { %4151 = vst [vmem:[%s7329_s20 + $0x10] sm:$0x77] %v4135_v6 }
 0xb50   :  { %v3848_v41 = vpop.f32.mrb[100].mxu1 }
 0xb51   :  { %v3971_v2 = vpop.f32.mrb[108].mxu0  ;;  %v3849_v39 = vadd.f32 %v3848_v41, %v7267_v12  ;;  %v3850_v20 = vpop.f32.mrb[101].mxu1 }
 0xb52   :  { %v3972_v59 = vadd.f32 %v3971_v2, %v7267_v12  ;;  %v3973_v40 = vpop.f32.mrb[109].mxu0  ;;  %v3851_v22 = vadd.f32 %v3850_v20, %v7267_v12  ;;  %v3852_v38 = vpop.f32.mrb[102].mxu1 }
 0xb53   :  { %v3974_v33 = vadd.f32 %v3973_v40, %v7267_v12  ;;  %v3975_v48 = vpop.f32.mrb[110].mxu0  ;;  %4623 = vtanh.f32 %v3849_v39  ;;  %v3853_v36 = vpop.f32.mrb[103].mxu1 }
 0xb54   :  { %v3976_v11 = vpop.f32.mrb[111].mxu0  ;;  %4625 = vtanh.f32 %v3972_v59 }
 0xb55   :  { %4627 = vtanh.f32 %v3851_v22 }
 0xb56   :  { %4629 = vtanh.f32 %v3974_v33 }
 0xb5d   :  { %v4624_v17 = vpop.eup %4623 }
 0xb5e   :  { %v4626_v51 = vpop.eup %4625 }
 0xb5f   :  { %v4628_v29 = vpop.eup %4627 }
 0xb60   :  { %v4630_v58 = vpop.eup %4629  ;;  %v4134_v26 = vcombine.low %v4624_v17, %v4628_v29 }
 0xb61   :  { %v4137_v45 = vcombine.low %v4626_v51, %v4630_v58 }
 0xb62   :  { %4150 = vst [vmem:[%s7329_s20 + $0x8] sm:$0x77] %v4134_v26 }
 0xb63   :  { %4153 = vst [vmem:[%s7329_s20 + $0x20] sm:$0x77] %v4137_v45 }
 0xb6f   :  { %v3930_v23 = vpop.f32.mrb[104].mxu1 }
 0xb70   :  { %v3931_v63 = vadd.f32 %v3930_v23, %v7267_v12  ;;  %v3932_v47 = vpop.f32.mrb[105].mxu1 }
 0xb71   :  { %v4053_v4 = vpop.f32.mrb[112].mxu0  ;;  %v3933_v46 = vadd.f32 %v3932_v47, %v7267_v12  ;;  %v3934_v5 = vpop.f32.mrb[106].mxu1 }
 0xb72   :  { %v4054_v8 = vadd.f32 %v4053_v4, %v7267_v12  ;;  %v4055_v49 = vpop.f32.mrb[113].mxu0  ;;  %4631 = vtanh.f32 %v3931_v63  ;;  %v3935_v43 = vpop.f32.mrb[107].mxu1 }
 0xb73   :  { %v4056_v3 = vadd.f32 %v4055_v49, %v7267_v12  ;;  %v4057_v30 = vpop.f32.mrb[114].mxu0 }
 0xb74   :  { %4633 = vtanh.f32 %v4054_v8  ;;  %v4058_v35 = vpop.f32.mrb[115].mxu0 }
 0xb75   :  { %4635 = vtanh.f32 %v3933_v46 }
 0xb76   :  { %4637 = vtanh.f32 %v4056_v3 }
 0xb7c   :  { %v4632_v61 = vpop.eup %4631 }
 0xb7e   :  { %v4634_v42 = vpop.eup %4633 }
 0xb7f   :  { %v4636_v15 = vpop.eup %4635 }
 0xb80   :  { %v4638_v62 = vpop.eup %4637  ;;  %v4136_v60 = vcombine.low %v4632_v61, %v4636_v15 }
 0xb81   :  { %v4139_v10 = vcombine.low %v4634_v42, %v4638_v62 }
 0xb82   :  { %4152 = vst [vmem:[%s7329_s20 + $0x18] sm:$0x77] %v4136_v60 }
 0xb83   :  { %4155 = vst [vmem:[%s7329_s20 + $0x30] sm:$0x77] %v4139_v10 }
 0xb85   :  { %v4012_v14 = vpop.f32.mrb[108].mxu1 }
 0xb86   :  { %v4013_v50 = vadd.f32 %v4012_v14, %v7267_v12  ;;  %v4014_v55 = vpop.f32.mrb[109].mxu1 }
 0xb87   :  { %v4015_v44 = vadd.f32 %v4014_v55, %v7267_v12  ;;  %v4016_v52 = vpop.f32.mrb[110].mxu1 }
 0xb88   :  { %4639 = vtanh.f32 %v4013_v50  ;;  %v4017_v19 = vpop.f32.mrb[111].mxu1 }
 0xb89   :  { %4641 = vtanh.f32 %v4015_v44 }
 0xb92   :  { %v4640_v1 = vpop.eup %4639 }
 0xb93   :  { %v4642_v34 = vpop.eup %4641 }
 0xb94   :  { %v4138_v0 = vcombine.low %v4640_v1, %v4642_v34 }
 0xb96   :  { %4154 = vst [vmem:[%s7329_s20 + $0x28] sm:$0x77] %v4138_v0 }
 0xb99   :  { %v4094_v7 = vpop.f32.mrb[112].mxu1 }
 0xb9a   :  { %v4095_v24 = vadd.f32 %v4094_v7, %v7267_v12  ;;  %v4096_v21 = vpop.f32.mrb[113].mxu1 }
 0xb9b   :  { %v4097_v13 = vadd.f32 %v4096_v21, %v7267_v12  ;;  %v4098_v31 = vpop.f32.mrb[114].mxu1 }
 0xb9c   :  { %4643 = vtanh.f32 %v4095_v24  ;;  %v4099_v18 = vpop.f32.mrb[115].mxu1 }
 0xb9d   :  { %4645 = vtanh.f32 %v4097_v13 }
 0xba6   :  { %v4644_v9 = vpop.eup %4643 }
 0xba7   :  { %v4646_v53 = vpop.eup %4645 }
 0xba8   :  { %v4140_v37 = vcombine.low %v4644_v9, %v4646_v53 }
 0xbaa   :  { %4156 = vst [vmem:[%s7329_s20 + $0x38] sm:$0x77] %v4140_v37 }

</bundles_post_ra>
